<compile_context>
chip_gen: v7x
topology: tpu7x:2x2x1
jax: 0.10.0
libtpu: 0.0.40
codegen_flags: <defaults>
</compile_context>

<pallas_src>
import functools
import math

import jax
import jax.numpy as jnp
from jax.experimental import pallas as pl
from jax.experimental.pallas import tpu as pltpu


def _layer_norm(x, w, b, eps=1e-5):
    mu = jnp.mean(x, axis=-1, keepdims=True)
    var = jnp.mean(jnp.square(x - mu), axis=-1, keepdims=True)
    return (x - mu) * jax.lax.rsqrt(var + eps) * w + b


# w_attn slab layout (per layer, (D, 8*D), all stored (in, out) so kernel does x @ W):
#   cols [0:2D]  = self  Wq | Wk (fused, shared input x + pos)
#   cols [2D:3D] = self  Wv
#   cols [3D:4D] = self  Wo
#   cols [4D:5D] = cross Wq
#   cols [5D:6D] = cross Wk
#   cols [6D:7D] = cross Wv
#   cols [7D:8D] = cross Wo
# b_small row layout (per layer, (16, D)):
#   0 bq_s 1 bk_s 2 bv_s 3 bo_s 4 bq_c 5 bk_c 6 bv_c 7 bo_c 8 b2
#   9 ln1w 10 ln1b 11 ln2w 12 ln2b 13 ln3w 14 ln3b 15 (pad)
def act_decoder_kernel(x_ref, dpos_ref, ck_ref, cv_ref,
                       w_attn_ref, b_ref, w1_ref, b1_ref, w2_ref, fn_ref,
                       out_ref, x_sc, head_sc,
                       *, n_heads, pre_norm, activation, batch, dec_seq, mem_seq):
    l = pl.program_id(0)
    D = x_sc.shape[-1]
    hd = D // n_heads
    scale = 1.0 / math.sqrt(hd)

    @pl.when(l == 0)
    def _():
        x_sc[...] = x_ref[...]            # load residual stream (whole batch) once

    x = x_sc[...]                          # (B*DS, D) f32, resident across layers
    dpos = dpos_ref[...]                   # (B*DS, D) decoder pos embed (0 if None)
    ck = ck_ref[...]                       # (B*M, D) cross-attn key inputs
    cv = cv_ref[...]                       # (B*M, D) cross-attn value inputs

    def WA(i, j):                          # bf16 (D, (j-i)*D) weight slice from slab
        return w_attn_ref[0, :, i * D:j * D]

    def Bv(j):                             # f32 (1, D) bias / LN param row
        return b_ref[0, j:j + 1, :]

    def mm(a, w):                          # bf16-weight matmul with f32 accumulate
        return jnp.dot(a.astype(jnp.bfloat16), w,
                       preferred_element_type=jnp.float32)

    ln1w, ln1b = Bv(9), Bv(10)
    ln2w, ln2b = Bv(11), Bv(12)
    ln3w, ln3b = Bv(13), Bv(14)

    def attend(q, k, v, wo, bo, kv_rows):
        # q: (B*DS, D); k, v: (B*kv_rows, D).  Per-batch / per-head static loop for
        # scores + softmax + PV (f32, exact divide); head outputs go into lane slices
        # of head_sc so the out-projection is one lane-dense K=D matmul.
        for b in range(batch):
            qs = slice(b * dec_seq, (b + 1) * dec_seq)
            ks = slice(b * kv_rows, (b + 1) * kv_rows)
            for h in range(n_heads):
                hs = slice(h * hd, (h + 1) * hd)
                qh = q[qs, hs]
                kh = k[ks, hs]
                vh = v[ks, hs]
                s = jax.lax.dot_general(qh, kh, (((1,), (1,)), ((), ())),
                                        preferred_element_type=jnp.float32) * scale
                s = s - jnp.max(s, axis=-1, keepdims=True)
                p = jnp.exp(s)
                p = p / jnp.sum(p, axis=-1, keepdims=True)      # exact softmax
                head_sc[qs, hs] = jnp.dot(p, vh,
                                          preferred_element_type=jnp.float32)
        return mm(head_sc[...], wo) + bo

    # ----- self attention ---------------------------------------------------
    skip = x
    if pre_norm:
        x = _layer_norm(x, ln1w, ln1b)
    qk_in = x + dpos
    qk = mm(qk_in, WA(0, 2))               # fused Q|K projection, (B*DS, 2D)
    q = qk[:, 0:D] + Bv(0)
    k = qk[:, D:2 * D] + Bv(1)
    v = mm(x, WA(2, 3)) + Bv(2)
    # TODO(synk): dropout layers are identity (eval mode); training dropout not implemented.
    x = skip + attend(q, k, v, WA(3, 4), Bv(3), dec_seq)

    if pre_norm:
        skip = x
        x = _layer_norm(x, ln2w, ln2b)
    else:
        x = _layer_norm(x, ln1w, ln1b)
        skip = x

    # ----- cross attention (key/value input slabs precomputed, layer-invariant)
    qc = mm(x + dpos, WA(4, 5)) + Bv(4)
    kc = mm(ck, WA(5, 6)) + Bv(5)
    vc = mm(cv, WA(6, 7)) + Bv(6)
    x = skip + attend(qc, kc, vc, WA(7, 8), Bv(7), mem_seq)

    if pre_norm:
        skip = x
        x = _layer_norm(x, ln3w, ln3b)
    else:
        x = _layer_norm(x, ln2w, ln2b)
        skip = x

    # ----- feed forward -------------------------------------------------------
    h1 = mm(x, w1_ref[0]) + b1_ref[0]
    if activation == "relu":
        h1 = jnp.maximum(h1, 0.0)
    elif activation == "gelu":
        h1 = jax.nn.gelu(h1, approximate=False)   # PyTorch F.gelu default is exact erf
    else:
        raise NotImplementedError(activation)     # TODO(synk): glu activation not implemented
    h2 = mm(h1, w2_ref[0]) + Bv(8)
    x = skip + h2
    if not pre_norm:
        x = _layer_norm(x, ln3w, ln3b)

    x_sc[...] = x

    @pl.when(l == pl.num_programs(0) - 1)
    def _():
        # ACTDecoder's trailing LayerNorm (always applied)
        out_ref[...] = _layer_norm(x, fn_ref[0:1, :], fn_ref[1:2, :])


def init_params(key, num_layers, D, Dff):
    ks = jax.random.split(key, 4)
    w8 = jax.random.normal(ks[0], (num_layers, 8, D, D), jnp.float32) * 0.05
    # pack each layer's attention weights as one lane-dense (D, 8*D) bf16 slab
    w_attn = jnp.transpose(w8, (0, 2, 1, 3)).reshape(num_layers, D, 8 * D)
    w_attn = w_attn.astype(jnp.bfloat16)
    b_small = jnp.zeros((num_layers, 16, D), jnp.float32)
    b_small = b_small.at[:, 0:9, :].set(
        jax.random.normal(ks[3], (num_layers, 9, D), jnp.float32) * 0.01)
    b_small = b_small.at[:, 9:15:2, :].set(1.0)        # LayerNorm weights = 1
    w1 = (jax.random.normal(ks[1], (num_layers, D, Dff), jnp.float32) * 0.05
          ).astype(jnp.bfloat16)
    b1 = jnp.zeros((num_layers, 1, Dff), jnp.float32)
    w2 = (jax.random.normal(ks[2], (num_layers, Dff, D), jnp.float32) * 0.05
          ).astype(jnp.bfloat16)
    fn = jnp.stack([jnp.ones((D,), jnp.float32), jnp.zeros((D,), jnp.float32)])
    return dict(w_attn=w_attn, b_small=b_small, w1=w1, b1=b1, w2=w2, fn=fn)


def act_decoder_forward(x_sbd, encoder_out, timestep_embed,
                        decoder_pos_embed, encoder_pos_embed, params,
                        *, n_heads, pre_norm, activation="relu"):
    """x_sbd: (DS,B,D); encoder_out: (ES,B,D); timestep_embed: (TS,B,D);
    decoder_pos_embed: (DS,1,D) or None; encoder_pos_embed: (ES,1,D) or None."""
    DS, B, D = x_sbd.shape
    ES = encoder_out.shape[0]
    TS = timestep_embed.shape[0]
    M = ES + TS
    L, _, Dff = params['w1'].shape
    f32 = jnp.float32

    # TODO(synk): seq-first -> batch-first flatten done once here; could be removed
    # entirely by keeping a batch-first layout end-to-end in the caller.
    x = jnp.transpose(x_sbd, (1, 0, 2)).astype(f32).reshape(B * DS, D)
    enc = jnp.transpose(encoder_out, (1, 0, 2)).astype(f32)         # (B, ES, D)
    ts = jnp.transpose(timestep_embed, (1, 0, 2)).astype(f32)       # (B, TS, D)
    if decoder_pos_embed is None:
        dpos2 = jnp.zeros((DS, D), f32)
    else:
        dpos2 = decoder_pos_embed[:, 0, :].astype(f32)
    if encoder_pos_embed is None:
        epos = jnp.zeros((1, ES, D), f32)
    else:
        epos = jnp.transpose(encoder_pos_embed, (1, 0, 2)).astype(f32)
    # layer-invariant cross-attention inputs, precomputed once
    ck = jnp.concatenate([enc + epos, ts], axis=1).reshape(B * M, D)
    cv = jnp.concatenate([enc, ts], axis=1).reshape(B * M, D)
    dpos = jnp.tile(dpos2, (B, 1))                                   # (B*DS, D)

    kernel = functools.partial(
        act_decoder_kernel, n_heads=n_heads, pre_norm=pre_norm,
        activation=activation, batch=B, dec_seq=DS, mem_seq=M)

    out = pl.pallas_call(
        kernel,
        out_shape=jax.ShapeDtypeStruct((B * DS, D), f32),
        grid_spec=pltpu.PrefetchScalarGridSpec(
            num_scalar_prefetch=0,
            grid=(L,),                            # layer-only grid: weights stream once
            in_specs=[
                pl.BlockSpec((B * DS, D), lambda l: (0, 0)),        # x (read at l == 0)
                pl.BlockSpec((B * DS, D), lambda l: (0, 0)),        # decoder pos embed
                pl.BlockSpec((B * M, D), lambda l: (0, 0)),         # cross-attn key inputs
                pl.BlockSpec((B * M, D), lambda l: (0, 0)),         # cross-attn value inputs
                pl.BlockSpec((1, D, 8 * D), lambda l: (l, 0, 0)),   # attn weight slab (bf16)
                pl.BlockSpec((1, 16, D), lambda l: (l, 0, 0)),      # biases + LN params
                pl.BlockSpec((1, D, Dff), lambda l: (l, 0, 0)),     # linear1 weight (bf16)
                pl.BlockSpec((1, 1, Dff), lambda l: (l, 0, 0)),     # linear1 bias
                pl.BlockSpec((1, Dff, D), lambda l: (l, 0, 0)),     # linear2 weight (bf16)
                pl.BlockSpec((2, D), lambda l: (0, 0)),             # final LayerNorm (w, b)
            ],
            out_specs=pl.BlockSpec((B * DS, D), lambda l: (0, 0)),
            scratch_shapes=[
                pltpu.VMEM((B * DS, D), f32),    # resident residual stream
                pltpu.VMEM((B * DS, D), f32),    # per-head attention output slab
            ]),
        compiler_params=pltpu.CompilerParams(
            dimension_semantics=("arbitrary",),
            vmem_limit_bytes=48 * 1024 * 1024),
    )(x, dpos, ck, cv,
      params['w_attn'], params['b_small'], params['w1'], params['b1'],
      params['w2'], params['fn'])

    return jnp.transpose(out.reshape(B, DS, D), (1, 0, 2))   # back to (DS, B, D)


if __name__ == "__main__":
    # small but lane-dense config: dim_model=128, n_heads=4, dim_feedforward=256,
    # n_decoder_layers=2, pre_norm=False, activation=relu
    DS, ES, TS, B = 8, 16, 1, 2
    D, H, DFF, L = 128, 4, 256, 2
    PRE_NORM = False

    key = jax.random.PRNGKey(0)
    k1, k2, k3, k4, k5, kw = jax.random.split(key, 6)
    x = jax.random.normal(k1, (DS, B, D), jnp.float32)                # decoder tokens
    encoder_out = jax.random.normal(k2, (ES, B, D), jnp.float32)
    timestep_embed = jax.random.normal(k3, (TS, B, D), jnp.float32)
    decoder_pos_embed = jax.random.normal(k4, (DS, 1, D), jnp.float32)
    encoder_pos_embed = jax.random.normal(k5, (ES, 1, D), jnp.float32)

    params = init_params(kw, L, D, DFF)

    out = act_decoder_forward(x, encoder_out, timestep_embed,
                              decoder_pos_embed, encoder_pos_embed, params,
                              n_heads=H, pre_norm=PRE_NORM, activation="relu")
    jax.block_until_ready(out)
    assert out.shape == (DS, B, D)
    print("KERNEL_OK")
</pallas_src>

<mosaic_0001>
module attributes {stable_mosaic.version = 11 : i64} {
  func.func @act_decoder_kernel(%arg0: i32, %arg1: memref<16x128xf32, #tpu.memory_space<vmem>>, %arg2: memref<16x128xf32, #tpu.memory_space<vmem>>, %arg3: memref<34x128xf32, #tpu.memory_space<vmem>>, %arg4: memref<34x128xf32, #tpu.memory_space<vmem>>, %arg5: memref<1x128x1024xbf16, #tpu.memory_space<vmem>>, %arg6: memref<1x16x128xf32, #tpu.memory_space<vmem>>, %arg7: memref<1x128x256xbf16, #tpu.memory_space<vmem>>, %arg8: memref<1x1x256xf32, #tpu.memory_space<vmem>>, %arg9: memref<1x256x128xbf16, #tpu.memory_space<vmem>>, %arg10: memref<2x128xf32, #tpu.memory_space<vmem>>, %arg11: memref<16x128xf32, #tpu.memory_space<vmem>>, %arg12: memref<16x128xf32, #tpu.memory_space<vmem>>, %arg13: memref<16x128xf32, #tpu.memory_space<vmem>>) attributes {dimension_semantics = [#tpu.dimension_semantics<arbitrary>], iteration_bounds = array<i64: 2>, scalar_prefetch = 0 : i64, scratch_operands = 2 : i64, tpu.core_type = #tpu.core_type<tc>, window_params = [{pipeline_mode = #tpu.pipeline_mode<synchronous>, transform_indices = @transform_0, window_bounds = array<i64: 16, 128>}, {pipeline_mode = #tpu.pipeline_mode<synchronous>, transform_indices = @transform_1, window_bounds = array<i64: 16, 128>}, {pipeline_mode = #tpu.pipeline_mode<synchronous>, transform_indices = @transform_2, window_bounds = array<i64: 34, 128>}, {pipeline_mode = #tpu.pipeline_mode<synchronous>, transform_indices = @transform_3, window_bounds = array<i64: 34, 128>}, {transform_indices = @transform_4, window_bounds = array<i64: 1, 128, 1024>}, {transform_indices = @transform_5, window_bounds = array<i64: 1, 16, 128>}, {transform_indices = @transform_6, window_bounds = array<i64: 1, 128, 256>}, {transform_indices = @transform_7, window_bounds = array<i64: 1, 1, 256>}, {transform_indices = @transform_8, window_bounds = array<i64: 1, 256, 128>}, {pipeline_mode = #tpu.pipeline_mode<synchronous>, transform_indices = @transform_9, window_bounds = array<i64: 2, 128>}, {pipeline_mode = #tpu.pipeline_mode<synchronous>, transform_indices = @transform_10, window_bounds = array<i64: 16, 128>}]} {
    %c0_i32 = arith.constant 0 : i32
    %0 = arith.cmpi eq, %arg0, %c0_i32 : i32
    %1 = arith.extui %0 : i1 to i32
    %c0_i32_0 = arith.constant 0 : i32
    %2 = arith.cmpi ne, %1, %c0_i32_0 : i32
    scf.if %2 {
      %c0_203 = arith.constant 0 : index
      %c0_204 = arith.constant 0 : index
      %448 = vector.load %arg1[%c0_203, %c0_204] : memref<16x128xf32, #tpu.memory_space<vmem>>, vector<16x128xf32>
      %c0_205 = arith.constant 0 : index
      %c0_206 = arith.constant 0 : index
      %449 = vector.load %arg12[%c0_205, %c0_206] : memref<16x128xf32, #tpu.memory_space<vmem>>, vector<16x128xf32>
      tpu.vector_store %arg12[%c0_205, %c0_206], %448 {strides = array<i32>} : memref<16x128xf32, #tpu.memory_space<vmem>>, vector<16x128xf32>,
    } else {
    }
    %c0 = arith.constant 0 : index
    %c0_1 = arith.constant 0 : index
    %3 = vector.load %arg12[%c0, %c0_1] : memref<16x128xf32, #tpu.memory_space<vmem>>, vector<16x128xf32>
    %c0_2 = arith.constant 0 : index
    %c0_3 = arith.constant 0 : index
    %4 = vector.load %arg2[%c0_2, %c0_3] : memref<16x128xf32, #tpu.memory_space<vmem>>, vector<16x128xf32>
    %c0_4 = arith.constant 0 : index
    %c0_5 = arith.constant 0 : index
    %5 = vector.load %arg3[%c0_4, %c0_5] : memref<34x128xf32, #tpu.memory_space<vmem>>, vector<34x128xf32>
    %c0_6 = arith.constant 0 : index
    %c0_7 = arith.constant 0 : index
    %6 = vector.load %arg4[%c0_6, %c0_7] : memref<34x128xf32, #tpu.memory_space<vmem>>, vector<34x128xf32>
    %c0_8 = arith.constant 0 : index
    %c9 = arith.constant 9 : index
    %c0_9 = arith.constant 0 : index
    %7 = vector.load %arg6[%c0_8, %c9, %c0_9] : memref<1x16x128xf32, #tpu.memory_space<vmem>>, vector<1x1x128xf32>
    %8 = vector.shape_cast %7 : vector<1x1x128xf32> to vector<1x128xf32>
    %c0_10 = arith.constant 0 : index
    %c10 = arith.constant 10 : index
    %c0_11 = arith.constant 0 : index
    %9 = vector.load %arg6[%c0_10, %c10, %c0_11] : memref<1x16x128xf32, #tpu.memory_space<vmem>>, vector<1x1x128xf32>
    %10 = vector.shape_cast %9 : vector<1x1x128xf32> to vector<1x128xf32>
    %c0_12 = arith.constant 0 : index
    %c11 = arith.constant 11 : index
    %c0_13 = arith.constant 0 : index
    %11 = vector.load %arg6[%c0_12, %c11, %c0_13] : memref<1x16x128xf32, #tpu.memory_space<vmem>>, vector<1x1x128xf32>
    %12 = vector.shape_cast %11 : vector<1x1x128xf32> to vector<1x128xf32>
    %c0_14 = arith.constant 0 : index
    %c12 = arith.constant 12 : index
    %c0_15 = arith.constant 0 : index
    %13 = vector.load %arg6[%c0_14, %c12, %c0_15] : memref<1x16x128xf32, #tpu.memory_space<vmem>>, vector<1x1x128xf32>
    %14 = vector.shape_cast %13 : vector<1x1x128xf32> to vector<1x128xf32>
    %c0_16 = arith.constant 0 : index
    %c13 = arith.constant 13 : index
    %c0_17 = arith.constant 0 : index
    %15 = vector.load %arg6[%c0_16, %c13, %c0_17] : memref<1x16x128xf32, #tpu.memory_space<vmem>>, vector<1x1x128xf32>
    %16 = vector.shape_cast %15 : vector<1x1x128xf32> to vector<1x128xf32>
    %c0_18 = arith.constant 0 : index
    %c14 = arith.constant 14 : index
    %c0_19 = arith.constant 0 : index
    %17 = vector.load %arg6[%c0_18, %c14, %c0_19] : memref<1x16x128xf32, #tpu.memory_space<vmem>>, vector<1x1x128xf32>
    %18 = vector.shape_cast %17 : vector<1x1x128xf32> to vector<1x128xf32>
    %19 = arith.addf %3, %4 : vector<16x128xf32>
    %c0_20 = arith.constant 0 : index
    %c0_21 = arith.constant 0 : index
    %c0_22 = arith.constant 0 : index
    %20 = vector.load %arg5[%c0_20, %c0_21, %c0_22] : memref<1x128x1024xbf16, #tpu.memory_space<vmem>>, vector<1x128x256xbf16>
    %21 = vector.shape_cast %20 : vector<1x128x256xbf16> to vector<128x256xbf16>
    %22 = arith.truncf %19 : vector<16x128xf32> to vector<16x128xbf16>
    %cst = arith.constant dense<0.000000e+00> : vector<16x256xf32>
    %23 = tpu.matmul %22, %21, %cst {dimension_numbers = #tpu.dot_dimension_numbers<[1], [0], [0], [1], [0, 0, 1, 1], [], []>} : vector<16x128xbf16>, vector<128x256xbf16>, vector<16x256xf32> -> vector<16x256xf32>
    %24 = vector.extract_strided_slice %23 {offsets = [0, 0], sizes = [16, 128], strides = [1, 1]} : vector<16x256xf32> to vector<16x128xf32>
    %c0_23 = arith.constant 0 : index
    %c0_24 = arith.constant 0 : index
    %c0_25 = arith.constant 0 : index
    %25 = vector.load %arg6[%c0_23, %c0_24, %c0_25] : memref<1x16x128xf32, #tpu.memory_space<vmem>>, vector<1x1x128xf32>
    %26 = vector.shape_cast %25 : vector<1x1x128xf32> to vector<1x128xf32>
    %27 = vector.broadcast %26 : vector<1x128xf32> to vector<16x128xf32>
    %28 = arith.addf %24, %27 : vector<16x128xf32>
    %29 = vector.extract_strided_slice %23 {offsets = [0, 128], sizes = [16, 128], strides = [1, 1]} : vector<16x256xf32> to vector<16x128xf32>
    %c0_26 = arith.constant 0 : index
    %c1 = arith.constant 1 : index
    %c0_27 = arith.constant 0 : index
    %30 = vector.load %arg6[%c0_26, %c1, %c0_27] : memref<1x16x128xf32, #tpu.memory_space<vmem>>, vector<1x1x128xf32>
    %31 = vector.shape_cast %30 : vector<1x1x128xf32> to vector<1x128xf32>
    %32 = vector.broadcast %31 : vector<1x128xf32> to vector<16x128xf32>
    %33 = arith.addf %29, %32 : vector<16x128xf32>
    %c0_28 = arith.constant 0 : index
    %c0_29 = arith.constant 0 : index
    %c256 = arith.constant 256 : index
    %34 = vector.load %arg5[%c0_28, %c0_29, %c256] : memref<1x128x1024xbf16, #tpu.memory_space<vmem>>, vector<1x128x128xbf16>
    %35 = vector.shape_cast %34 : vector<1x128x128xbf16> to vector<128x128xbf16>
    %36 = arith.truncf %3 : vector<16x128xf32> to vector<16x128xbf16>
    %cst_30 = arith.constant dense<0.000000e+00> : vector<16x128xf32>
    %37 = tpu.matmul %36, %35, %cst_30 {dimension_numbers = #tpu.dot_dimension_numbers<[1], [0], [0], [1], [0, 0, 1, 1], [], []>} : vector<16x128xbf16>, vector<128x128xbf16>, vector<16x128xf32> -> vector<16x128xf32>
    %c0_31 = arith.constant 0 : index
    %c2 = arith.constant 2 : index
    %c0_32 = arith.constant 0 : index
    %38 = vector.load %arg6[%c0_31, %c2, %c0_32] : memref<1x16x128xf32, #tpu.memory_space<vmem>>, vector<1x1x128xf32>
    %39 = vector.shape_cast %38 : vector<1x1x128xf32> to vector<1x128xf32>
    %40 = vector.broadcast %39 : vector<1x128xf32> to vector<16x128xf32>
    %41 = arith.addf %37, %40 : vector<16x128xf32>
    %c0_33 = arith.constant 0 : index
    %c0_34 = arith.constant 0 : index
    %c384 = arith.constant 384 : index
    %42 = vector.load %arg5[%c0_33, %c0_34, %c384] : memref<1x128x1024xbf16, #tpu.memory_space<vmem>>, vector<1x128x128xbf16>
    %43 = vector.shape_cast %42 : vector<1x128x128xbf16> to vector<128x128xbf16>
    %c0_35 = arith.constant 0 : index
    %c3 = arith.constant 3 : index
    %c0_36 = arith.constant 0 : index
    %44 = vector.load %arg6[%c0_35, %c3, %c0_36] : memref<1x16x128xf32, #tpu.memory_space<vmem>>, vector<1x1x128xf32>
    %45 = vector.shape_cast %44 : vector<1x1x128xf32> to vector<1x128xf32>
    %46 = vector.extract_strided_slice %28 {offsets = [0, 0], sizes = [8, 32], strides = [1, 1]} : vector<16x128xf32> to vector<8x32xf32>
    %47 = vector.extract_strided_slice %33 {offsets = [0, 0], sizes = [8, 32], strides = [1, 1]} : vector<16x128xf32> to vector<8x32xf32>
    %48 = vector.extract_strided_slice %41 {offsets = [0, 0], sizes = [8, 32], strides = [1, 1]} : vector<16x128xf32> to vector<8x32xf32>
    %cst_37 = arith.constant dense<0.000000e+00> : vector<8x8xf32>
    %49 = tpu.matmul %46, %47, %cst_37 {dimension_numbers = #tpu.dot_dimension_numbers<[1], [1], [0], [0], [0, 0, 1, 0], [], []>} : vector<8x32xf32>, vector<8x32xf32>, vector<8x8xf32> -> vector<8x8xf32>
    %cst_38 = arith.constant 0.176776692 : f32
    %50 = vector.broadcast %cst_38 : f32 to vector<8x8xf32>
    %51 = arith.mulf %49, %50 : vector<8x8xf32>
    %cst_39 = arith.constant dense<0xFF800000> : vector<8xf32>
    %52 = vector.multi_reduction <maximumf>, %51, %cst_39 [1] : vector<8x8xf32> to vector<8xf32>
    %53 = vector.shape_cast %52 : vector<8xf32> to vector<8x1xf32>
    %54 = vector.broadcast %53 : vector<8x1xf32> to vector<8x8xf32>
    %55 = arith.subf %51, %54 : vector<8x8xf32>
    %56 = math.exp %55 : vector<8x8xf32>
    %cst_40 = arith.constant dense<0.000000e+00> : vector<8xf32>
    %57 = vector.multi_reduction <add>, %56, %cst_40 [1] : vector<8x8xf32> to vector<8xf32>
    %58 = vector.shape_cast %57 : vector<8xf32> to vector<8x1xf32>
    %59 = vector.broadcast %58 : vector<8x1xf32> to vector<8x8xf32>
    %60 = arith.divf %56, %59 : vector<8x8xf32>
    %cst_41 = arith.constant dense<0.000000e+00> : vector<8x32xf32>
    %61 = tpu.matmul %60, %48, %cst_41 {dimension_numbers = #tpu.dot_dimension_numbers<[1], [0], [0], [1], [0, 0, 1, 1], [], []>} : vector<8x8xf32>, vector<8x32xf32>, vector<8x32xf32> -> vector<8x32xf32>
    %c0_42 = arith.constant 0 : index
    %c0_43 = arith.constant 0 : index
    %62 = vector.load %arg13[%c0_42, %c0_43] : memref<16x128xf32, #tpu.memory_space<vmem>>, vector<8x32xf32>
    tpu.vector_store %arg13[%c0_42, %c0_43], %61 {strides = array<i32>} : memref<16x128xf32, #tpu.memory_space<vmem>>, vector<8x32xf32>,
    %63 = vector.extract_strided_slice %28 {offsets = [0, 32], sizes = [8, 32], strides = [1, 1]} : vector<16x128xf32> to vector<8x32xf32>
    %64 = vector.extract_strided_slice %33 {offsets = [0, 32], sizes = [8, 32], strides = [1, 1]} : vector<16x128xf32> to vector<8x32xf32>
    %65 = vector.extract_strided_slice %41 {offsets = [0, 32], sizes = [8, 32], strides = [1, 1]} : vector<16x128xf32> to vector<8x32xf32>
    %cst_44 = arith.constant dense<0.000000e+00> : vector<8x8xf32>
    %66 = tpu.matmul %63, %64, %cst_44 {dimension_numbers = #tpu.dot_dimension_numbers<[1], [1], [0], [0], [0, 0, 1, 0], [], []>} : vector<8x32xf32>, vector<8x32xf32>, vector<8x8xf32> -> vector<8x8xf32>
    %cst_45 = arith.constant 0.176776692 : f32
    %67 = vector.broadcast %cst_45 : f32 to vector<8x8xf32>
    %68 = arith.mulf %66, %67 : vector<8x8xf32>
    %cst_46 = arith.constant dense<0xFF800000> : vector<8xf32>
    %69 = vector.multi_reduction <maximumf>, %68, %cst_46 [1] : vector<8x8xf32> to vector<8xf32>
    %70 = vector.shape_cast %69 : vector<8xf32> to vector<8x1xf32>
    %71 = vector.broadcast %70 : vector<8x1xf32> to vector<8x8xf32>
    %72 = arith.subf %68, %71 : vector<8x8xf32>
    %73 = math.exp %72 : vector<8x8xf32>
    %cst_47 = arith.constant dense<0.000000e+00> : vector<8xf32>
    %74 = vector.multi_reduction <add>, %73, %cst_47 [1] : vector<8x8xf32> to vector<8xf32>
    %75 = vector.shape_cast %74 : vector<8xf32> to vector<8x1xf32>
    %76 = vector.broadcast %75 : vector<8x1xf32> to vector<8x8xf32>
    %77 = arith.divf %73, %76 : vector<8x8xf32>
    %cst_48 = arith.constant dense<0.000000e+00> : vector<8x32xf32>
    %78 = tpu.matmul %77, %65, %cst_48 {dimension_numbers = #tpu.dot_dimension_numbers<[1], [0], [0], [1], [0, 0, 1, 1], [], []>} : vector<8x8xf32>, vector<8x32xf32>, vector<8x32xf32> -> vector<8x32xf32>
    %c0_49 = arith.constant 0 : index
    %c32 = arith.constant 32 : index
    %79 = vector.load %arg13[%c0_49, %c32] : memref<16x128xf32, #tpu.memory_space<vmem>>, vector<8x32xf32>
    tpu.vector_store %arg13[%c0_49, %c32], %78 {strides = array<i32>} : memref<16x128xf32, #tpu.memory_space<vmem>>, vector<8x32xf32>,
    %80 = vector.extract_strided_slice %28 {offsets = [0, 64], sizes = [8, 32], strides = [1, 1]} : vector<16x128xf32> to vector<8x32xf32>
    %81 = vector.extract_strided_slice %33 {offsets = [0, 64], sizes = [8, 32], strides = [1, 1]} : vector<16x128xf32> to vector<8x32xf32>
    %82 = vector.extract_strided_slice %41 {offsets = [0, 64], sizes = [8, 32], strides = [1, 1]} : vector<16x128xf32> to vector<8x32xf32>
    %cst_50 = arith.constant dense<0.000000e+00> : vector<8x8xf32>
    %83 = tpu.matmul %80, %81, %cst_50 {dimension_numbers = #tpu.dot_dimension_numbers<[1], [1], [0], [0], [0, 0, 1, 0], [], []>} : vector<8x32xf32>, vector<8x32xf32>, vector<8x8xf32> -> vector<8x8xf32>
    %cst_51 = arith.constant 0.176776692 : f32
    %84 = vector.broadcast %cst_51 : f32 to vector<8x8xf32>
    %85 = arith.mulf %83, %84 : vector<8x8xf32>
    %cst_52 = arith.constant dense<0xFF800000> : vector<8xf32>
    %86 = vector.multi_reduction <maximumf>, %85, %cst_52 [1] : vector<8x8xf32> to vector<8xf32>
    %87 = vector.shape_cast %86 : vector<8xf32> to vector<8x1xf32>
    %88 = vector.broadcast %87 : vector<8x1xf32> to vector<8x8xf32>
    %89 = arith.subf %85, %88 : vector<8x8xf32>
    %90 = math.exp %89 : vector<8x8xf32>
    %cst_53 = arith.constant dense<0.000000e+00> : vector<8xf32>
    %91 = vector.multi_reduction <add>, %90, %cst_53 [1] : vector<8x8xf32> to vector<8xf32>
    %92 = vector.shape_cast %91 : vector<8xf32> to vector<8x1xf32>
    %93 = vector.broadcast %92 : vector<8x1xf32> to vector<8x8xf32>
    %94 = arith.divf %90, %93 : vector<8x8xf32>
    %cst_54 = arith.constant dense<0.000000e+00> : vector<8x32xf32>
    %95 = tpu.matmul %94, %82, %cst_54 {dimension_numbers = #tpu.dot_dimension_numbers<[1], [0], [0], [1], [0, 0, 1, 1], [], []>} : vector<8x8xf32>, vector<8x32xf32>, vector<8x32xf32> -> vector<8x32xf32>
    %c0_55 = arith.constant 0 : index
    %c64 = arith.constant 64 : index
    %96 = vector.load %arg13[%c0_55, %c64] : memref<16x128xf32, #tpu.memory_space<vmem>>, vector<8x32xf32>
    tpu.vector_store %arg13[%c0_55, %c64], %95 {strides = array<i32>} : memref<16x128xf32, #tpu.memory_space<vmem>>, vector<8x32xf32>,
    %97 = vector.extract_strided_slice %28 {offsets = [0, 96], sizes = [8, 32], strides = [1, 1]} : vector<16x128xf32> to vector<8x32xf32>
    %98 = vector.extract_strided_slice %33 {offsets = [0, 96], sizes = [8, 32], strides = [1, 1]} : vector<16x128xf32> to vector<8x32xf32>
    %99 = vector.extract_strided_slice %41 {offsets = [0, 96], sizes = [8, 32], strides = [1, 1]} : vector<16x128xf32> to vector<8x32xf32>
    %cst_56 = arith.constant dense<0.000000e+00> : vector<8x8xf32>
    %100 = tpu.matmul %97, %98, %cst_56 {dimension_numbers = #tpu.dot_dimension_numbers<[1], [1], [0], [0], [0, 0, 1, 0], [], []>} : vector<8x32xf32>, vector<8x32xf32>, vector<8x8xf32> -> vector<8x8xf32>
    %cst_57 = arith.constant 0.176776692 : f32
    %101 = vector.broadcast %cst_57 : f32 to vector<8x8xf32>
    %102 = arith.mulf %100, %101 : vector<8x8xf32>
    %cst_58 = arith.constant dense<0xFF800000> : vector<8xf32>
    %103 = vector.multi_reduction <maximumf>, %102, %cst_58 [1] : vector<8x8xf32> to vector<8xf32>
    %104 = vector.shape_cast %103 : vector<8xf32> to vector<8x1xf32>
    %105 = vector.broadcast %104 : vector<8x1xf32> to vector<8x8xf32>
    %106 = arith.subf %102, %105 : vector<8x8xf32>
    %107 = math.exp %106 : vector<8x8xf32>
    %cst_59 = arith.constant dense<0.000000e+00> : vector<8xf32>
    %108 = vector.multi_reduction <add>, %107, %cst_59 [1] : vector<8x8xf32> to vector<8xf32>
    %109 = vector.shape_cast %108 : vector<8xf32> to vector<8x1xf32>
    %110 = vector.broadcast %109 : vector<8x1xf32> to vector<8x8xf32>
    %111 = arith.divf %107, %110 : vector<8x8xf32>
    %cst_60 = arith.constant dense<0.000000e+00> : vector<8x32xf32>
    %112 = tpu.matmul %111, %99, %cst_60 {dimension_numbers = #tpu.dot_dimension_numbers<[1], [0], [0], [1], [0, 0, 1, 1], [], []>} : vector<8x8xf32>, vector<8x32xf32>, vector<8x32xf32> -> vector<8x32xf32>
    %c0_61 = arith.constant 0 : index
    %c96 = arith.constant 96 : index
    %113 = vector.load %arg13[%c0_61, %c96] : memref<16x128xf32, #tpu.memory_space<vmem>>, vector<8x32xf32>
    tpu.vector_store %arg13[%c0_61, %c96], %112 {strides = array<i32>} : memref<16x128xf32, #tpu.memory_space<vmem>>, vector<8x32xf32>,
    %114 = vector.extract_strided_slice %28 {offsets = [8, 0], sizes = [8, 32], strides = [1, 1]} : vector<16x128xf32> to vector<8x32xf32>
    %115 = vector.extract_strided_slice %33 {offsets = [8, 0], sizes = [8, 32], strides = [1, 1]} : vector<16x128xf32> to vector<8x32xf32>
    %116 = vector.extract_strided_slice %41 {offsets = [8, 0], sizes = [8, 32], strides = [1, 1]} : vector<16x128xf32> to vector<8x32xf32>
    %cst_62 = arith.constant dense<0.000000e+00> : vector<8x8xf32>
    %117 = tpu.matmul %114, %115, %cst_62 {dimension_numbers = #tpu.dot_dimension_numbers<[1], [1], [0], [0], [0, 0, 1, 0], [], []>} : vector<8x32xf32>, vector<8x32xf32>, vector<8x8xf32> -> vector<8x8xf32>
    %cst_63 = arith.constant 0.176776692 : f32
    %118 = vector.broadcast %cst_63 : f32 to vector<8x8xf32>
    %119 = arith.mulf %117, %118 : vector<8x8xf32>
    %cst_64 = arith.constant dense<0xFF800000> : vector<8xf32>
    %120 = vector.multi_reduction <maximumf>, %119, %cst_64 [1] : vector<8x8xf32> to vector<8xf32>
    %121 = vector.shape_cast %120 : vector<8xf32> to vector<8x1xf32>
    %122 = vector.broadcast %121 : vector<8x1xf32> to vector<8x8xf32>
    %123 = arith.subf %119, %122 : vector<8x8xf32>
    %124 = math.exp %123 : vector<8x8xf32>
    %cst_65 = arith.constant dense<0.000000e+00> : vector<8xf32>
    %125 = vector.multi_reduction <add>, %124, %cst_65 [1] : vector<8x8xf32> to vector<8xf32>
    %126 = vector.shape_cast %125 : vector<8xf32> to vector<8x1xf32>
    %127 = vector.broadcast %126 : vector<8x1xf32> to vector<8x8xf32>
    %128 = arith.divf %124, %127 : vector<8x8xf32>
    %cst_66 = arith.constant dense<0.000000e+00> : vector<8x32xf32>
    %129 = tpu.matmul %128, %116, %cst_66 {dimension_numbers = #tpu.dot_dimension_numbers<[1], [0], [0], [1], [0, 0, 1, 1], [], []>} : vector<8x8xf32>, vector<8x32xf32>, vector<8x32xf32> -> vector<8x32xf32>
    %c8 = arith.constant 8 : index
    %c0_67 = arith.constant 0 : index
    %130 = vector.load %arg13[%c8, %c0_67] : memref<16x128xf32, #tpu.memory_space<vmem>>, vector<8x32xf32>
    tpu.vector_store %arg13[%c8, %c0_67], %129 {strides = array<i32>} : memref<16x128xf32, #tpu.memory_space<vmem>>, vector<8x32xf32>,
    %131 = vector.extract_strided_slice %28 {offsets = [8, 32], sizes = [8, 32], strides = [1, 1]} : vector<16x128xf32> to vector<8x32xf32>
    %132 = vector.extract_strided_slice %33 {offsets = [8, 32], sizes = [8, 32], strides = [1, 1]} : vector<16x128xf32> to vector<8x32xf32>
    %133 = vector.extract_strided_slice %41 {offsets = [8, 32], sizes = [8, 32], strides = [1, 1]} : vector<16x128xf32> to vector<8x32xf32>
    %cst_68 = arith.constant dense<0.000000e+00> : vector<8x8xf32>
    %134 = tpu.matmul %131, %132, %cst_68 {dimension_numbers = #tpu.dot_dimension_numbers<[1], [1], [0], [0], [0, 0, 1, 0], [], []>} : vector<8x32xf32>, vector<8x32xf32>, vector<8x8xf32> -> vector<8x8xf32>
    %cst_69 = arith.constant 0.176776692 : f32
    %135 = vector.broadcast %cst_69 : f32 to vector<8x8xf32>
    %136 = arith.mulf %134, %135 : vector<8x8xf32>
    %cst_70 = arith.constant dense<0xFF800000> : vector<8xf32>
    %137 = vector.multi_reduction <maximumf>, %136, %cst_70 [1] : vector<8x8xf32> to vector<8xf32>
    %138 = vector.shape_cast %137 : vector<8xf32> to vector<8x1xf32>
    %139 = vector.broadcast %138 : vector<8x1xf32> to vector<8x8xf32>
    %140 = arith.subf %136, %139 : vector<8x8xf32>
    %141 = math.exp %140 : vector<8x8xf32>
    %cst_71 = arith.constant dense<0.000000e+00> : vector<8xf32>
    %142 = vector.multi_reduction <add>, %141, %cst_71 [1] : vector<8x8xf32> to vector<8xf32>
    %143 = vector.shape_cast %142 : vector<8xf32> to vector<8x1xf32>
    %144 = vector.broadcast %143 : vector<8x1xf32> to vector<8x8xf32>
    %145 = arith.divf %141, %144 : vector<8x8xf32>
    %cst_72 = arith.constant dense<0.000000e+00> : vector<8x32xf32>
    %146 = tpu.matmul %145, %133, %cst_72 {dimension_numbers = #tpu.dot_dimension_numbers<[1], [0], [0], [1], [0, 0, 1, 1], [], []>} : vector<8x8xf32>, vector<8x32xf32>, vector<8x32xf32> -> vector<8x32xf32>
    %c8_73 = arith.constant 8 : index
    %c32_74 = arith.constant 32 : index
    %147 = vector.load %arg13[%c8_73, %c32_74] : memref<16x128xf32, #tpu.memory_space<vmem>>, vector<8x32xf32>
    tpu.vector_store %arg13[%c8_73, %c32_74], %146 {strides = array<i32>} : memref<16x128xf32, #tpu.memory_space<vmem>>, vector<8x32xf32>,
    %148 = vector.extract_strided_slice %28 {offsets = [8, 64], sizes = [8, 32], strides = [1, 1]} : vector<16x128xf32> to vector<8x32xf32>
    %149 = vector.extract_strided_slice %33 {offsets = [8, 64], sizes = [8, 32], strides = [1, 1]} : vector<16x128xf32> to vector<8x32xf32>
    %150 = vector.extract_strided_slice %41 {offsets = [8, 64], sizes = [8, 32], strides = [1, 1]} : vector<16x128xf32> to vector<8x32xf32>
    %cst_75 = arith.constant dense<0.000000e+00> : vector<8x8xf32>
    %151 = tpu.matmul %148, %149, %cst_75 {dimension_numbers = #tpu.dot_dimension_numbers<[1], [1], [0], [0], [0, 0, 1, 0], [], []>} : vector<8x32xf32>, vector<8x32xf32>, vector<8x8xf32> -> vector<8x8xf32>
    %cst_76 = arith.constant 0.176776692 : f32
    %152 = vector.broadcast %cst_76 : f32 to vector<8x8xf32>
    %153 = arith.mulf %151, %152 : vector<8x8xf32>
    %cst_77 = arith.constant dense<0xFF800000> : vector<8xf32>
    %154 = vector.multi_reduction <maximumf>, %153, %cst_77 [1] : vector<8x8xf32> to vector<8xf32>
    %155 = vector.shape_cast %154 : vector<8xf32> to vector<8x1xf32>
    %156 = vector.broadcast %155 : vector<8x1xf32> to vector<8x8xf32>
    %157 = arith.subf %153, %156 : vector<8x8xf32>
    %158 = math.exp %157 : vector<8x8xf32>
    %cst_78 = arith.constant dense<0.000000e+00> : vector<8xf32>
    %159 = vector.multi_reduction <add>, %158, %cst_78 [1] : vector<8x8xf32> to vector<8xf32>
    %160 = vector.shape_cast %159 : vector<8xf32> to vector<8x1xf32>
    %161 = vector.broadcast %160 : vector<8x1xf32> to vector<8x8xf32>
    %162 = arith.divf %158, %161 : vector<8x8xf32>
    %cst_79 = arith.constant dense<0.000000e+00> : vector<8x32xf32>
    %163 = tpu.matmul %162, %150, %cst_79 {dimension_numbers = #tpu.dot_dimension_numbers<[1], [0], [0], [1], [0, 0, 1, 1], [], []>} : vector<8x8xf32>, vector<8x32xf32>, vector<8x32xf32> -> vector<8x32xf32>
    %c8_80 = arith.constant 8 : index
    %c64_81 = arith.constant 64 : index
    %164 = vector.load %arg13[%c8_80, %c64_81] : memref<16x128xf32, #tpu.memory_space<vmem>>, vector<8x32xf32>
    tpu.vector_store %arg13[%c8_80, %c64_81], %163 {strides = array<i32>} : memref<16x128xf32, #tpu.memory_space<vmem>>, vector<8x32xf32>,
    %165 = vector.extract_strided_slice %28 {offsets = [8, 96], sizes = [8, 32], strides = [1, 1]} : vector<16x128xf32> to vector<8x32xf32>
    %166 = vector.extract_strided_slice %33 {offsets = [8, 96], sizes = [8, 32], strides = [1, 1]} : vector<16x128xf32> to vector<8x32xf32>
    %167 = vector.extract_strided_slice %41 {offsets = [8, 96], sizes = [8, 32], strides = [1, 1]} : vector<16x128xf32> to vector<8x32xf32>
    %cst_82 = arith.constant dense<0.000000e+00> : vector<8x8xf32>
    %168 = tpu.matmul %165, %166, %cst_82 {dimension_numbers = #tpu.dot_dimension_numbers<[1], [1], [0], [0], [0, 0, 1, 0], [], []>} : vector<8x32xf32>, vector<8x32xf32>, vector<8x8xf32> -> vector<8x8xf32>
    %cst_83 = arith.constant 0.176776692 : f32
    %169 = vector.broadcast %cst_83 : f32 to vector<8x8xf32>
    %170 = arith.mulf %168, %169 : vector<8x8xf32>
    %cst_84 = arith.constant dense<0xFF800000> : vector<8xf32>
    %171 = vector.multi_reduction <maximumf>, %170, %cst_84 [1] : vector<8x8xf32> to vector<8xf32>
    %172 = vector.shape_cast %171 : vector<8xf32> to vector<8x1xf32>
    %173 = vector.broadcast %172 : vector<8x1xf32> to vector<8x8xf32>
    %174 = arith.subf %170, %173 : vector<8x8xf32>
    %175 = math.exp %174 : vector<8x8xf32>
    %cst_85 = arith.constant dense<0.000000e+00> : vector<8xf32>
    %176 = vector.multi_reduction <add>, %175, %cst_85 [1] : vector<8x8xf32> to vector<8xf32>
    %177 = vector.shape_cast %176 : vector<8xf32> to vector<8x1xf32>
    %178 = vector.broadcast %177 : vector<8x1xf32> to vector<8x8xf32>
    %179 = arith.divf %175, %178 : vector<8x8xf32>
    %cst_86 = arith.constant dense<0.000000e+00> : vector<8x32xf32>
    %180 = tpu.matmul %179, %167, %cst_86 {dimension_numbers = #tpu.dot_dimension_numbers<[1], [0], [0], [1], [0, 0, 1, 1], [], []>} : vector<8x8xf32>, vector<8x32xf32>, vector<8x32xf32> -> vector<8x32xf32>
    %c8_87 = arith.constant 8 : index
    %c96_88 = arith.constant 96 : index
    %181 = vector.load %arg13[%c8_87, %c96_88] : memref<16x128xf32, #tpu.memory_space<vmem>>, vector<8x32xf32>
    tpu.vector_store %arg13[%c8_87, %c96_88], %180 {strides = array<i32>} : memref<16x128xf32, #tpu.memory_space<vmem>>, vector<8x32xf32>,
    %c0_89 = arith.constant 0 : index
    %c0_90 = arith.constant 0 : index
    %182 = vector.load %arg13[%c0_89, %c0_90] : memref<16x128xf32, #tpu.memory_space<vmem>>, vector<16x128xf32>
    %183 = arith.truncf %182 : vector<16x128xf32> to vector<16x128xbf16>
    %cst_91 = arith.constant dense<0.000000e+00> : vector<16x128xf32>
    %184 = tpu.matmul %183, %43, %cst_91 {dimension_numbers = #tpu.dot_dimension_numbers<[1], [0], [0], [1], [0, 0, 1, 1], [], []>} : vector<16x128xbf16>, vector<128x128xbf16>, vector<16x128xf32> -> vector<16x128xf32>
    %185 = vector.broadcast %45 : vector<1x128xf32> to vector<16x128xf32>
    %186 = arith.addf %184, %185 : vector<16x128xf32>
    %187 = arith.addf %3, %186 : vector<16x128xf32>
    %cst_92 = arith.constant dense<0.000000e+00> : vector<16xf32>
    %188 = vector.multi_reduction <add>, %187, %cst_92 [1] : vector<16x128xf32> to vector<16xf32>
    %189 = vector.shape_cast %188 : vector<16xf32> to vector<16x1xf32>
    %cst_93 = arith.constant 1.280000e+02 : f32
    %190 = vector.broadcast %cst_93 : f32 to vector<16x1xf32>
    %191 = arith.divf %189, %190 : vector<16x1xf32>
    %192 = vector.broadcast %191 : vector<16x1xf32> to vector<16x128xf32>
    %193 = arith.subf %187, %192 : vector<16x128xf32>
    %194 = arith.mulf %193, %193 : vector<16x128xf32>
    %cst_94 = arith.constant dense<0.000000e+00> : vector<16xf32>
    %195 = vector.multi_reduction <add>, %194, %cst_94 [1] : vector<16x128xf32> to vector<16xf32>
    %196 = vector.shape_cast %195 : vector<16xf32> to vector<16x1xf32>
    %cst_95 = arith.constant 1.280000e+02 : f32
    %197 = vector.broadcast %cst_95 : f32 to vector<16x1xf32>
    %198 = arith.divf %196, %197 : vector<16x1xf32>
    %199 = vector.broadcast %191 : vector<16x1xf32> to vector<16x128xf32>
    %200 = arith.subf %187, %199 : vector<16x128xf32>
    %cst_96 = arith.constant 9.99999974E-6 : f32
    %201 = vector.broadcast %cst_96 : f32 to vector<16x1xf32>
    %202 = arith.addf %198, %201 : vector<16x1xf32>
    %203 = math.rsqrt %202 : vector<16x1xf32>
    %204 = vector.broadcast %203 : vector<16x1xf32> to vector<16x128xf32>
    %205 = arith.mulf %200, %204 : vector<16x128xf32>
    %206 = vector.broadcast %8 : vector<1x128xf32> to vector<16x128xf32>
    %207 = arith.mulf %205, %206 : vector<16x128xf32>
    %208 = vector.broadcast %10 : vector<1x128xf32> to vector<16x128xf32>
    %209 = arith.addf %207, %208 : vector<16x128xf32>
    %210 = arith.addf %209, %4 : vector<16x128xf32>
    %c0_97 = arith.constant 0 : index
    %c0_98 = arith.constant 0 : index
    %c512 = arith.constant 512 : index
    %211 = vector.load %arg5[%c0_97, %c0_98, %c512] : memref<1x128x1024xbf16, #tpu.memory_space<vmem>>, vector<1x128x128xbf16>
    %212 = vector.shape_cast %211 : vector<1x128x128xbf16> to vector<128x128xbf16>
    %213 = arith.truncf %210 : vector<16x128xf32> to vector<16x128xbf16>
    %cst_99 = arith.constant dense<0.000000e+00> : vector<16x128xf32>
    %214 = tpu.matmul %213, %212, %cst_99 {dimension_numbers = #tpu.dot_dimension_numbers<[1], [0], [0], [1], [0, 0, 1, 1], [], []>} : vector<16x128xbf16>, vector<128x128xbf16>, vector<16x128xf32> -> vector<16x128xf32>
    %c0_100 = arith.constant 0 : index
    %c4 = arith.constant 4 : index
    %c0_101 = arith.constant 0 : index
    %215 = vector.load %arg6[%c0_100, %c4, %c0_101] : memref<1x16x128xf32, #tpu.memory_space<vmem>>, vector<1x1x128xf32>
    %216 = vector.shape_cast %215 : vector<1x1x128xf32> to vector<1x128xf32>
    %217 = vector.broadcast %216 : vector<1x128xf32> to vector<16x128xf32>
    %218 = arith.addf %214, %217 : vector<16x128xf32>
    %c0_102 = arith.constant 0 : index
    %c0_103 = arith.constant 0 : index
    %c640 = arith.constant 640 : index
    %219 = vector.load %arg5[%c0_102, %c0_103, %c640] : memref<1x128x1024xbf16, #tpu.memory_space<vmem>>, vector<1x128x128xbf16>
    %220 = vector.shape_cast %219 : vector<1x128x128xbf16> to vector<128x128xbf16>
    %221 = arith.truncf %5 : vector<34x128xf32> to vector<34x128xbf16>
    %cst_104 = arith.constant dense<0.000000e+00> : vector<34x128xf32>
    %222 = tpu.matmul %221, %220, %cst_104 {dimension_numbers = #tpu.dot_dimension_numbers<[1], [0], [0], [1], [0, 0, 1, 1], [], []>} : vector<34x128xbf16>, vector<128x128xbf16>, vector<34x128xf32> -> vector<34x128xf32>
    %c0_105 = arith.constant 0 : index
    %c5 = arith.constant 5 : index
    %c0_106 = arith.constant 0 : index
    %223 = vector.load %arg6[%c0_105, %c5, %c0_106] : memref<1x16x128xf32, #tpu.memory_space<vmem>>, vector<1x1x128xf32>
    %224 = vector.shape_cast %223 : vector<1x1x128xf32> to vector<1x128xf32>
    %225 = vector.broadcast %224 : vector<1x128xf32> to vector<34x128xf32>
    %226 = arith.addf %222, %225 : vector<34x128xf32>
    %c0_107 = arith.constant 0 : index
    %c0_108 = arith.constant 0 : index
    %c768 = arith.constant 768 : index
    %227 = vector.load %arg5[%c0_107, %c0_108, %c768] : memref<1x128x1024xbf16, #tpu.memory_space<vmem>>, vector<1x128x128xbf16>
    %228 = vector.shape_cast %227 : vector<1x128x128xbf16> to vector<128x128xbf16>
    %229 = arith.truncf %6 : vector<34x128xf32> to vector<34x128xbf16>
    %cst_109 = arith.constant dense<0.000000e+00> : vector<34x128xf32>
    %230 = tpu.matmul %229, %228, %cst_109 {dimension_numbers = #tpu.dot_dimension_numbers<[1], [0], [0], [1], [0, 0, 1, 1], [], []>} : vector<34x128xbf16>, vector<128x128xbf16>, vector<34x128xf32> -> vector<34x128xf32>
    %c0_110 = arith.constant 0 : index
    %c6 = arith.constant 6 : index
    %c0_111 = arith.constant 0 : index
    %231 = vector.load %arg6[%c0_110, %c6, %c0_111] : memref<1x16x128xf32, #tpu.memory_space<vmem>>, vector<1x1x128xf32>
    %232 = vector.shape_cast %231 : vector<1x1x128xf32> to vector<1x128xf32>
    %233 = vector.broadcast %232 : vector<1x128xf32> to vector<34x128xf32>
    %234 = arith.addf %230, %233 : vector<34x128xf32>
    %c0_112 = arith.constant 0 : index
    %c0_113 = arith.constant 0 : index
    %c896 = arith.constant 896 : index
    %235 = vector.load %arg5[%c0_112, %c0_113, %c896] : memref<1x128x1024xbf16, #tpu.memory_space<vmem>>, vector<1x128x128xbf16>
    %236 = vector.shape_cast %235 : vector<1x128x128xbf16> to vector<128x128xbf16>
    %c0_114 = arith.constant 0 : index
    %c7 = arith.constant 7 : index
    %c0_115 = arith.constant 0 : index
    %237 = vector.load %arg6[%c0_114, %c7, %c0_115] : memref<1x16x128xf32, #tpu.memory_space<vmem>>, vector<1x1x128xf32>
    %238 = vector.shape_cast %237 : vector<1x1x128xf32> to vector<1x128xf32>
    %239 = vector.extract_strided_slice %218 {offsets = [0, 0], sizes = [8, 32], strides = [1, 1]} : vector<16x128xf32> to vector<8x32xf32>
    %240 = vector.extract_strided_slice %226 {offsets = [0, 0], sizes = [17, 32], strides = [1, 1]} : vector<34x128xf32> to vector<17x32xf32>
    %241 = vector.extract_strided_slice %234 {offsets = [0, 0], sizes = [17, 32], strides = [1, 1]} : vector<34x128xf32> to vector<17x32xf32>
    %cst_116 = arith.constant dense<0.000000e+00> : vector<8x17xf32>
    %242 = tpu.matmul %239, %240, %cst_116 {dimension_numbers = #tpu.dot_dimension_numbers<[1], [1], [0], [0], [0, 0, 1, 0], [], []>} : vector<8x32xf32>, vector<17x32xf32>, vector<8x17xf32> -> vector<8x17xf32>
    %cst_117 = arith.constant 0.176776692 : f32
    %243 = vector.broadcast %cst_117 : f32 to vector<8x17xf32>
    %244 = arith.mulf %242, %243 : vector<8x17xf32>
    %cst_118 = arith.constant dense<0xFF800000> : vector<8xf32>
    %245 = vector.multi_reduction <maximumf>, %244, %cst_118 [1] : vector<8x17xf32> to vector<8xf32>
    %246 = vector.shape_cast %245 : vector<8xf32> to vector<8x1xf32>
    %247 = vector.broadcast %246 : vector<8x1xf32> to vector<8x17xf32>
    %248 = arith.subf %244, %247 : vector<8x17xf32>
    %249 = math.exp %248 : vector<8x17xf32>
    %cst_119 = arith.constant dense<0.000000e+00> : vector<8xf32>
    %250 = vector.multi_reduction <add>, %249, %cst_119 [1] : vector<8x17xf32> to vector<8xf32>
    %251 = vector.shape_cast %250 : vector<8xf32> to vector<8x1xf32>
    %252 = vector.broadcast %251 : vector<8x1xf32> to vector<8x17xf32>
    %253 = arith.divf %249, %252 : vector<8x17xf32>
    %cst_120 = arith.constant dense<0.000000e+00> : vector<8x32xf32>
    %254 = tpu.matmul %253, %241, %cst_120 {dimension_numbers = #tpu.dot_dimension_numbers<[1], [0], [0], [1], [0, 0, 1, 1], [], []>} : vector<8x17xf32>, vector<17x32xf32>, vector<8x32xf32> -> vector<8x32xf32>
    %c0_121 = arith.constant 0 : index
    %c0_122 = arith.constant 0 : index
    %255 = vector.load %arg13[%c0_121, %c0_122] : memref<16x128xf32, #tpu.memory_space<vmem>>, vector<8x32xf32>
    tpu.vector_store %arg13[%c0_121, %c0_122], %254 {strides = array<i32>} : memref<16x128xf32, #tpu.memory_space<vmem>>, vector<8x32xf32>,
    %256 = vector.extract_strided_slice %218 {offsets = [0, 32], sizes = [8, 32], strides = [1, 1]} : vector<16x128xf32> to vector<8x32xf32>
    %257 = vector.extract_strided_slice %226 {offsets = [0, 32], sizes = [17, 32], strides = [1, 1]} : vector<34x128xf32> to vector<17x32xf32>
    %258 = vector.extract_strided_slice %234 {offsets = [0, 32], sizes = [17, 32], strides = [1, 1]} : vector<34x128xf32> to vector<17x32xf32>
    %cst_123 = arith.constant dense<0.000000e+00> : vector<8x17xf32>
    %259 = tpu.matmul %256, %257, %cst_123 {dimension_numbers = #tpu.dot_dimension_numbers<[1], [1], [0], [0], [0, 0, 1, 0], [], []>} : vector<8x32xf32>, vector<17x32xf32>, vector<8x17xf32> -> vector<8x17xf32>
    %cst_124 = arith.constant 0.176776692 : f32
    %260 = vector.broadcast %cst_124 : f32 to vector<8x17xf32>
    %261 = arith.mulf %259, %260 : vector<8x17xf32>
    %cst_125 = arith.constant dense<0xFF800000> : vector<8xf32>
    %262 = vector.multi_reduction <maximumf>, %261, %cst_125 [1] : vector<8x17xf32> to vector<8xf32>
    %263 = vector.shape_cast %262 : vector<8xf32> to vector<8x1xf32>
    %264 = vector.broadcast %263 : vector<8x1xf32> to vector<8x17xf32>
    %265 = arith.subf %261, %264 : vector<8x17xf32>
    %266 = math.exp %265 : vector<8x17xf32>
    %cst_126 = arith.constant dense<0.000000e+00> : vector<8xf32>
    %267 = vector.multi_reduction <add>, %266, %cst_126 [1] : vector<8x17xf32> to vector<8xf32>
    %268 = vector.shape_cast %267 : vector<8xf32> to vector<8x1xf32>
    %269 = vector.broadcast %268 : vector<8x1xf32> to vector<8x17xf32>
    %270 = arith.divf %266, %269 : vector<8x17xf32>
    %cst_127 = arith.constant dense<0.000000e+00> : vector<8x32xf32>
    %271 = tpu.matmul %270, %258, %cst_127 {dimension_numbers = #tpu.dot_dimension_numbers<[1], [0], [0], [1], [0, 0, 1, 1], [], []>} : vector<8x17xf32>, vector<17x32xf32>, vector<8x32xf32> -> vector<8x32xf32>
    %c0_128 = arith.constant 0 : index
    %c32_129 = arith.constant 32 : index
    %272 = vector.load %arg13[%c0_128, %c32_129] : memref<16x128xf32, #tpu.memory_space<vmem>>, vector<8x32xf32>
    tpu.vector_store %arg13[%c0_128, %c32_129], %271 {strides = array<i32>} : memref<16x128xf32, #tpu.memory_space<vmem>>, vector<8x32xf32>,
    %273 = vector.extract_strided_slice %218 {offsets = [0, 64], sizes = [8, 32], strides = [1, 1]} : vector<16x128xf32> to vector<8x32xf32>
    %274 = vector.extract_strided_slice %226 {offsets = [0, 64], sizes = [17, 32], strides = [1, 1]} : vector<34x128xf32> to vector<17x32xf32>
    %275 = vector.extract_strided_slice %234 {offsets = [0, 64], sizes = [17, 32], strides = [1, 1]} : vector<34x128xf32> to vector<17x32xf32>
    %cst_130 = arith.constant dense<0.000000e+00> : vector<8x17xf32>
    %276 = tpu.matmul %273, %274, %cst_130 {dimension_numbers = #tpu.dot_dimension_numbers<[1], [1], [0], [0], [0, 0, 1, 0], [], []>} : vector<8x32xf32>, vector<17x32xf32>, vector<8x17xf32> -> vector<8x17xf32>
    %cst_131 = arith.constant 0.176776692 : f32
    %277 = vector.broadcast %cst_131 : f32 to vector<8x17xf32>
    %278 = arith.mulf %276, %277 : vector<8x17xf32>
    %cst_132 = arith.constant dense<0xFF800000> : vector<8xf32>
    %279 = vector.multi_reduction <maximumf>, %278, %cst_132 [1] : vector<8x17xf32> to vector<8xf32>
    %280 = vector.shape_cast %279 : vector<8xf32> to vector<8x1xf32>
    %281 = vector.broadcast %280 : vector<8x1xf32> to vector<8x17xf32>
    %282 = arith.subf %278, %281 : vector<8x17xf32>
    %283 = math.exp %282 : vector<8x17xf32>
    %cst_133 = arith.constant dense<0.000000e+00> : vector<8xf32>
    %284 = vector.multi_reduction <add>, %283, %cst_133 [1] : vector<8x17xf32> to vector<8xf32>
    %285 = vector.shape_cast %284 : vector<8xf32> to vector<8x1xf32>
    %286 = vector.broadcast %285 : vector<8x1xf32> to vector<8x17xf32>
    %287 = arith.divf %283, %286 : vector<8x17xf32>
    %cst_134 = arith.constant dense<0.000000e+00> : vector<8x32xf32>
    %288 = tpu.matmul %287, %275, %cst_134 {dimension_numbers = #tpu.dot_dimension_numbers<[1], [0], [0], [1], [0, 0, 1, 1], [], []>} : vector<8x17xf32>, vector<17x32xf32>, vector<8x32xf32> -> vector<8x32xf32>
    %c0_135 = arith.constant 0 : index
    %c64_136 = arith.constant 64 : index
    %289 = vector.load %arg13[%c0_135, %c64_136] : memref<16x128xf32, #tpu.memory_space<vmem>>, vector<8x32xf32>
    tpu.vector_store %arg13[%c0_135, %c64_136], %288 {strides = array<i32>} : memref<16x128xf32, #tpu.memory_space<vmem>>, vector<8x32xf32>,
    %290 = vector.extract_strided_slice %218 {offsets = [0, 96], sizes = [8, 32], strides = [1, 1]} : vector<16x128xf32> to vector<8x32xf32>
    %291 = vector.extract_strided_slice %226 {offsets = [0, 96], sizes = [17, 32], strides = [1, 1]} : vector<34x128xf32> to vector<17x32xf32>
    %292 = vector.extract_strided_slice %234 {offsets = [0, 96], sizes = [17, 32], strides = [1, 1]} : vector<34x128xf32> to vector<17x32xf32>
    %cst_137 = arith.constant dense<0.000000e+00> : vector<8x17xf32>
    %293 = tpu.matmul %290, %291, %cst_137 {dimension_numbers = #tpu.dot_dimension_numbers<[1], [1], [0], [0], [0, 0, 1, 0], [], []>} : vector<8x32xf32>, vector<17x32xf32>, vector<8x17xf32> -> vector<8x17xf32>
    %cst_138 = arith.constant 0.176776692 : f32
    %294 = vector.broadcast %cst_138 : f32 to vector<8x17xf32>
    %295 = arith.mulf %293, %294 : vector<8x17xf32>
    %cst_139 = arith.constant dense<0xFF800000> : vector<8xf32>
    %296 = vector.multi_reduction <maximumf>, %295, %cst_139 [1] : vector<8x17xf32> to vector<8xf32>
    %297 = vector.shape_cast %296 : vector<8xf32> to vector<8x1xf32>
    %298 = vector.broadcast %297 : vector<8x1xf32> to vector<8x17xf32>
    %299 = arith.subf %295, %298 : vector<8x17xf32>
    %300 = math.exp %299 : vector<8x17xf32>
    %cst_140 = arith.constant dense<0.000000e+00> : vector<8xf32>
    %301 = vector.multi_reduction <add>, %300, %cst_140 [1] : vector<8x17xf32> to vector<8xf32>
    %302 = vector.shape_cast %301 : vector<8xf32> to vector<8x1xf32>
    %303 = vector.broadcast %302 : vector<8x1xf32> to vector<8x17xf32>
    %304 = arith.divf %300, %303 : vector<8x17xf32>
    %cst_141 = arith.constant dense<0.000000e+00> : vector<8x32xf32>
    %305 = tpu.matmul %304, %292, %cst_141 {dimension_numbers = #tpu.dot_dimension_numbers<[1], [0], [0], [1], [0, 0, 1, 1], [], []>} : vector<8x17xf32>, vector<17x32xf32>, vector<8x32xf32> -> vector<8x32xf32>
    %c0_142 = arith.constant 0 : index
    %c96_143 = arith.constant 96 : index
    %306 = vector.load %arg13[%c0_142, %c96_143] : memref<16x128xf32, #tpu.memory_space<vmem>>, vector<8x32xf32>
    tpu.vector_store %arg13[%c0_142, %c96_143], %305 {strides = array<i32>} : memref<16x128xf32, #tpu.memory_space<vmem>>, vector<8x32xf32>,
    %307 = vector.extract_strided_slice %218 {offsets = [8, 0], sizes = [8, 32], strides = [1, 1]} : vector<16x128xf32> to vector<8x32xf32>
    %308 = vector.extract_strided_slice %226 {offsets = [17, 0], sizes = [17, 32], strides = [1, 1]} : vector<34x128xf32> to vector<17x32xf32>
    %309 = vector.extract_strided_slice %234 {offsets = [17, 0], sizes = [17, 32], strides = [1, 1]} : vector<34x128xf32> to vector<17x32xf32>
    %cst_144 = arith.constant dense<0.000000e+00> : vector<8x17xf32>
    %310 = tpu.matmul %307, %308, %cst_144 {dimension_numbers = #tpu.dot_dimension_numbers<[1], [1], [0], [0], [0, 0, 1, 0], [], []>} : vector<8x32xf32>, vector<17x32xf32>, vector<8x17xf32> -> vector<8x17xf32>
    %cst_145 = arith.constant 0.176776692 : f32
    %311 = vector.broadcast %cst_145 : f32 to vector<8x17xf32>
    %312 = arith.mulf %310, %311 : vector<8x17xf32>
    %cst_146 = arith.constant dense<0xFF800000> : vector<8xf32>
    %313 = vector.multi_reduction <maximumf>, %312, %cst_146 [1] : vector<8x17xf32> to vector<8xf32>
    %314 = vector.shape_cast %313 : vector<8xf32> to vector<8x1xf32>
    %315 = vector.broadcast %314 : vector<8x1xf32> to vector<8x17xf32>
    %316 = arith.subf %312, %315 : vector<8x17xf32>
    %317 = math.exp %316 : vector<8x17xf32>
    %cst_147 = arith.constant dense<0.000000e+00> : vector<8xf32>
    %318 = vector.multi_reduction <add>, %317, %cst_147 [1] : vector<8x17xf32> to vector<8xf32>
    %319 = vector.shape_cast %318 : vector<8xf32> to vector<8x1xf32>
    %320 = vector.broadcast %319 : vector<8x1xf32> to vector<8x17xf32>
    %321 = arith.divf %317, %320 : vector<8x17xf32>
    %cst_148 = arith.constant dense<0.000000e+00> : vector<8x32xf32>
    %322 = tpu.matmul %321, %309, %cst_148 {dimension_numbers = #tpu.dot_dimension_numbers<[1], [0], [0], [1], [0, 0, 1, 1], [], []>} : vector<8x17xf32>, vector<17x32xf32>, vector<8x32xf32> -> vector<8x32xf32>
    %c8_149 = arith.constant 8 : index
    %c0_150 = arith.constant 0 : index
    %323 = vector.load %arg13[%c8_149, %c0_150] : memref<16x128xf32, #tpu.memory_space<vmem>>, vector<8x32xf32>
    tpu.vector_store %arg13[%c8_149, %c0_150], %322 {strides = array<i32>} : memref<16x128xf32, #tpu.memory_space<vmem>>, vector<8x32xf32>,
    %324 = vector.extract_strided_slice %218 {offsets = [8, 32], sizes = [8, 32], strides = [1, 1]} : vector<16x128xf32> to vector<8x32xf32>
    %325 = vector.extract_strided_slice %226 {offsets = [17, 32], sizes = [17, 32], strides = [1, 1]} : vector<34x128xf32> to vector<17x32xf32>
    %326 = vector.extract_strided_slice %234 {offsets = [17, 32], sizes = [17, 32], strides = [1, 1]} : vector<34x128xf32> to vector<17x32xf32>
    %cst_151 = arith.constant dense<0.000000e+00> : vector<8x17xf32>
    %327 = tpu.matmul %324, %325, %cst_151 {dimension_numbers = #tpu.dot_dimension_numbers<[1], [1], [0], [0], [0, 0, 1, 0], [], []>} : vector<8x32xf32>, vector<17x32xf32>, vector<8x17xf32> -> vector<8x17xf32>
    %cst_152 = arith.constant 0.176776692 : f32
    %328 = vector.broadcast %cst_152 : f32 to vector<8x17xf32>
    %329 = arith.mulf %327, %328 : vector<8x17xf32>
    %cst_153 = arith.constant dense<0xFF800000> : vector<8xf32>
    %330 = vector.multi_reduction <maximumf>, %329, %cst_153 [1] : vector<8x17xf32> to vector<8xf32>
    %331 = vector.shape_cast %330 : vector<8xf32> to vector<8x1xf32>
    %332 = vector.broadcast %331 : vector<8x1xf32> to vector<8x17xf32>
    %333 = arith.subf %329, %332 : vector<8x17xf32>
    %334 = math.exp %333 : vector<8x17xf32>
    %cst_154 = arith.constant dense<0.000000e+00> : vector<8xf32>
    %335 = vector.multi_reduction <add>, %334, %cst_154 [1] : vector<8x17xf32> to vector<8xf32>
    %336 = vector.shape_cast %335 : vector<8xf32> to vector<8x1xf32>
    %337 = vector.broadcast %336 : vector<8x1xf32> to vector<8x17xf32>
    %338 = arith.divf %334, %337 : vector<8x17xf32>
    %cst_155 = arith.constant dense<0.000000e+00> : vector<8x32xf32>
    %339 = tpu.matmul %338, %326, %cst_155 {dimension_numbers = #tpu.dot_dimension_numbers<[1], [0], [0], [1], [0, 0, 1, 1], [], []>} : vector<8x17xf32>, vector<17x32xf32>, vector<8x32xf32> -> vector<8x32xf32>
    %c8_156 = arith.constant 8 : index
    %c32_157 = arith.constant 32 : index
    %340 = vector.load %arg13[%c8_156, %c32_157] : memref<16x128xf32, #tpu.memory_space<vmem>>, vector<8x32xf32>
    tpu.vector_store %arg13[%c8_156, %c32_157], %339 {strides = array<i32>} : memref<16x128xf32, #tpu.memory_space<vmem>>, vector<8x32xf32>,
    %341 = vector.extract_strided_slice %218 {offsets = [8, 64], sizes = [8, 32], strides = [1, 1]} : vector<16x128xf32> to vector<8x32xf32>
    %342 = vector.extract_strided_slice %226 {offsets = [17, 64], sizes = [17, 32], strides = [1, 1]} : vector<34x128xf32> to vector<17x32xf32>
    %343 = vector.extract_strided_slice %234 {offsets = [17, 64], sizes = [17, 32], strides = [1, 1]} : vector<34x128xf32> to vector<17x32xf32>
    %cst_158 = arith.constant dense<0.000000e+00> : vector<8x17xf32>
    %344 = tpu.matmul %341, %342, %cst_158 {dimension_numbers = #tpu.dot_dimension_numbers<[1], [1], [0], [0], [0, 0, 1, 0], [], []>} : vector<8x32xf32>, vector<17x32xf32>, vector<8x17xf32> -> vector<8x17xf32>
    %cst_159 = arith.constant 0.176776692 : f32
    %345 = vector.broadcast %cst_159 : f32 to vector<8x17xf32>
    %346 = arith.mulf %344, %345 : vector<8x17xf32>
    %cst_160 = arith.constant dense<0xFF800000> : vector<8xf32>
    %347 = vector.multi_reduction <maximumf>, %346, %cst_160 [1] : vector<8x17xf32> to vector<8xf32>
    %348 = vector.shape_cast %347 : vector<8xf32> to vector<8x1xf32>
    %349 = vector.broadcast %348 : vector<8x1xf32> to vector<8x17xf32>
    %350 = arith.subf %346, %349 : vector<8x17xf32>
    %351 = math.exp %350 : vector<8x17xf32>
    %cst_161 = arith.constant dense<0.000000e+00> : vector<8xf32>
    %352 = vector.multi_reduction <add>, %351, %cst_161 [1] : vector<8x17xf32> to vector<8xf32>
    %353 = vector.shape_cast %352 : vector<8xf32> to vector<8x1xf32>
    %354 = vector.broadcast %353 : vector<8x1xf32> to vector<8x17xf32>
    %355 = arith.divf %351, %354 : vector<8x17xf32>
    %cst_162 = arith.constant dense<0.000000e+00> : vector<8x32xf32>
    %356 = tpu.matmul %355, %343, %cst_162 {dimension_numbers = #tpu.dot_dimension_numbers<[1], [0], [0], [1], [0, 0, 1, 1], [], []>} : vector<8x17xf32>, vector<17x32xf32>, vector<8x32xf32> -> vector<8x32xf32>
    %c8_163 = arith.constant 8 : index
    %c64_164 = arith.constant 64 : index
    %357 = vector.load %arg13[%c8_163, %c64_164] : memref<16x128xf32, #tpu.memory_space<vmem>>, vector<8x32xf32>
    tpu.vector_store %arg13[%c8_163, %c64_164], %356 {strides = array<i32>} : memref<16x128xf32, #tpu.memory_space<vmem>>, vector<8x32xf32>,
    %358 = vector.extract_strided_slice %218 {offsets = [8, 96], sizes = [8, 32], strides = [1, 1]} : vector<16x128xf32> to vector<8x32xf32>
    %359 = vector.extract_strided_slice %226 {offsets = [17, 96], sizes = [17, 32], strides = [1, 1]} : vector<34x128xf32> to vector<17x32xf32>
    %360 = vector.extract_strided_slice %234 {offsets = [17, 96], sizes = [17, 32], strides = [1, 1]} : vector<34x128xf32> to vector<17x32xf32>
    %cst_165 = arith.constant dense<0.000000e+00> : vector<8x17xf32>
    %361 = tpu.matmul %358, %359, %cst_165 {dimension_numbers = #tpu.dot_dimension_numbers<[1], [1], [0], [0], [0, 0, 1, 0], [], []>} : vector<8x32xf32>, vector<17x32xf32>, vector<8x17xf32> -> vector<8x17xf32>
    %cst_166 = arith.constant 0.176776692 : f32
    %362 = vector.broadcast %cst_166 : f32 to vector<8x17xf32>
    %363 = arith.mulf %361, %362 : vector<8x17xf32>
    %cst_167 = arith.constant dense<0xFF800000> : vector<8xf32>
    %364 = vector.multi_reduction <maximumf>, %363, %cst_167 [1] : vector<8x17xf32> to vector<8xf32>
    %365 = vector.shape_cast %364 : vector<8xf32> to vector<8x1xf32>
    %366 = vector.broadcast %365 : vector<8x1xf32> to vector<8x17xf32>
    %367 = arith.subf %363, %366 : vector<8x17xf32>
    %368 = math.exp %367 : vector<8x17xf32>
    %cst_168 = arith.constant dense<0.000000e+00> : vector<8xf32>
    %369 = vector.multi_reduction <add>, %368, %cst_168 [1] : vector<8x17xf32> to vector<8xf32>
    %370 = vector.shape_cast %369 : vector<8xf32> to vector<8x1xf32>
    %371 = vector.broadcast %370 : vector<8x1xf32> to vector<8x17xf32>
    %372 = arith.divf %368, %371 : vector<8x17xf32>
    %cst_169 = arith.constant dense<0.000000e+00> : vector<8x32xf32>
    %373 = tpu.matmul %372, %360, %cst_169 {dimension_numbers = #tpu.dot_dimension_numbers<[1], [0], [0], [1], [0, 0, 1, 1], [], []>} : vector<8x17xf32>, vector<17x32xf32>, vector<8x32xf32> -> vector<8x32xf32>
    %c8_170 = arith.constant 8 : index
    %c96_171 = arith.constant 96 : index
    %374 = vector.load %arg13[%c8_170, %c96_171] : memref<16x128xf32, #tpu.memory_space<vmem>>, vector<8x32xf32>
    tpu.vector_store %arg13[%c8_170, %c96_171], %373 {strides = array<i32>} : memref<16x128xf32, #tpu.memory_space<vmem>>, vector<8x32xf32>,
    %c0_172 = arith.constant 0 : index
    %c0_173 = arith.constant 0 : index
    %375 = vector.load %arg13[%c0_172, %c0_173] : memref<16x128xf32, #tpu.memory_space<vmem>>, vector<16x128xf32>
    %376 = arith.truncf %375 : vector<16x128xf32> to vector<16x128xbf16>
    %cst_174 = arith.constant dense<0.000000e+00> : vector<16x128xf32>
    %377 = tpu.matmul %376, %236, %cst_174 {dimension_numbers = #tpu.dot_dimension_numbers<[1], [0], [0], [1], [0, 0, 1, 1], [], []>} : vector<16x128xbf16>, vector<128x128xbf16>, vector<16x128xf32> -> vector<16x128xf32>
    %378 = vector.broadcast %238 : vector<1x128xf32> to vector<16x128xf32>
    %379 = arith.addf %377, %378 : vector<16x128xf32>
    %380 = arith.addf %209, %379 : vector<16x128xf32>
    %cst_175 = arith.constant dense<0.000000e+00> : vector<16xf32>
    %381 = vector.multi_reduction <add>, %380, %cst_175 [1] : vector<16x128xf32> to vector<16xf32>
    %382 = vector.shape_cast %381 : vector<16xf32> to vector<16x1xf32>
    %cst_176 = arith.constant 1.280000e+02 : f32
    %383 = vector.broadcast %cst_176 : f32 to vector<16x1xf32>
    %384 = arith.divf %382, %383 : vector<16x1xf32>
    %385 = vector.broadcast %384 : vector<16x1xf32> to vector<16x128xf32>
    %386 = arith.subf %380, %385 : vector<16x128xf32>
    %387 = arith.mulf %386, %386 : vector<16x128xf32>
    %cst_177 = arith.constant dense<0.000000e+00> : vector<16xf32>
    %388 = vector.multi_reduction <add>, %387, %cst_177 [1] : vector<16x128xf32> to vector<16xf32>
    %389 = vector.shape_cast %388 : vector<16xf32> to vector<16x1xf32>
    %cst_178 = arith.constant 1.280000e+02 : f32
    %390 = vector.broadcast %cst_178 : f32 to vector<16x1xf32>
    %391 = arith.divf %389, %390 : vector<16x1xf32>
    %392 = vector.broadcast %384 : vector<16x1xf32> to vector<16x128xf32>
    %393 = arith.subf %380, %392 : vector<16x128xf32>
    %cst_179 = arith.constant 9.99999974E-6 : f32
    %394 = vector.broadcast %cst_179 : f32 to vector<16x1xf32>
    %395 = arith.addf %391, %394 : vector<16x1xf32>
    %396 = math.rsqrt %395 : vector<16x1xf32>
    %397 = vector.broadcast %396 : vector<16x1xf32> to vector<16x128xf32>
    %398 = arith.mulf %393, %397 : vector<16x128xf32>
    %399 = vector.broadcast %12 : vector<1x128xf32> to vector<16x128xf32>
    %400 = arith.mulf %398, %399 : vector<16x128xf32>
    %401 = vector.broadcast %14 : vector<1x128xf32> to vector<16x128xf32>
    %402 = arith.addf %400, %401 : vector<16x128xf32>
    %c0_180 = arith.constant 0 : index
    %c0_181 = arith.constant 0 : index
    %c0_182 = arith.constant 0 : index
    %403 = vector.load %arg7[%c0_180, %c0_181, %c0_182] : memref<1x128x256xbf16, #tpu.memory_space<vmem>>, vector<1x128x256xbf16>
    %404 = vector.shape_cast %403 : vector<1x128x256xbf16> to vector<128x256xbf16>
    %405 = arith.truncf %402 : vector<16x128xf32> to vector<16x128xbf16>
    %cst_183 = arith.constant dense<0.000000e+00> : vector<16x256xf32>
    %406 = tpu.matmul %405, %404, %cst_183 {dimension_numbers = #tpu.dot_dimension_numbers<[1], [0], [0], [1], [0, 0, 1, 1], [], []>} : vector<16x128xbf16>, vector<128x256xbf16>, vector<16x256xf32> -> vector<16x256xf32>
    %c0_184 = arith.constant 0 : index
    %c0_185 = arith.constant 0 : index
    %c0_186 = arith.constant 0 : index
    %407 = vector.load %arg8[%c0_184, %c0_185, %c0_186] : memref<1x1x256xf32, #tpu.memory_space<vmem>>, vector<1x1x256xf32>
    %408 = vector.shape_cast %407 : vector<1x1x256xf32> to vector<1x256xf32>
    %409 = vector.broadcast %408 : vector<1x256xf32> to vector<16x256xf32>
    %410 = arith.addf %406, %409 : vector<16x256xf32>
    %cst_187 = arith.constant 0.000000e+00 : f32
    %411 = vector.broadcast %cst_187 : f32 to vector<16x256xf32>
    %412 = arith.maximumf %410, %411 : vector<16x256xf32>
    %c0_188 = arith.constant 0 : index
    %c0_189 = arith.constant 0 : index
    %c0_190 = arith.constant 0 : index
    %413 = vector.load %arg9[%c0_188, %c0_189, %c0_190] : memref<1x256x128xbf16, #tpu.memory_space<vmem>>, vector<1x256x128xbf16>
    %414 = vector.shape_cast %413 : vector<1x256x128xbf16> to vector<256x128xbf16>
    %415 = arith.truncf %412 : vector<16x256xf32> to vector<16x256xbf16>
    %cst_191 = arith.constant dense<0.000000e+00> : vector<16x128xf32>
    %416 = tpu.matmul %415, %414, %cst_191 {dimension_numbers = #tpu.dot_dimension_numbers<[1], [0], [0], [1], [0, 0, 1, 1], [], []>} : vector<16x256xbf16>, vector<256x128xbf16>, vector<16x128xf32> -> vector<16x128xf32>
    %c0_192 = arith.constant 0 : index
    %c8_193 = arith.constant 8 : index
    %c0_194 = arith.constant 0 : index
    %417 = vector.load %arg6[%c0_192, %c8_193, %c0_194] : memref<1x16x128xf32, #tpu.memory_space<vmem>>, vector<1x1x128xf32>
    %418 = vector.shape_cast %417 : vector<1x1x128xf32> to vector<1x128xf32>
    %419 = vector.broadcast %418 : vector<1x128xf32> to vector<16x128xf32>
    %420 = arith.addf %416, %419 : vector<16x128xf32>
    %421 = arith.addf %402, %420 : vector<16x128xf32>
    %cst_195 = arith.constant dense<0.000000e+00> : vector<16xf32>
    %422 = vector.multi_reduction <add>, %421, %cst_195 [1] : vector<16x128xf32> to vector<16xf32>
    %423 = vector.shape_cast %422 : vector<16xf32> to vector<16x1xf32>
    %cst_196 = arith.constant 1.280000e+02 : f32
    %424 = vector.broadcast %cst_196 : f32 to vector<16x1xf32>
    %425 = arith.divf %423, %424 : vector<16x1xf32>
    %426 = vector.broadcast %425 : vector<16x1xf32> to vector<16x128xf32>
    %427 = arith.subf %421, %426 : vector<16x128xf32>
    %428 = arith.mulf %427, %427 : vector<16x128xf32>
    %cst_197 = arith.constant dense<0.000000e+00> : vector<16xf32>
    %429 = vector.multi_reduction <add>, %428, %cst_197 [1] : vector<16x128xf32> to vector<16xf32>
    %430 = vector.shape_cast %429 : vector<16xf32> to vector<16x1xf32>
    %cst_198 = arith.constant 1.280000e+02 : f32
    %431 = vector.broadcast %cst_198 : f32 to vector<16x1xf32>
    %432 = arith.divf %430, %431 : vector<16x1xf32>
    %433 = vector.broadcast %425 : vector<16x1xf32> to vector<16x128xf32>
    %434 = arith.subf %421, %433 : vector<16x128xf32>
    %cst_199 = arith.constant 9.99999974E-6 : f32
    %435 = vector.broadcast %cst_199 : f32 to vector<16x1xf32>
    %436 = arith.addf %432, %435 : vector<16x1xf32>
    %437 = math.rsqrt %436 : vector<16x1xf32>
    %438 = vector.broadcast %437 : vector<16x1xf32> to vector<16x128xf32>
    %439 = arith.mulf %434, %438 : vector<16x128xf32>
    %440 = vector.broadcast %16 : vector<1x128xf32> to vector<16x128xf32>
    %441 = arith.mulf %439, %440 : vector<16x128xf32>
    %442 = vector.broadcast %18 : vector<1x128xf32> to vector<16x128xf32>
    %443 = arith.addf %441, %442 : vector<16x128xf32>
    %c0_200 = arith.constant 0 : index
    %c0_201 = arith.constant 0 : index
    %444 = vector.load %arg12[%c0_200, %c0_201] : memref<16x128xf32, #tpu.memory_space<vmem>>, vector<16x128xf32>
    tpu.vector_store %arg12[%c0_200, %c0_201], %443 {strides = array<i32>} : memref<16x128xf32, #tpu.memory_space<vmem>>, vector<16x128xf32>,
    %c1_i32 = arith.constant 1 : i32
    %445 = arith.cmpi eq, %arg0, %c1_i32 : i32
    %446 = arith.extui %445 : i1 to i32
    %c0_i32_202 = arith.constant 0 : i32
    %447 = arith.cmpi ne, %446, %c0_i32_202 : i32
    scf.if %447 {
      %c0_203 = arith.constant 0 : index
      %c0_204 = arith.constant 0 : index
      %448 = vector.load %arg10[%c0_203, %c0_204] : memref<2x128xf32, #tpu.memory_space<vmem>>, vector<1x128xf32>
      %c1_205 = arith.constant 1 : index
      %c0_206 = arith.constant 0 : index
      %449 = vector.load %arg10[%c1_205, %c0_206] : memref<2x128xf32, #tpu.memory_space<vmem>>, vector<1x128xf32>
      %cst_207 = arith.constant dense<0.000000e+00> : vector<16xf32>
      %450 = vector.multi_reduction <add>, %443, %cst_207 [1] : vector<16x128xf32> to vector<16xf32>
      %451 = vector.shape_cast %450 : vector<16xf32> to vector<16x1xf32>
      %cst_208 = arith.constant 1.280000e+02 : f32
      %452 = vector.broadcast %cst_208 : f32 to vector<16x1xf32>
      %453 = arith.divf %451, %452 : vector<16x1xf32>
      %454 = vector.broadcast %453 : vector<16x1xf32> to vector<16x128xf32>
      %455 = arith.subf %443, %454 : vector<16x128xf32>
      %456 = arith.mulf %455, %455 : vector<16x128xf32>
      %cst_209 = arith.constant dense<0.000000e+00> : vector<16xf32>
      %457 = vector.multi_reduction <add>, %456, %cst_209 [1] : vector<16x128xf32> to vector<16xf32>
      %458 = vector.shape_cast %457 : vector<16xf32> to vector<16x1xf32>
      %cst_210 = arith.constant 1.280000e+02 : f32
      %459 = vector.broadcast %cst_210 : f32 to vector<16x1xf32>
      %460 = arith.divf %458, %459 : vector<16x1xf32>
      %461 = vector.broadcast %453 : vector<16x1xf32> to vector<16x128xf32>
      %462 = arith.subf %443, %461 : vector<16x128xf32>
      %cst_211 = arith.constant 9.99999974E-6 : f32
      %463 = vector.broadcast %cst_211 : f32 to vector<16x1xf32>
      %464 = arith.addf %460, %463 : vector<16x1xf32>
      %465 = math.rsqrt %464 : vector<16x1xf32>
      %466 = vector.broadcast %465 : vector<16x1xf32> to vector<16x128xf32>
      %467 = arith.mulf %462, %466 : vector<16x128xf32>
      %468 = vector.broadcast %448 : vector<1x128xf32> to vector<16x128xf32>
      %469 = arith.mulf %467, %468 : vector<16x128xf32>
      %470 = vector.broadcast %449 : vector<1x128xf32> to vector<16x128xf32>
      %471 = arith.addf %469, %470 : vector<16x128xf32>
      %c0_212 = arith.constant 0 : index
      %c0_213 = arith.constant 0 : index
      %472 = vector.load %arg11[%c0_212, %c0_213] : memref<16x128xf32, #tpu.memory_space<vmem>>, vector<16x128xf32>
      tpu.vector_store %arg11[%c0_212, %c0_213], %471 {strides = array<i32>} : memref<16x128xf32, #tpu.memory_space<vmem>>, vector<16x128xf32>,
    } else {
    }
    return
  }
  func.func @transform_0(%arg0: i32) -> (i32, i32) {
    %c0_i32 = arith.constant 0 : i32
    %c0_i32_0 = arith.constant 0 : i32
    %c0_i32_1 = arith.constant 0 : i32
    return %c0_i32, %c0_i32_0 : i32, i32
  }
  func.func @transform_1(%arg0: i32) -> (i32, i32) {
    %c0_i32 = arith.constant 0 : i32
    %c0_i32_0 = arith.constant 0 : i32
    %c0_i32_1 = arith.constant 0 : i32
    return %c0_i32, %c0_i32_0 : i32, i32
  }
  func.func @transform_2(%arg0: i32) -> (i32, i32) {
    %c0_i32 = arith.constant 0 : i32
    %c0_i32_0 = arith.constant 0 : i32
    %c0_i32_1 = arith.constant 0 : i32
    return %c0_i32, %c0_i32_0 : i32, i32
  }
  func.func @transform_3(%arg0: i32) -> (i32, i32) {
    %c0_i32 = arith.constant 0 : i32
    %c0_i32_0 = arith.constant 0 : i32
    %c0_i32_1 = arith.constant 0 : i32
    return %c0_i32, %c0_i32_0 : i32, i32
  }
  func.func @transform_4(%arg0: i32) -> (i32, i32, i32) {
    %c0_i32 = arith.constant 0 : i32
    %c0_i32_0 = arith.constant 0 : i32
    %c0_i32_1 = arith.constant 0 : i32
    return %arg0, %c0_i32, %c0_i32_0 : i32, i32, i32
  }
  func.func @transform_5(%arg0: i32) -> (i32, i32, i32) {
    %c0_i32 = arith.constant 0 : i32
    %c0_i32_0 = arith.constant 0 : i32
    %c0_i32_1 = arith.constant 0 : i32
    return %arg0, %c0_i32, %c0_i32_0 : i32, i32, i32
  }
  func.func @transform_6(%arg0: i32) -> (i32, i32, i32) {
    %c0_i32 = arith.constant 0 : i32
    %c0_i32_0 = arith.constant 0 : i32
    %c0_i32_1 = arith.constant 0 : i32
    return %arg0, %c0_i32, %c0_i32_0 : i32, i32, i32
  }
  func.func @transform_7(%arg0: i32) -> (i32, i32, i32) {
    %c0_i32 = arith.constant 0 : i32
    %c0_i32_0 = arith.constant 0 : i32
    %c0_i32_1 = arith.constant 0 : i32
    return %arg0, %c0_i32, %c0_i32_0 : i32, i32, i32
  }
  func.func @transform_8(%arg0: i32) -> (i32, i32, i32) {
    %c0_i32 = arith.constant 0 : i32
    %c0_i32_0 = arith.constant 0 : i32
    %c0_i32_1 = arith.constant 0 : i32
    return %arg0, %c0_i32, %c0_i32_0 : i32, i32, i32
  }
  func.func @transform_9(%arg0: i32) -> (i32, i32) {
    %c0_i32 = arith.constant 0 : i32
    %c0_i32_0 = arith.constant 0 : i32
    %c0_i32_1 = arith.constant 0 : i32
    return %c0_i32, %c0_i32_0 : i32, i32
  }
  func.func @transform_10(%arg0: i32) -> (i32, i32) {
    %c0_i32 = arith.constant 0 : i32
    %c0_i32_0 = arith.constant 0 : i32
    %c0_i32_1 = arith.constant 0 : i32
    return %c0_i32, %c0_i32_0 : i32, i32
  }
}

</mosaic_0001>

<bundles_post_ra>
// kernel: tpu_custom_call.1
= control target key start
LH: loop header
LB: loop body
LE: loop exit
PB: predicated region body
PF: predicated region fallthrough
CT: control target
= control target key end

     0   :  { %s7493_s0 = inlined_call_operand.hbm [shape: f32[16,128], index: 0, kind: input, shape index: {}]   ;;  %s7494_s1 = inlined_call_operand.hbm [shape: f32[16,128], index: 1, kind: input, shape index: {}]   ;;  %s7495_s2 = inlined_call_operand.hbm [shape: f32[34,128], index: 2, kind: input, shape index: {}]   ;;  %s7496_s3 = inlined_call_operand.hbm [shape: f32[34,128], index: 3, kind: input, shape index: {}]   ;;  %s7497_s4 = inlined_call_operand.hbm [shape: bf16[2,128,1024], index: 4, kind: input, shape index: {}]   ;;  %s7498_s5 = inlined_call_operand.hbm [shape: f32[2,16,128], index: 5, kind: input, shape index: {}]   ;;  %s7499_s6 = inlined_call_operand.hbm [shape: bf16[2,128,256], index: 6, kind: input, shape index: {}]   ;;  %s7500_s7 = inlined_call_operand.vmem [shape: f32[2,1,256], index: 7, kind: input, shape index: {}]   ;;  %s7501_s8 = inlined_call_operand.hbm [shape: bf16[2,256,128], index: 8, kind: input, shape index: {}]   ;;  %s7502_s9 = inlined_call_operand.vmem [shape: f32[2,128], index: 9, kind: input, shape index: {}]   ;;  %s7503_s10 = inlined_call_operand.hbm [shape: f32[16,128], index: 10, kind: output, shape index: {}]  }
   0x1   :  { %7526 = sst [smem:[#allocation25_spill]] %s7493_s0 }
   0x2   :  { %7527 = sst [smem:[#allocation26_spill]] %s7494_s1 }
   0x3   :  { %7528 = sst [smem:[#allocation27_spill]] %s7497_s4 }
   0x4   :  { %7529 = sst [smem:[#allocation28_spill]] %s7500_s7 }
   0x5   :  { %7530 = sst [smem:[#allocation29_spill]] %s7502_s9 }
   0x6   :  { %7531 = sst [smem:[#allocation30_spill]] %s7503_s10 }
   0x7   :  { %15 = vsyncpa [#allocation5], 0 }
   0x8   :  { %16 = vsyncpa [#allocation8], 0 }
   0x9   :  { %17 = vsyncpa [#allocation11], 0 }
   0xa   :  { %18 = vsyncpa [#allocation6], 0  ;;  %s6431_s13 = smov 0   ;;  %s6433_s14 = smov 0  }
   0xb   :  { %s6435_s15 = smov 0   ;;  %s6437_s16 = smov 0  }
   0xc LB: > { %7532 = sst [smem:[#allocation22_spill]] %s6346_s15  ;;  %s6450_s17 = sadd.s32 4294967295, %s6350_s16   ;;  %s6350_s16 = sphi %s6437_s16, %s7568_s16   ;;  %s6346_s15 = sphi %s6435_s15, %s7570_s15   ;;  %s6342_s14 = sphi %s6433_s14, %s7572_s14   ;;  %s6338_s13 = sphi %s6431_s13, %s7571_s13  }
   0xd   : > { %p128_p0 = scmp.ne.s32.totalorder %s6342_s14, %s6338_s13  ;;  %p7504_p1 = scmp.eq.s32.totalorder %s6450_s17, 0 }
   0xe   : > { %p4928_p2 = scmp.ge.s32.totalorder %s6350_s16, 1  ;;  %p285_p3 = scmp.lt.s32.totalorder %s6350_s16, 3 }
   0xf   : > { %p6459_p5 = por %p7504_p1, %p128_p0  ;;  %s6352_s20 = smov [#allocation4]  }
  0x10   : > { %p6463_p6 = pnand %p4928_p2, %p285_p3  ;;  %s297_s21 = sshll.u32 %s6352_s20, 4  ;;  %s298_s21 = int_to_ptr.vmem [resolvable:$true] %s297_s21 }
  0x11   : > { %s7533_s18 = scalar_select %p6459_p5, 1, 0 }
  0x12   : > { %s7534_s19 = scalar_select %p6463_p6, 1, 0 }
  0x13   : > { %p5771_p7 = pneg %p6463_p6  ;;  %s6476_s23 = sadd.s32 1, %s6350_s16  }
  0x14   : > { %7536 = sst [smem:[#allocation23_spill]] %s6476_s23  ;;  %s115_s24 = sadd.s32 1, %s6346_s15 }
  0x15   : > { %p6471_p8 = pnand %p5771_p7, %p7504_p1  ;;  %s112_s25 = ssub.s32 %s6350_s16, %s6476_s23 }
  0x16   : > { %s7537_s0 = sld [smem:[#allocation25_spill]] }
  0x17   : > { %s7535_s22 = scalar_select %p6471_p8, 1, 0 }
  0x18   : > { %p6489_p10 = pneg %p6471_p8 }
  0x1a   : > { %s7538_s11 = scalar_select %p6489_p10, 1, 0 }
  0x1c   : > { %s6042_s28 = scalar_lea.hbm %s7537_s0, 256 }
  0x1d   : > { %p6043_p9 = scmp.ne.s32.totalorder %s7537_s0, %s6042_s28  ;;  %p6049_p13 = scmp.lt.u32.totalorder %s6042_s28, %s7537_s0 }
  0x1f   : > { %p6045_p11 = pnand %p6489_p10, %p6043_p9 }
  0x21   : > { %p6046_p12 = pneg %p6045_p11 }
  0x23   : > { %p6051_p0 = pnand %p6049_p13, %p6046_p12 }
  0x25   : > { %6054 = shalt.err (!%p6051_p0)
}
  0x26   : > { %s6055_s20 = scalar_lea.vmem %s298_s21, 256  ;;  %p6063_p4 = scmp.lt.s32.totalorder %s298_s21, %s298_s21 }
  0x27   : > { %p6056_p2 = scmp.ne.s32.totalorder %s298_s21, %s6055_s20  ;;  %p6064_p1 = scmp.lt.s32.totalorder %s6055_s20, %s6055_s20 }
  0x29   : > { %p6058_p3 = pnand %p6056_p2, %p6489_p10  ;;  %p6065_p5 = por %p6064_p1, %p6063_p4 }
  0x2b   : > { %p6059_p7 = pneg %p6058_p3 }
  0x2d   : > { %p6066_p6 = pnand %p6065_p5, %p6059_p7 }
  0x2f   : > { %6069 = shalt.err (!%p6066_p6)
}
  0x30   : > { %s7511_s26 = smov 128   ;;  %s7517_s27 = smov 8  }
  0x31   : > { %5774 = dma.hbm_to_vmem [thread:$0]  (!%p6471_p8), %s7537_s0, 256, %s298_s21, [#allocation5], %s7511_s26, %s7511_s26, %s7517_s27  }
  0x32   : > { %p113_p1 = scmp.eq.s32.totalorder %s112_s25, 0  ;;  %p122_p4 = scmp.ne.s32.totalorder %s6346_s15, %s6342_s14 }
  0x33   : > { %p123_p5 = scmp.eq.s32.totalorder %s6350_s16, 0  ;;  %p5801_p6 = scmp.lt.s32.totalorder %s6350_s16, 2 }
  0x34   : > { %s6513_s30 = scalar_select %p113_p1, %s6346_s15, %s115_s24  }
  0x35   : > { %p124_p9 = por %p123_p5, %p122_p4  ;;  %s353_s12 = sand.u32 1, %s6350_s16  }
  0x36   : > { %7539 = sst [smem:[#allocation24_spill]] %s6513_s30  ;;  %s6517_s13 = sand.u32 1, %s6346_s15  }
  0x37   : > { %s4934_s20 = sshll.u32 %s6517_s13, 9  ;;  %s5147_s23 = sshll.u32 %s6350_s16, 13 }
  0x38   : > { %s7540_s4 = sld [smem:[#allocation27_spill]]  ;;  %s357_s21 = scalar_lea.vmem [#allocation12], %s4934_s20 }
  0x39   : > { %s364_s25 = sshll.u32 %s357_s21, 4  ;;  %p6526_p11 = pnand %p5801_p6, %p124_p9  ;;  %s6530_s25 = int_to_ptr.vmem [resolvable:$true] %s364_s25 }
  0x3a   : > { %s6532_s28 = scalar_lea.sflag [#allocation5], %s353_s12 }
  0x3b   : > { %s7541_s24 = scalar_select %p6526_p11, 1, 0 }
  0x3c   : > { %p6538_p13 = pneg %p6526_p11 }
  0x3e   : > { %s6524_s7 = scalar_lea.hbm %s7540_s4, %s5147_s23  ;;  %s6075_s20 = scalar_lea.hbm %s7540_s4, 16384 }
  0x3f   : > { %s6070_s29 = scalar_lea.hbm %s6524_s7, 8192  ;;  %p6076_p3 = scmp.lt.u32.totalorder %s6524_s7, %s7540_s4 }
  0x40   : > { %p6071_p12 = scmp.ne.s32.totalorder %s6524_s7, %s6070_s29  ;;  %p6077_p7 = scmp.lt.u32.totalorder %s6075_s20, %s6070_s29 }
  0x41   : > { %s7542_s9 = scalar_select %p6538_p13, 1, 0 }
  0x42   : > { %p6073_p0 = pnand %p6538_p13, %p6071_p12  ;;  %p6078_p1 = por %p6077_p7, %p6076_p3 }
  0x43   : > { %p6079_p4 = scmp.lt.u32.totalorder %s6070_s29, %s6524_s7 }
  0x44   : > { %p6074_p2 = pneg %p6073_p0 }
  0x45   : > { %p6080_p5 = por %p6079_p4, %p6078_p1 }
  0x47   : > { %p6081_p6 = pnand %p6080_p5, %p6074_p2 }
  0x49   : > { %6084 = shalt.err (!%p6081_p6)
}
  0x4a   : > { %s6085_s12 = scalar_lea.vmem %s6530_s25, 8192  ;;  %s6355_s10 = smov [#allocation12]  }
  0x4b   : > { %p6086_p9 = scmp.ne.s32.totalorder %s6530_s25, %s6085_s12  ;;  %s6090_s23 = sshll.u32 %s6355_s10, 4  ;;  %s6091_s23 = int_to_ptr.vmem [resolvable:$false] %s6090_s23 }
  0x4c   : > { %s6092_s26 = scalar_lea.vmem %s6091_s23, 16384  ;;  %p6093_p8 = scmp.lt.s32.totalorder %s6530_s25, %s6091_s23 }
  0x4d   : > { %p6088_p12 = pnand %p6086_p9, %p6538_p13  ;;  %p6094_p10 = scmp.lt.s32.totalorder %s6092_s26, %s6085_s12 }
  0x4f   : > { %p6089_p0 = pneg %p6088_p12  ;;  %p6095_p3 = por %p6094_p10, %p6093_p8 }
  0x51   : > { %p6096_p7 = pnand %p6095_p3, %p6089_p0 }
  0x53   : > { %6099 = shalt.err (!%p6096_p7)
}
  0x54   : > { %s6356_s29 = smov 512   ;;  %s6357_s20 = smov 32  }
  0x55   : > { %5787 = dma.hbm_to_vmem [thread:$0]  (!%p6526_p11), %s6524_s7, 8192, %s6530_s25, %s6532_s28, %s6356_s29, %s6356_s29, %s6357_s20  }
  0x56   : > { %s4937_s21 = sshll.u32 %s6517_s13, 4  ;;  %s5148_s10 = sshll.u32 %s6350_s16, 8 }
  0x57   : > { %s6567_s12 = scalar_lea.hbm %s7498_s5, %s5148_s10  ;;  %s378_s23 = scalar_lea.vmem [#allocation13], %s4937_s21 }
  0x58   : > { %s385_s26 = sshll.u32 %s378_s23, 4  ;;  %s6358_s4 = smov [#allocation7]   ;;  %s6569_s26 = int_to_ptr.vmem [resolvable:$true] %s385_s26 }
  0x59   : > { %s6571_s30 = sshll.u32 %s6358_s4, 4  ;;  %s6100_s15 = scalar_lea.hbm %s6567_s12, 256  ;;  %s311_s30 = int_to_ptr.vmem [resolvable:$true] %s6571_s30 }
  0x5a   : > { %p6101_p8 = scmp.ne.s32.totalorder %s6567_s12, %s6100_s15  ;;  %s6105_s27 = scalar_lea.hbm %s7498_s5, 512 }
  0x5b   : > { %p6106_p1 = scmp.lt.u32.totalorder %s6567_s12, %s7498_s5  ;;  %p6107_p4 = scmp.lt.u32.totalorder %s6105_s27, %s6100_s15 }
  0x5c   : > { %p6103_p10 = pnand %p6101_p8, %p6538_p13  ;;  %p6109_p6 = scmp.lt.u32.totalorder %s6100_s15, %s6567_s12 }
  0x5d   : > { %p6108_p5 = por %p6107_p4, %p6106_p1 }
  0x5e   : > { %p6104_p2 = pneg %p6103_p10 }
  0x5f   : > { %p6110_p9 = por %p6109_p6, %p6108_p5 }
  0x61   : > { %p6111_p12 = pnand %p6110_p9, %p6104_p2 }
  0x63   : > { %6114 = shalt.err (!%p6111_p12)
}
  0x64   : > { %s6115_s4 = scalar_lea.vmem %s6569_s26, 256  ;;  %s6359_s20 = smov [#allocation13]  }
  0x65   : > { %p6116_p0 = scmp.ne.s32.totalorder %s6569_s26, %s6115_s4  ;;  %s6120_s21 = sshll.u32 %s6359_s20, 4  ;;  %s6121_s21 = int_to_ptr.vmem [resolvable:$false] %s6120_s21 }
  0x66   : > { %s6122_s10 = scalar_lea.vmem %s6121_s21, 512  ;;  %p6123_p8 = scmp.lt.s32.totalorder %s6569_s26, %s6121_s21 }
  0x67   : > { %p6118_p3 = pnand %p6116_p0, %p6538_p13  ;;  %p6124_p10 = scmp.lt.s32.totalorder %s6122_s10, %s6115_s4 }
  0x69   : > { %p6119_p7 = pneg %p6118_p3  ;;  %p6125_p1 = por %p6124_p10, %p6123_p8 }
  0x6b   : > { %p6126_p4 = pnand %p6125_p1, %p6119_p7 }
  0x6d   : > { %6129 = shalt.err (!%p6126_p4)
}
  0x6e   : > { %s7543_s15 = smov 8   ;;  %s7544_s23 = smov 128  }
  0x6f   : > { %5790 = dma.hbm_to_vmem [thread:$0]  (!%p6526_p11), %s6567_s12, 256, %s6569_s26, %s6532_s28, %s7544_s23, %s7544_s23, %s7543_s15  }
  0x70   : > { %s7522_s7 = sshll.u32 %s6517_s13, 7  ;;  %s7545_s1 = sld [smem:[#allocation26_spill]] }
  0x71   : > { %p7546_p5 = scmp.ne.s32.totalorder %s7538_s11, 0 }
  0x76   : > { %s6130_s25 = scalar_lea.hbm %s7545_s1, 256 }
  0x77   : > { %p6131_p2 = scmp.ne.s32.totalorder %s7545_s1, %s6130_s25  ;;  %p6137_p12 = scmp.lt.u32.totalorder %s6130_s25, %s7545_s1 }
  0x79   : > { %p6133_p6 = pnand %p6131_p2, %p7546_p5 }
  0x7b   : > { %p6134_p9 = pneg %p6133_p6 }
  0x7d   : > { %p6139_p0 = pnand %p6137_p12, %p6134_p9 }
  0x7f   : > { %6142 = shalt.err (!%p6139_p0)
}
  0x80   : > { %s6143_s12 = scalar_lea.vmem %s311_s30, 256  ;;  %p6151_p10 = scmp.lt.s32.totalorder %s311_s30, %s311_s30 }
  0x81   : > { %p6144_p3 = scmp.ne.s32.totalorder %s311_s30, %s6143_s12  ;;  %p6152_p1 = scmp.lt.s32.totalorder %s6143_s12, %s6143_s12 }
  0x83   : > { %p6146_p7 = pnand %p6144_p3, %p7546_p5  ;;  %p6153_p4 = por %p6152_p1, %p6151_p10 }
  0x85   : > { %p6147_p8 = pneg %p6146_p7 }
  0x87   : > { %p6154_p11 = pnand %p6153_p4, %p6147_p8 }
  0x89   : > { %6157 = shalt.err (!%p6154_p11)
}
  0x8a   : > { %p7547_p2 = scmp.ne.s32.totalorder %s7535_s22, 0  ;;  %s7523_s0 = sshll.u32 %s6350_s16, 11 }
  0x8b   : > { %s6627_s29 = scalar_lea.hbm %s7499_s6, %s7523_s0  ;;  %s399_s4 = scalar_lea.vmem [#allocation14], %s7522_s7 }
  0x8c   : > { %5777 = dma.hbm_to_vmem [thread:$0]  (!%p7547_p2), %s7545_s1, 256, %s311_s30, [#allocation8], %s7544_s23, %s7544_s23, %s7543_s15  }
  0x8d   : > { %s406_s20 = sshll.u32 %s399_s4, 4  ;;  %s6158_s21 = scalar_lea.hbm %s6627_s29, 2048  ;;  %s6631_s20 = int_to_ptr.vmem [resolvable:$true] %s406_s20 }
  0x8e   : > { %p6159_p11 = scmp.ne.s32.totalorder %s6627_s29, %s6158_s21  ;;  %s6163_s26 = scalar_lea.hbm %s7499_s6, 4096 }
  0x8f   : > { %p6164_p12 = scmp.lt.u32.totalorder %s6627_s29, %s7499_s6  ;;  %p6165_p0 = scmp.lt.u32.totalorder %s6163_s26, %s6158_s21 }
  0x90   : > { %p6161_p6 = pnand %p6159_p11, %p6538_p13  ;;  %p6167_p7 = scmp.lt.u32.totalorder %s6158_s21, %s6627_s29 }
  0x91   : > { %p6166_p3 = por %p6165_p0, %p6164_p12 }
  0x92   : > { %p6162_p9 = pneg %p6161_p6 }
  0x93   : > { %p6168_p8 = por %p6167_p7, %p6166_p3 }
  0x95   : > { %p6169_p10 = pnand %p6168_p8, %p6162_p9 }
  0x97   : > { %6172 = shalt.err (!%p6169_p10)
}
  0x98   : > { %s6173_s25 = scalar_lea.vmem %s6631_s20, 2048  ;;  %s6360_s4 = smov [#allocation14]  }
  0x99   : > { %p6174_p1 = scmp.ne.s32.totalorder %s6631_s20, %s6173_s25  ;;  %s6178_s30 = sshll.u32 %s6360_s4, 4  ;;  %s6179_s30 = int_to_ptr.vmem [resolvable:$false] %s6178_s30 }
  0x9a   : > { %s6180_s12 = scalar_lea.vmem %s6179_s30, 4096  ;;  %p6181_p6 = scmp.lt.s32.totalorder %s6631_s20, %s6179_s30 }
  0x9b   : > { %p6176_p4 = pnand %p6174_p1, %p6538_p13  ;;  %p6182_p2 = scmp.lt.s32.totalorder %s6180_s12, %s6173_s25 }
  0x9d   : > { %p6177_p11 = pneg %p6176_p4  ;;  %p6183_p12 = por %p6182_p2, %p6181_p6 }
  0x9f   : > { %p6184_p0 = pnand %p6183_p12, %p6177_p11 }
  0xa1   : > { %6187 = shalt.err (!%p6184_p0)
}
  0xa2   : > { %p7548_p9 = scmp.ne.s32.totalorder %s7541_s24, 0  ;;  %s6361_s21 = smov [#allocation9]  }
  0xa3   : > { %s323_s26 = sshll.u32 %s6361_s21, 4  ;;  %s6362_s10 = smov [#allocation10]   ;;  %s324_s26 = int_to_ptr.vmem [resolvable:$true] %s323_s26 }
  0xa4   : > { %5793 = dma.hbm_to_vmem [thread:$0]  (!%p7548_p9), %s6627_s29, 2048, %s6631_s20, %s6532_s28, %s7544_s23, %s7544_s23, %s7543_s15  }
  0xa5   : > { %s336_s27 = sshll.u32 %s6362_s10, 4  ;;  %s6188_s30 = scalar_lea.hbm %s7495_s2, 640  ;;  %s337_s27 = int_to_ptr.vmem [resolvable:$true] %s336_s27 }
  0xa6   : > { %p6189_p2 = scmp.ne.s32.totalorder %s7495_s2, %s6188_s30  ;;  %p6195_p8 = scmp.lt.u32.totalorder %s6188_s30, %s7495_s2 }
  0xa8   : > { %p6191_p3 = pnand %p6189_p2, %p7546_p5 }
  0xaa   : > { %p6192_p7 = pneg %p6191_p3 }
  0xac   : > { %p6197_p10 = pnand %p6195_p8, %p6192_p7 }
  0xae   : > { %6200 = shalt.err (!%p6197_p10)
}
  0xaf   : > { %s6201_s29 = scalar_lea.vmem %s324_s26, 640  ;;  %p6209_p6 = scmp.lt.s32.totalorder %s324_s26, %s324_s26 }
  0xb0   : > { %p6202_p1 = scmp.ne.s32.totalorder %s324_s26, %s6201_s29  ;;  %p6210_p12 = scmp.lt.s32.totalorder %s6201_s29, %s6201_s29 }
  0xb2   : > { %p6204_p4 = pnand %p6202_p1, %p7546_p5  ;;  %p6211_p0 = por %p6210_p12, %p6209_p6 }
  0xb4   : > { %p6205_p11 = pneg %p6204_p4 }
  0xb6   : > { %p6212_p9 = pnand %p6211_p0, %p6205_p11 }
  0xb8   : > { %6215 = shalt.err (!%p6212_p9)
}
  0xb9   : > { %p7549_p2 = scmp.ne.s32.totalorder %s7535_s22, 0  ;;  %s6216_s21 = scalar_lea.hbm %s7496_s3, 640 }
  0xba   : > { %p6217_p3 = scmp.ne.s32.totalorder %s7496_s3, %s6216_s21  ;;  %p6223_p8 = scmp.lt.u32.totalorder %s6216_s21, %s7496_s3 }
  0xbb   : > { %5780 = dma.hbm_to_vmem [thread:$0]  (!%p7549_p2), %s7495_s2, 640, %s324_s26, [#allocation8], %s7544_s23, %s7544_s23, %s7543_s15  }
  0xbc   : > { %p6219_p9 = pnand %p6217_p3, %p7546_p5 }
  0xbe   : > { %p6220_p7 = pneg %p6219_p9 }
  0xc0   : > { %p6225_p10 = pnand %p6223_p8, %p6220_p7 }
  0xc2   : > { %6228 = shalt.err (!%p6225_p10)
}
  0xc3   : > { %s6229_s12 = scalar_lea.vmem %s337_s27, 640  ;;  %p6237_p6 = scmp.lt.s32.totalorder %s337_s27, %s337_s27 }
  0xc4   : > { %p6230_p1 = scmp.ne.s32.totalorder %s337_s27, %s6229_s12  ;;  %p6238_p12 = scmp.lt.s32.totalorder %s6229_s12, %s6229_s12 }
  0xc6   : > { %p6232_p4 = pnand %p6230_p1, %p7546_p5  ;;  %p6239_p0 = por %p6238_p12, %p6237_p6 }
  0xc8   : > { %p6233_p11 = pneg %p6232_p4 }
  0xca   : > { %p6240_p13 = pnand %p6239_p0, %p6233_p11 }
  0xcc   : > { %6243 = shalt.err (!%p6240_p13)
}
  0xcd   : > { %5783 = dma.hbm_to_vmem [thread:$0]  (!%p7549_p2), %s7496_s3, 640, %s337_s27, [#allocation11], %s7544_s23, %s7544_s23, %s7543_s15  }
  0xce   : > { %s7550_s11 = sshll.u32 %s6350_s16, 11  ;;  %s7551_s20 = sshll.u32 %s6517_s13, 7 }
  0xcf   : > { %s6705_s0 = scalar_lea.hbm %s7501_s8, %s7550_s11  ;;  %s427_s22 = scalar_lea.vmem [#allocation15], %s7551_s20 }
  0xd0   : > { %s434_s21 = sshll.u32 %s427_s22, 4  ;;  %s6244_s10 = scalar_lea.hbm %s6705_s0, 2048  ;;  %s6709_s21 = int_to_ptr.vmem [resolvable:$true] %s434_s21 }
  0xd1   : > { %p6245_p13 = scmp.ne.s32.totalorder %s6705_s0, %s6244_s10  ;;  %p7552_p5 = scmp.ne.s32.totalorder %s7542_s9, 0 }
  0xd2   : > { %s6249_s23 = scalar_lea.hbm %s7501_s8, 4096  ;;  %p6250_p9 = scmp.lt.u32.totalorder %s6705_s0, %s7501_s8 }
  0xd3   : > { %p6247_p3 = pnand %p6245_p13, %p7552_p5  ;;  %p6251_p7 = scmp.lt.u32.totalorder %s6249_s23, %s6244_s10 }
  0xd4   : > { %p6253_p10 = scmp.lt.u32.totalorder %s6244_s10, %s6705_s0 }
  0xd5   : > { %p6248_p2 = pneg %p6247_p3  ;;  %p6252_p8 = por %p6251_p7, %p6250_p9 }
  0xd7   : > { %p6254_p1 = por %p6253_p10, %p6252_p8 }
  0xd9   : > { %p6255_p4 = pnand %p6254_p1, %p6248_p2 }
  0xdb   : > { %6258 = shalt.err (!%p6255_p4)
}
  0xdc   : > { %s6259_s13 = scalar_lea.vmem %s6709_s21, 2048  ;;  %s6363_s25 = smov [#allocation15]  }
  0xdd   : > { %p6260_p11 = scmp.ne.s32.totalorder %s6709_s21, %s6259_s13  ;;  %s6264_s30 = sshll.u32 %s6363_s25, 4  ;;  %s6265_s30 = int_to_ptr.vmem [resolvable:$false] %s6264_s30 }
  0xde   : > { %s6266_s12 = scalar_lea.vmem %s6265_s30, 4096  ;;  %p6267_p0 = scmp.lt.s32.totalorder %s6709_s21, %s6265_s30 }
  0xdf   : > { %p6262_p6 = pnand %p6260_p11, %p7552_p5  ;;  %p6268_p13 = scmp.lt.s32.totalorder %s6266_s12, %s6259_s13 }
  0xe1   : > { %p6263_p12 = pneg %p6262_p6  ;;  %p6269_p3 = por %p6268_p13, %p6267_p0 }
  0xe3   : > { %p6270_p9 = pnand %p6269_p3, %p6263_p12 }
  0xe5   : > { %6273 = shalt.err (!%p6270_p9)
}
  0xe6   : > { %s6364_s26 = smov 64   ;;  %s6365_s29 = smov 4  }
  0xe7   : > { %p7553_p2 = scmp.ne.s32.totalorder %s7541_s24, 0  ;;  %p7554_p5 = scmp.ne.s32.totalorder %s7534_s19, 0 }
  0xe8   : > { %p7555_p7 = scmp.eq.s32.totalorder (!%p7554_p5), %s6450_s17, 0 }
  0xe9   : > { %5796 = dma.hbm_to_vmem [thread:$0]  (!%p7553_p2), %s6705_s0, 2048, %s6709_s21, %s6532_s28, %s6364_s26, %s6364_s26, %s6365_s29  }
  0xea   : > { %446 = sbr.rel (%p7554_p5) target bundleno = 7656 (0x1de8), region = 60 }
  0xf1   : > { %6317 = dma.done.wait (%p7555_p7), [#allocation5], 256   ;;  %p7556_p8 = pmov %p7555_p7 }
  0xf2   : > { %p7557_p10 = pmov %p7555_p7 }
  0xf3   : > { %6319 = vsyncadd (%p7556_p8), [#allocation5], 4294967040 }
  0xf4   : > { %6321 = dma.done.wait (%p7557_p10), [#allocation8], 896   ;;  %p7558_p1 = pmov %p7555_p7 }
  0xf6   : > { %6323 = vsyncadd (%p7558_p1), [#allocation8], 4294966400  ;;  %p7559_p4 = pmov %p7558_p1 }
  0xf7   : > { %p7560_p11 = pmov %p7558_p1 }
  0xf8   : > { %6325 = dma.done.wait (%p7559_p4), [#allocation11], 640  }
  0xf9   : > { %6327 = vsyncadd (%p7560_p11), [#allocation11], 4294966656  ;;  %s464_s19 = sand.u32 1, %s6450_s17   ;;  %s466_s24 = sand.u32 1, %s6342_s14  }
  0xfa   : > { %s4951_s28 = sshll.u32 %s466_s24, 9  ;;  %s465_s9 = scalar_lea.sflag [#allocation5], %s464_s19 }
  0xfb   : > { %s6749_s11 = scalar_lea.vmem [#allocation12], %s4951_s28  ;;  %p7561_p6 = scmp.ne.s32.totalorder %s7533_s18, 0 }
  0xfd   : > { %6329 = dma.done.wait (%p7561_p6), %s465_s9, 12544  }
  0xfe   : > { %6331 = vsyncadd (%p7561_p6), %s465_s9, 4294954752  ;;  %s4952_s1 = sshll.u32 %s466_s24, 4  ;;  %s4953_s7 = sshll.u32 %s466_s24, 7 }
  0xff   : > { %p546_p12 = scmp.lt.s32.totalorder %s6450_s17, 1  ;;  %s7562_s10 = sld [smem:[#allocation28_spill]] }
 0x100   : > { %s6762_s15 = scalar_lea.vmem [#allocation13], %s4952_s1  ;;  %s6764_s23 = scalar_lea.vmem [#allocation14], %s4953_s7 }
 0x101   : > { %s547_s0 = scalar_select %p546_p12, %s6450_s17, 1 }
 0x102   : > { %s6766_s27 = scalar_lea.vmem [#allocation15], %s4953_s7  ;;  %p7563_p0 = scmp.ne.s32.totalorder %s6450_s17, 0 }
 0x103   : > { %s4955_s20 = sshll.u32 %s547_s0, 1  ;;  %v555_v0 = vld [vmem:[#allocation4] sm:$0xff] (!%p7563_p0)  ;;  %v556_v1 = vld [vmem:[#allocation4 + $0x8] sm:$0xff] (!%p7563_p0) }
 0x104   : > { %554 = sbr.rel (%p7563_p0) target bundleno = 267 (0x10b), region = 96  ;;  %557 = vst [vmem:[#allocation2] sm:$0xff] (!%p7563_p0), %v555_v0  ;;  %558 = vst [vmem:[#allocation2 + $0x8] sm:$0xff] (!%p7563_p0), %v556_v1 }
 0x105   : > { %s6760_s16 = scalar_lea.vmem %s7562_s10, %s4955_s20 }
 0x10b PF: > { %v581_v2 = vld [vmem:[%s6749_s11] sm:$0xff]  ;;  %v6366_v8 = vmov 0   ;;  %v6787_v32 = vld [vmem:[#allocation2] sm:$0xff]  ;;  %v6789_v34 = vld [vmem:[#allocation2 + $0x8] sm:$0xff]  ;;  %v6367_v42 = vmov 0.0   ;;  %vm6368_vm0 = vmmov 0  }
 0x10c   : > { %v582_v3 = vld [vmem:[%s6749_s11 + $0x20] sm:$0xff]  ;;  %710 = vmatprep.mubr.bf16.mxu0 %v6366_v8  ;;  %v562_v36 = vld [vmem:[#allocation7 + $0x8] sm:$0xff]  ;;  %5327 = vmatprep.subr.bf16.mxu1 %v6367_v42  ;;  %vm863_vm1 = vcmask 261120   ;;  %s6369_s18 = smov 64   ;;  %s6370_s4 = smov 96   ;;  %vm941_vm2 = vcmask 64512  }
 0x10d   : > { %v583_v4 = vld [vmem:[%s6749_s11 + $0x40] sm:$0xff]  ;;  %v4958_v5 = vcombine.high %v581_v2, %v582_v3  ;;  %v4957_v6 = vcombine.low %v581_v2, %v582_v3  ;;  %v580_v39 = vadd.f32 %v562_v36, %v6789_v34  ;;  %5343 = vmatprep.mubr.msk.bf16.mxu1 %vm6368_vm0, %v6367_v42  ;;  %v735_v46 = vld [vmem:[%s6749_s11 + $0x8] sm:$0xf]  ;;  %s6371_s13 = smov 32   ;;  %vm1198_vm3 = vcmask 523520   ;;  %vm7084_vm6 = vmpackc.low %vm863_vm1, %vm863_vm1  ;;  %p5140_p13 = scmp.ne.s32.totalorder %s6450_s17, 1 }
 0x10e   : > { %v584_v7 = vld [vmem:[%s6749_s11 + $0x60] sm:$0xff]  ;;  %v736_v47 = vld [vmem:[%s6749_s11 + $0x28] sm:$0xf]  ;;  %vm1370_vm4 = vcmask 785920   ;;  %vm1542_vm5 = vcmask 1048320   ;;  %vm3474_vm7 = vcmask 1046528  }
 0x10f   : > { %v4960_v9 = vcombine.high %v583_v4, %v584_v7  ;;  %v585_v10 = vld [vmem:[%s6749_s11 + $0x80] sm:$0xff]  ;;  %678 = vmatprep.subr.bf16.mxu0 %v4958_v5  ;;  %v4959_v12 = vcombine.low %v583_v4, %v584_v7  ;;  %v4976_v50 = vcombine.low %v735_v46, %v736_v47  ;;  %v737_v53 = vld [vmem:[%s6749_s11 + $0x48] sm:$0xf]  ;;  %vm2837_vm8 = vcmask 1040384   ;;  %s7566_s12 = sld [smem:[#allocation29_spill]] (!%p5140_p13) }
 0x110   : > { %v586_v11 = vld [vmem:[%s6749_s11 + $0xa0] sm:$0xff]  ;;  %679 = vmatpush1.bf16.msra.mxu0 %v4957_v6  ;;  %v738_v54 = vld [vmem:[%s6749_s11 + $0x68] sm:$0xf]  ;;  %vm2822_vm9 = vcmask 138240  }
 0x111   : > { %680 = vmatprep.subr.bf16.mxu0 %v4960_v9  ;;  %v4962_v13 = vcombine.high %v585_v10, %v586_v11  ;;  %v587_v14 = vld [vmem:[%s6749_s11 + $0xc0] sm:$0xff]  ;;  %v4961_v16 = vcombine.low %v585_v10, %v586_v11  ;;  %5328 = vmatpush3.bf16.msra.mxu1 %v4976_v50  ;;  %v4977_v56 = vcombine.low %v737_v53, %v738_v54  ;;  %v739_v57 = vld [vmem:[%s6749_s11 + $0x88] sm:$0xf] }
 0x112   : > { %v588_v15 = vld [vmem:[%s6749_s11 + $0xe0] sm:$0xff]  ;;  %5329 = vmatprep.subr.bf16.mxu1 %v6367_v42  ;;  %v740_v58 = vld [vmem:[%s6749_s11 + $0xa8] sm:$0xf] }
 0x113   : > { %v589_v17 = vld [vmem:[%s6749_s11 + $0x100] sm:$0xff]  ;;  %v4964_v19 = vcombine.high %v587_v14, %v588_v15  ;;  %v4963_v20 = vcombine.low %v587_v14, %v588_v15  ;;  %v4978_v59 = vcombine.low %v739_v57, %v740_v58  ;;  %v741_v60 = vld [vmem:[%s6749_s11 + $0xc8] sm:$0xf]  ;;  %v751_v14 = vpack.c.bf16 %v6789_v34, %v6787_v32 }
 0x114   : > { %681 = vmatpush1.bf16.msra.mxu0 %v4959_v12  ;;  %v590_v18 = vld [vmem:[%s6749_s11 + $0x120] sm:$0xff]  ;;  %v742_v61 = vld [vmem:[%s6749_s11 + $0xe8] sm:$0xf] }
 0x115   : > { %682 = vmatprep.subr.bf16.mxu0 %v4962_v13  ;;  %v591_v21 = vld [vmem:[%s6749_s11 + $0x140] sm:$0xff]  ;;  %v4966_v23 = vcombine.high %v589_v17, %v590_v18  ;;  %v4965_v24 = vcombine.low %v589_v17, %v590_v18  ;;  %5330 = vmatpush3.bf16.msra.mxu1 %v4977_v56  ;;  %v4979_v63 = vcombine.low %v741_v60, %v742_v61  ;;  %v743_v1 = vld [vmem:[%s6749_s11 + $0x108] sm:$0xf] }
 0x116   : > { %v592_v22 = vld [vmem:[%s6749_s11 + $0x160] sm:$0xff]  ;;  %5331 = vmatprep.subr.bf16.mxu1 %v6367_v42  ;;  %v744_v2 = vld [vmem:[%s6749_s11 + $0x128] sm:$0xf] }
 0x117   : > { %v593_v25 = vld [vmem:[%s6749_s11 + $0x180] sm:$0xff]  ;;  %v4968_v27 = vcombine.high %v591_v21, %v592_v22  ;;  %v4967_v28 = vcombine.low %v591_v21, %v592_v22  ;;  %v4980_v3 = vcombine.low %v743_v1, %v744_v2  ;;  %v745_v4 = vld [vmem:[%s6749_s11 + $0x148] sm:$0xf] }
 0x118   : > { %683 = vmatpush1.bf16.msra.mxu0 %v4961_v16  ;;  %v594_v26 = vld [vmem:[%s6749_s11 + $0x1a0] sm:$0xff]  ;;  %v746_v5 = vld [vmem:[%s6749_s11 + $0x168] sm:$0xf] }
 0x119   : > { %684 = vmatprep.subr.bf16.mxu0 %v4964_v19  ;;  %v595_v29 = vld [vmem:[%s6749_s11 + $0x1c0] sm:$0xff]  ;;  %v4970_v30 = vcombine.high %v593_v25, %v594_v26  ;;  %v4969_v33 = vcombine.low %v593_v25, %v594_v26  ;;  %5332 = vmatpush3.bf16.msra.mxu1 %v4978_v59  ;;  %v4981_v6 = vcombine.low %v745_v4, %v746_v5  ;;  %v747_v7 = vld [vmem:[%s6749_s11 + $0x188] sm:$0xf] }
 0x11a   : > { %v596_v31 = vld [vmem:[%s6749_s11 + $0x1e0] sm:$0xff]  ;;  %5333 = vmatprep.subr.bf16.mxu1 %v6367_v42  ;;  %v748_v9 = vld [vmem:[%s6749_s11 + $0x1a8] sm:$0xf] }
 0x11b   : > { %v561_v35 = vld [vmem:[#allocation7] sm:$0xff]  ;;  %v4972_v37 = vcombine.high %v595_v29, %v596_v31  ;;  %v4971_v40 = vcombine.low %v595_v29, %v596_v31  ;;  %v4982_v10 = vcombine.low %v747_v7, %v748_v9  ;;  %v749_v11 = vld [vmem:[%s6749_s11 + $0x1c8] sm:$0xf] }
 0x11c   : > { %685 = vmatpush1.bf16.msra.mxu0 %v4963_v20  ;;  %v579_v38 = vadd.f32 %v561_v35, %v6787_v32  ;;  %v4974_v43 = vld [vmem:[%s6762_s15 + $0x1] ss:$0 sm:$0xff]  ;;  %v4973_v51 = vld [vmem:[%s6762_s15] ss:$0 sm:$0xff]  ;;  %v750_v12 = vld [vmem:[%s6749_s11 + $0x1e8] sm:$0xf] }
 0x11d   : > { %686 = vmatprep.subr.bf16.mxu0 %v4966_v23  ;;  %5334 = vmatpush3.bf16.msra.mxu1 %v4979_v63  ;;  %v4983_v13 = vcombine.low %v749_v11, %v750_v12  ;;  %v4975_v31 = vld [vmem:[%s6762_s15 + $0x2] ss:$0 sm:$0xff] }
 0x11e   : > { %v597_v41 = vpack.c.bf16 %v580_v39, %v579_v38  ;;  %5335 = vmatprep.subr.bf16.mxu1 %v6367_v42 }
 0x120   : > { %687 = vmatpush1.bf16.msra.mxu0 %v4965_v24 }
 0x121   : > { %688 = vmatprep.subr.bf16.mxu0 %v4968_v27  ;;  %5336 = vmatpush3.bf16.msra.mxu1 %v4980_v3 }
 0x122   : > { %5337 = vmatprep.subr.bf16.mxu1 %v6367_v42 }
 0x124   : > { %689 = vmatpush1.bf16.msra.mxu0 %v4967_v28 }
 0x125   : > { %690 = vmatprep.subr.bf16.mxu0 %v4970_v30  ;;  %5338 = vmatpush3.bf16.msra.mxu1 %v4981_v6 }
 0x126   : > { %5339 = vmatprep.subr.bf16.mxu1 %v6367_v42 }
 0x128   : > { %691 = vmatpush1.bf16.msra.mxu0 %v4969_v33 }
 0x129   : > { %692 = vmatprep.subr.bf16.mxu0 %v4972_v37  ;;  %5340 = vmatpush3.bf16.msra.mxu1 %v4982_v10 }
 0x12a   : > { %5341 = vmatprep.subr.bf16.mxu1 %v6367_v42 }
 0x12c   : > { %693 = vmatpush1.bf16.msra.mxu0 %v4971_v40 }
 0x12d   : > { %5347 = vmatprep.subr.mxu0 %v6367_v42  ;;  %5342 = vmatpush3.bf16.msra.mxu1 %v4983_v13 }
 0x12e   : > { %5352 = vmatprep.subr.mxu1 %v6367_v42 }
 0x12f   : > { %711 = vmatmul.mubr.bf16.vlgmr.msra.gmra.mrb[0].mxu0 %v597_v41 }
 0x130   : > { %5349 = vmatprep.mubr.msk.f32.mxu0 %vm6368_vm0, %v6367_v42  ;;  %5344 = vmatmul.mubr.bf16.vlgmr.msra.gmra.mrb[0].mxu1 %v751_v14 }
 0x131   : > { %5354 = vmatprep.mubr.msk.f32.mxu1 %vm6368_vm0, %v6367_v42 }
 0x202   : > { %v712_v44 = vpop.f32.mrb[0].mxu0 }
 0x203   : > { %v714_v45 = vpop.f32.mrb[1].mxu0  ;;  %v726_v55 = vadd.f32 %v4973_v51, %v712_v44  ;;  %v839_v33 = vpop.f32.mrb[0].mxu1 }
 0x204   : > { %v733_v48 = vadd.f32 %v4974_v43, %v714_v45  ;;  %v716_v49 = vpop.f32.mrb[2].mxu0  ;;  %v6883_v35 = vadd.f32 %v4975_v31, %v839_v33  ;;  %v5345_v36 = vpop.f32.mrb[1].mxu1 }
 0x205   : > { %v718_v52 = vpop.f32.mrb[3].mxu0  ;;  %v727_v62 = vadd.f32 %v4973_v51, %v716_v49  ;;  %v842_v37 = vpop.f32.mrb[2].mxu1 }
 0x206   : > { %1202 = vrot.lane.b32.xlu1 %v733_v48, %s6369_s18  ;;  %1029 = vrot.lane.b32.xlu0 %v733_v48, %s6370_s4  ;;  %v734_v0 = vadd.f32 %v4974_v43, %v718_v52  ;;  %v6885_v38 = vadd.f32 %v4975_v31, %v842_v37  ;;  %v5346_v39 = vpop.f32.mrb[3].mxu1 }
 0x207   : > { %5348 = vmatpush3.xpose.msk.msra.mxu0 %vm863_vm1, %v733_v48  ;;  %5353 = vmatpush3.msra.mxu1 %v6883_v35 }
 0x208   : > { %5357 = vmatprep.subr.mxu0 %v6367_v42  ;;  %5362 = vmatprep.subr.mxu1 %v6367_v42 }
 0x20a   : > { %5350 = vmatmul.mubr.msk.f32.vlgmr.msra.gmra.mrb[4].mxu0 %vm863_vm1, %v726_v55  ;;  %1200 = vrot.lane.b32.xlu1 %v726_v55, %s6369_s18 }
 0x20b   : > { %1027 = vrot.lane.b32.xlu0 %v726_v55, %s6370_s4  ;;  %5359 = vmatprep.mubr.msk.f32.mxu0 %vm6368_vm0, %v6367_v42 }
 0x20e   : > { %1372 = vrot.lane.b32.xlu1 %v726_v55, %s6371_s13 }
 0x20f   : > { %1374 = vrot.lane.b32.xlu0 %v733_v48, %s6371_s13 }
 0x212   : > { %1706 = vrot.lane.b32.xlu1 %v727_v62, %s6370_s4 }
 0x213   : > { %1708 = vrot.lane.b32.xlu0 %v734_v0, %s6370_s4 }
 0x216   : > { %1878 = vrot.lane.b32.xlu1 %v727_v62, %s6369_s18 }
 0x217   : > { %1880 = vrot.lane.b32.xlu0 %v734_v0, %s6369_s18 }
 0x21a   : > { %2049 = vrot.lane.b32.xlu1 %v727_v62, %s6371_s13 }
 0x21b   : > { %2051 = vrot.lane.b32.xlu0 %v734_v0, %s6371_s13 }
 0x278   : > { %v1203_v15 = vpop.permute.xlu1 %1202  ;;  %v1030_v16 = vpop.permute.xlu0 %1029 }
 0x279   : > { %5358 = vmatpush3.xpose.msk.msra.mxu0 %vm863_vm1, %v1030_v16 }
 0x27a   : > { %5367 = vmatprep.subr.mxu0 %v6367_v42 }
 0x27c   : > { %v1201_v17 = vpop.permute.xlu1 %1200 }
 0x27d   : > { %v1028_v18 = vpop.permute.xlu0 %1027 }
 0x27e   : > { %5360 = vmatmul.mubr.msk.f32.vlgmr.msra.gmra.mrb[6].mxu0 %vm863_vm1, %v1028_v18 }
 0x27f   : > { %5368 = vmatpush3.xpose.msk.msra.mxu0 %vm863_vm1, %v1203_v15  ;;  %5369 = vmatprep.mubr.msk.f32.mxu0 %vm6368_vm0, %v6367_v42 }
 0x280   : > { %5377 = vmatprep.subr.mxu0 %v6367_v42  ;;  %v1373_v20 = vpop.permute.xlu1 %1372 }
 0x281   : > { %v1375_v19 = vpop.permute.xlu0 %1374 }
 0x282   : > { %5370 = vmatmul.mubr.msk.f32.vlgmr.msra.gmra.mrb[8].mxu0 %vm863_vm1, %v1201_v17 }
 0x283   : > { %5378 = vmatpush3.xpose.msk.msra.mxu0 %vm863_vm1, %v1375_v19  ;;  %5379 = vmatprep.mubr.msk.f32.mxu0 %vm6368_vm0, %v6367_v42 }
 0x284   : > { %5387 = vmatprep.subr.mxu0 %v6367_v42  ;;  %v1707_v22 = vpop.permute.xlu1 %1706 }
 0x285   : > { %v1709_v21 = vpop.permute.xlu0 %1708 }
 0x286   : > { %5380 = vmatmul.mubr.msk.f32.vlgmr.msra.gmra.mrb[10].mxu0 %vm863_vm1, %v1373_v20 }
 0x287   : > { %5388 = vmatpush3.xpose.msk.msra.mxu0 %vm863_vm1, %v734_v0  ;;  %5389 = vmatprep.mubr.msk.f32.mxu0 %vm6368_vm0, %v6367_v42 }
 0x288   : > { %5397 = vmatprep.subr.mxu0 %v6367_v42  ;;  %v1879_v24 = vpop.permute.xlu1 %1878 }
 0x289   : > { %v1881_v23 = vpop.permute.xlu0 %1880 }
 0x28a   : > { %5390 = vmatmul.mubr.msk.f32.vlgmr.msra.gmra.mrb[12].mxu0 %vm863_vm1, %v727_v62 }
 0x28b   : > { %5398 = vmatpush3.xpose.msk.msra.mxu0 %vm863_vm1, %v1709_v21  ;;  %5399 = vmatprep.mubr.msk.f32.mxu0 %vm6368_vm0, %v6367_v42 }
 0x28c   : > { %5407 = vmatprep.subr.mxu0 %v6367_v42  ;;  %v2050_v26 = vpop.permute.xlu1 %2049 }
 0x28d   : > { %v2052_v25 = vpop.permute.xlu0 %2051 }
 0x28e   : > { %5400 = vmatmul.mubr.msk.f32.vlgmr.msra.gmra.mrb[14].mxu0 %vm863_vm1, %v1707_v22 }
 0x28f   : > { %5408 = vmatpush3.xpose.msk.msra.mxu0 %vm863_vm1, %v1881_v23  ;;  %5409 = vmatprep.mubr.msk.f32.mxu0 %vm6368_vm0, %v6367_v42 }
 0x290   : > { %5417 = vmatprep.subr.mxu0 %v6367_v42 }
 0x292   : > { %5410 = vmatmul.mubr.msk.f32.vlgmr.msra.gmra.mrb[16].mxu0 %vm863_vm1, %v1879_v24 }
 0x293   : > { %5418 = vmatpush3.xpose.msk.msra.mxu0 %vm863_vm1, %v2052_v25  ;;  %5419 = vmatprep.mubr.msk.f32.mxu0 %vm6368_vm0, %v6367_v42 }
 0x294   : > { %5427 = vmatprep.subr.bf16.mxu0 %v6367_v42 }
 0x296   : > { %5420 = vmatmul.mubr.msk.f32.vlgmr.msra.gmra.mrb[18].mxu0 %vm863_vm1, %v2050_v26 }
 0x297   : > { %5443 = vmatprep.mubr.msk.bf16.mxu0 %vm6368_vm0, %v6367_v42 }
 0x2dd   : > { %v936_v27 = vpop.f32.mrb[4].mxu0 }
 0x2de   : > { %v940_v28 = vmul.f32 0.17677669, %v936_v27  ;;  %v5351_v29 = vpop.f32.mrb[5].mxu0 }
 0x2e0   : > { %v942_v30 = vsel %vm941_vm2, %v940_v28, -inf }
 0x2e1   : > { %943 = vmax.xlane.f32.xlu0 %v942_v30 }
 0x351   : > { %v1101_v40 = vpop.f32.mrb[6].mxu0 }
 0x352   : > { %v1105_v41 = vmul.f32 0.17677669, %v1101_v40  ;;  %v5361_v43 = vpop.f32.mrb[7].mxu0 }
 0x354   : > { %v1106_v44 = vsel %vm941_vm2, %v1105_v41, -inf }
 0x355   : > { %1107 = vmax.xlane.f32.xlu1 %v1106_v44  ;;  %v1274_v45 = vpop.f32.mrb[8].mxu0 }
 0x356   : > { %v1278_v46 = vmul.f32 0.17677669, %v1274_v45  ;;  %v5371_v47 = vpop.f32.mrb[9].mxu0 }
 0x358   : > { %v1279_v48 = vsel %vm941_vm2, %v1278_v46, -inf }
 0x359   : > { %v1446_v49 = vpop.f32.mrb[10].mxu0  ;;  %1280 = vmax.xlane.f32.xlu0 %v1279_v48 }
 0x35a   : > { %v1450_v50 = vmul.f32 0.17677669, %v1446_v49  ;;  %v5381_v51 = vpop.f32.mrb[11].mxu0 }
 0x35c   : > { %v1451_v52 = vsel %vm941_vm2, %v1450_v50, -inf }
 0x35d   : > { %1452 = vmax.xlane.f32.xlu0 %v1451_v52  ;;  %v1616_v53 = vpop.f32.mrb[12].mxu0 }
 0x35e   : > { %v1620_v54 = vmul.f32 0.17677669, %v1616_v53  ;;  %v5391_v55 = vpop.f32.mrb[13].mxu0 }
 0x360   : > { %v1621_v56 = vsel %vm941_vm2, %v1620_v54, -inf }
 0x361   : > { %1622 = vmax.xlane.f32.xlu1 %v1621_v56  ;;  %v1780_v57 = vpop.f32.mrb[14].mxu0 }
 0x362   : > { %v1784_v58 = vmul.f32 0.17677669, %v1780_v57  ;;  %v5401_v59 = vpop.f32.mrb[15].mxu0 }
 0x364   : > { %v1785_v60 = vsel %vm941_vm2, %v1784_v58, -inf }
 0x365   : > { %1786 = vmax.xlane.f32.xlu0 %v1785_v60  ;;  %v1952_v61 = vpop.f32.mrb[16].mxu0 }
 0x366   : > { %v1956_v62 = vmul.f32 0.17677669, %v1952_v61  ;;  %v5411_v63 = vpop.f32.mrb[17].mxu0 }
 0x368   : > { %v1957_v0 = vsel %vm941_vm2, %v1956_v62, -inf }
 0x369   : > { %1958 = vmax.xlane.f32.xlu1 %v1957_v0  ;;  %v2123_v1 = vpop.f32.mrb[18].mxu0 }
 0x36a   : > { %v2127_v2 = vmul.f32 0.17677669, %v2123_v1  ;;  %v5421_v3 = vpop.f32.mrb[19].mxu0 }
 0x36c   : > { %v2128_v4 = vsel %vm941_vm2, %v2127_v2, -inf }
 0x36d   : > { %2129 = vmax.xlane.f32.xlu0 %v2128_v4 }
 0x36e   : > { %v944_v5 = vpop.xlane.xlu0 %943 }
 0x36f   : > { %v945_v6 = vsub.f32 %v940_v28, %v944_v5 }
 0x371   : > { %v946_v7 = vmul.f32 1.442695, %v945_v6 }
 0x373   : > { %5960 = vpow2.f32 %v946_v7 }
 0x37a   : > { %1118 = vrot.lane.b32.xlu1 %v6883_v35, %s6370_s4 }
 0x37d   : > { %v5961_v9 = vpop.eup %5960 }
 0x37e   : > { %v948_v10 = vsel %vm941_vm2, %v5961_v9, 0.0 }
 0x39e   : > { %949 = vadd.xlane.f32.xlu1 %v948_v10 }
 0x3af   : > { %1462 = vrot.lane.b32.xlu1 %v6883_v35, %s6371_s13 }
 0x3e2   : > { %v1108_v11 = vpop.xlane.xlu1 %1107 }
 0x3e3   : > { %v1109_v12 = vsub.f32 %v1105_v41, %v1108_v11 }
 0x3e5   : > { %v1110_v13 = vmul.f32 1.442695, %v1109_v12 }
 0x3e6   : > { %v1281_v14 = vpop.xlane.xlu0 %1280 }
 0x3e7   : > { %5962 = vpow2.f32 %v1110_v13  ;;  %v1282_v15 = vsub.f32 %v1278_v46, %v1281_v14 }
 0x3e9   : > { %v1283_v16 = vmul.f32 1.442695, %v1282_v15 }
 0x3ea   : > { %v1453_v21 = vpop.xlane.xlu0 %1452 }
 0x3eb   : > { %5964 = vpow2.f32 %v1283_v16  ;;  %v1454_v22 = vsub.f32 %v1450_v50, %v1453_v21 }
 0x3ed   : > { %v1455_v26 = vmul.f32 1.442695, %v1454_v22  ;;  %v849_v22 = vld [vmem:[%s6749_s11 + $0x6c] sm:$0xf] }
 0x3ee   : > { %v1623_v23 = vpop.xlane.xlu1 %1622 }
 0x3ef   : > { %v1624_v25 = vsub.f32 %v1620_v54, %v1623_v23  ;;  %5966 = vpow2.f32 %v1455_v26 }
 0x3f1   : > { %v5963_v17 = vpop.eup %5962  ;;  %v1625_v30 = vmul.f32 1.442695, %v1624_v25 }
 0x3f2   : > { %v1112_v18 = vsel %vm941_vm2, %v5963_v17, 0.0  ;;  %v1787_v24 = vpop.xlane.xlu0 %1786 }
 0x3f3   : > { %1113 = vadd.xlane.f32.xlu0 %v1112_v18  ;;  %v1788_v27 = vsub.f32 %v1784_v58, %v1787_v24  ;;  %5968 = vpow2.f32 %v1625_v30  ;;  %v846_v18 = vld [vmem:[%s6749_s11 + $0xc] sm:$0xf] }
 0x3f4   : > { %v852_v30 = vld [vmem:[%s6749_s11 + $0xcc] sm:$0xf] }
 0x3f5   : > { %v6902_v19 = vpop.eup %5964  ;;  %v1789_v33 = vmul.f32 1.442695, %v1788_v27 }
 0x3f6   : > { %v1285_v20 = vsel %vm941_vm2, %v6902_v19, 0.0  ;;  %v1959_v28 = vpop.xlane.xlu1 %1958 }
 0x3f7   : > { %1286 = vadd.xlane.f32.xlu1 %v1285_v20  ;;  %v1960_v31 = vsub.f32 %v1956_v62, %v1959_v28  ;;  %5970 = vpow2.f32 %v1789_v33  ;;  %v848_v20 = vld [vmem:[%s6749_s11 + $0x4c] sm:$0xf] }
 0x3f8   : > { %v5010_v23 = vcombine.low %v848_v20, %v849_v22  ;;  %v850_v28 = vld [vmem:[%s6749_s11 + $0x8c] sm:$0xf]  ;;  %v2470_v20 = vld [vmem:[%s6749_s11 + $0x94] sm:$0xf]  ;;  %v2356_v22 = vld [vmem:[%s6749_s11 + $0x30] sm:$0xf] }
 0x3f9   : > { %v1961_v37 = vmul.f32 1.442695, %v1960_v31  ;;  %v853_v33 = vld [vmem:[%s6749_s11 + $0xec] sm:$0xf] }
 0x3fa   : > { %v2130_v29 = vpop.xlane.xlu0 %2129  ;;  %v1119_v41 = vpop.permute.xlu1 %1118 }
 0x3fb   : > { %v2131_v36 = vsub.f32 %v2127_v2, %v2130_v29  ;;  %5972 = vpow2.f32 %v1961_v37  ;;  %v851_v29 = vld [vmem:[%s6749_s11 + $0xac] sm:$0xf] }
 0x3fc   : > { %v5011_v31 = vcombine.low %v850_v28, %v851_v29  ;;  %v854_v37 = vld [vmem:[%s6749_s11 + $0x10c] sm:$0xf]  ;;  %v2475_v28 = vld [vmem:[%s6749_s11 + $0x134] sm:$0xf] }
 0x3fd   : > { %v2132_v39 = vmul.f32 1.442695, %v2131_v36  ;;  %v5012_v36 = vcombine.low %v852_v30, %v853_v33  ;;  %v2476_v30 = vld [vmem:[%s6749_s11 + $0x154] sm:$0xf] }
 0x3ff   : > { %5974 = vpow2.f32 %v2132_v39  ;;  %v855_v39 = vld [vmem:[%s6749_s11 + $0x12c] sm:$0xf] }
 0x408   : > { %1797 = vrot.lane.b32.xlu1 %v6885_v38, %s6370_s4 }
 0x409   : > { %1290 = vrot.lane.b32.xlu0 %v6883_v35, %s6369_s18  ;;  %v5967_v35 = vpop.eup %5966 }
 0x40a   : > { %v5969_v40 = vpop.eup %5968  ;;  %v1457_v43 = vsel %vm941_vm2, %v5967_v35, 0.0 }
 0x40b   : > { %v6911_v44 = vpop.eup %5970  ;;  %v1627_v47 = vsel %vm941_vm2, %v5969_v40, 0.0 }
 0x40c   : > { %v6913_v45 = vpop.eup %5972  ;;  %v1791_v48 = vsel %vm941_vm2, %v6911_v44, 0.0 }
 0x40d   : > { %v6918_v49 = vpop.eup %5974  ;;  %v1963_v50 = vsel %vm941_vm2, %v6913_v45, 0.0 }
 0x40e   : > { %v2134_v51 = vsel %vm941_vm2, %v6918_v49, 0.0 }
 0x428   : > { %1458 = vadd.xlane.f32.xlu0 %v1457_v43  ;;  %v857_v43 = vld [vmem:[%s6749_s11 + $0x16c] sm:$0xf] }
 0x42b   : > { %v950_v46 = vpop.xlane.xlu1 %949 }
 0x42c   : > { %5976 = vrcp.f32 %v950_v46  ;;  %1628 = vadd.xlane.f32.xlu1 %v1627_v47  ;;  %1792 = vadd.xlane.f32.xlu0 %v1791_v48  ;;  %v858_v47 = vld [vmem:[%s6749_s11 + $0x18c] sm:$0xf] }
 0x42d   : > { %v859_v48 = vld [vmem:[%s6749_s11 + $0x1ac] sm:$0xf] }
 0x42f   : > { %v1463_v54 = vpop.permute.xlu1 %1462 }
 0x430   : > { %1964 = vadd.xlane.f32.xlu1 %v1963_v50  ;;  %2135 = vadd.xlane.f32.xlu0 %v2134_v51  ;;  %v5015_v50 = vcombine.low %v858_v47, %v859_v48  ;;  %v860_v51 = vld [vmem:[%s6749_s11 + $0x1cc] sm:$0xf]  ;;  %v2480_v48 = vld [vmem:[%s6749_s11 + $0x1d4] sm:$0xf] }
 0x436   : > { %v5977_v52 = vpop.eup %5976 }
 0x437   : > { %v952_v53 = vmul.f32 %v5977_v52, %v5961_v9  ;;  %v861_v52 = vld [vmem:[%s6749_s11 + $0x1ec] sm:$0xf] }
 0x439   : > { %5355 = vmatmul.mubr.msk.f32.vlgmr.msra.gmra.mrb[4].mxu1 %vm941_vm2, %v952_v53  ;;  %v5016_v53 = vcombine.low %v860_v51, %v861_v52  ;;  %v2357_v51 = vld [vmem:[%s6749_s11 + $0x50] sm:$0xf] }
 0x43a   : > { %5363 = vmatpush3.msra.mxu1 %v1119_v41  ;;  %5364 = vmatprep.mubr.msk.f32.mxu1 %vm6368_vm0, %v6367_v42  ;;  %v856_v41 = vld [vmem:[%s6749_s11 + $0x14c] sm:$0xf]  ;;  %v2358_v52 = vld [vmem:[%s6749_s11 + $0x70] sm:$0xf] }
 0x43b   : > { %5372 = vmatprep.subr.mxu1 %v6367_v42 }
 0x441   : > { %2139 = vrot.lane.b32.xlu1 %v6885_v38, %s6371_s13 }
 0x446   : > { %1968 = vrot.lane.b32.xlu0 %v6885_v38, %s6369_s18 }
 0x480   : > { %v1114_v55 = vpop.xlane.xlu0 %1113 }
 0x481   : > { %5978 = vrcp.f32 %v1114_v55 }
 0x484   : > { %v1287_v56 = vpop.xlane.xlu1 %1286  ;;  %v1291_v59 = vpop.permute.xlu0 %1290 }
 0x485   : > { %5980 = vrcp.f32 %v1287_v56 }
 0x488   : > { %v1798_v62 = vpop.permute.xlu1 %1797 }
 0x48b   : > { %v5979_v57 = vpop.eup %5978 }
 0x48c   : > { %v1116_v58 = vmul.f32 %v5979_v57, %v5963_v17 }
 0x48e   : > { %5365 = vmatmul.mubr.msk.f32.vlgmr.msra.gmra.mrb[6].mxu1 %vm941_vm2, %v1116_v58 }
 0x48f   : > { %v5981_v60 = vpop.eup %5980  ;;  %5373 = vmatpush3.msra.mxu1 %v1291_v59  ;;  %5374 = vmatprep.mubr.msk.f32.mxu1 %vm6368_vm0, %v6367_v42 }
 0x490   : > { %v1289_v61 = vmul.f32 %v5981_v60, %v6902_v19  ;;  %5382 = vmatprep.subr.mxu1 %v6367_v42  ;;  %v847_v19 = vld [vmem:[%s6749_s11 + $0x2c] sm:$0xf] }
 0x491   : > { %v5009_v21 = vcombine.low %v846_v18, %v847_v19  ;;  %v2469_v18 = vld [vmem:[%s6749_s11 + $0x74] sm:$0xf] }
 0x492   : > { %5375 = vmatmul.mubr.msk.f32.vlgmr.msra.gmra.mrb[8].mxu1 %vm941_vm2, %v1289_v61 }
 0x493   : > { %5383 = vmatpush3.msra.mxu1 %v1463_v54  ;;  %5384 = vmatprep.mubr.msk.f32.mxu1 %vm6368_vm0, %v6367_v42 }
 0x494   : > { %5392 = vmatprep.subr.mxu1 %v6367_v42  ;;  %5428 = vmatpush3.bf16.msra.mxu0 %v5009_v21  ;;  %v2471_v21 = vld [vmem:[%s6749_s11 + $0xb4] sm:$0xf] }
 0x495   : > { %5429 = vmatprep.subr.bf16.mxu0 %v6367_v42 }
 0x498   : > { %5430 = vmatpush3.bf16.msra.mxu0 %v5010_v23 }
 0x499   : > { %5431 = vmatprep.subr.bf16.mxu0 %v6367_v42 }
 0x49c   : > { %5432 = vmatpush3.bf16.msra.mxu0 %v5011_v31  ;;  %v2477_v31 = vld [vmem:[%s6749_s11 + $0x174] sm:$0xf] }
 0x49d   : > { %5433 = vmatprep.subr.bf16.mxu0 %v6367_v42  ;;  %v5034_v33 = vcombine.low %v2476_v30, %v2477_v31  ;;  %v6036_v31 = vld [vmem:[#allocation7] sm:$0xff] }
 0x4a0   : > { %5434 = vmatpush3.bf16.msra.mxu0 %v5012_v36  ;;  %v2478_v36 = vld [vmem:[%s6749_s11 + $0x194] sm:$0xf] }
 0x4a1   : > { %5435 = vmatprep.subr.bf16.mxu0 %v6367_v42 }
 0x4b5   : > { %v1459_v63 = vpop.xlane.xlu0 %1458 }
 0x4b6   : > { %5982 = vrcp.f32 %v1459_v63 }
 0x4b9   : > { %v1629_v0 = vpop.xlane.xlu1 %1628  ;;  %v1793_v1 = vpop.xlane.xlu0 %1792 }
 0x4ba   : > { %5984 = vrcp.f32 %v1629_v0 }
 0x4bb   : > { %5986 = vrcp.f32 %v1793_v1 }
 0x4bd   : > { %v1965_v2 = vpop.xlane.xlu1 %1964  ;;  %v2136_v5 = vpop.xlane.xlu0 %2135 }
 0x4be   : > { %5988 = vrcp.f32 %v1965_v2 }
 0x4bf   : > { %5990 = vrcp.f32 %v2136_v5  ;;  %v5008_v5 = vld [vmem:[%s6762_s15 + $0x3] ss:$0 sm:$0xff] }
 0x4c0   : > { %v5983_v3 = vpop.eup %5982 }
 0x4c1   : > { %v1461_v4 = vmul.f32 %v5983_v3, %v5967_v35  ;;  %v1969_v12 = vpop.permute.xlu0 %1968  ;;  %v2140_v14 = vpop.permute.xlu1 %2139  ;;  %v5013_v35 = vcombine.low %v854_v37, %v855_v39  ;;  %v2479_v37 = vld [vmem:[%s6749_s11 + $0x1b4] sm:$0xf] }
 0x4c2   : > { %v5035_v39 = vcombine.low %v2478_v36, %v2479_v37  ;;  %v6037_v36 = vld [vmem:[#allocation7 + $0x8] sm:$0xff] }
 0x4c3   : > { %5385 = vmatmul.mubr.msk.f32.vlgmr.msra.gmra.mrb[10].mxu1 %vm941_vm2, %v1461_v4  ;;  %5436 = vmatpush3.bf16.msra.mxu0 %v5013_v35 }
 0x4c4   : > { %v5985_v6 = vpop.eup %5984  ;;  %5393 = vmatpush3.msra.mxu1 %v6885_v38  ;;  %5394 = vmatprep.mubr.msk.f32.mxu1 %vm6368_vm0, %v6367_v42 }
 0x4c5   : > { %v1631_v7 = vmul.f32 %v5985_v6, %v5969_v40  ;;  %5402 = vmatprep.subr.mxu1 %v6367_v42  ;;  %v5987_v9 = vpop.eup %5986  ;;  %5437 = vmatprep.subr.bf16.mxu0 %v6367_v42 }
 0x4c6   : > { %v1795_v10 = vmul.f32 %v5987_v9, %v6911_v44 }
 0x4c7   : > { %5395 = vmatmul.mubr.msk.f32.vlgmr.msra.gmra.mrb[12].mxu1 %vm941_vm2, %v1631_v7 }
 0x4c8   : > { %5403 = vmatpush3.msra.mxu1 %v1798_v62  ;;  %5404 = vmatprep.mubr.msk.f32.mxu1 %vm6368_vm0, %v6367_v42  ;;  %v5989_v11 = vpop.eup %5988 }
 0x4c9   : > { %5412 = vmatprep.subr.mxu1 %v6367_v42  ;;  %v1967_v38 = vmul.f32 %v5989_v11, %v6913_v45  ;;  %v5991_v13 = vpop.eup %5990  ;;  %v5014_v45 = vcombine.low %v856_v41, %v857_v43 }
 0x4ca   : > { %v2138_v15 = vmul.f32 %v5991_v13, %v6918_v49 }
 0x4cb   : > { %5405 = vmatmul.mubr.msk.f32.vlgmr.msra.gmra.mrb[14].mxu1 %vm941_vm2, %v1795_v10  ;;  %5438 = vmatpush3.bf16.msra.mxu0 %v5014_v45 }
 0x4cc   : > { %5413 = vmatpush3.msra.mxu1 %v1969_v12  ;;  %5414 = vmatprep.mubr.msk.f32.mxu1 %vm6368_vm0, %v6367_v42 }
 0x4cd   : > { %5422 = vmatprep.subr.mxu1 %v6367_v42  ;;  %5439 = vmatprep.subr.bf16.mxu0 %v6367_v42 }
 0x4cf   : > { %5415 = vmatmul.mubr.msk.f32.vlgmr.msra.gmra.mrb[16].mxu1 %vm941_vm2, %v1967_v38  ;;  %5440 = vmatpush3.bf16.msra.mxu0 %v5015_v50 }
 0x4d0   : > { %5423 = vmatpush3.msra.mxu1 %v2140_v14  ;;  %5424 = vmatprep.mubr.msk.f32.mxu1 %vm6368_vm0, %v6367_v42  ;;  %v2466_v14 = vld [vmem:[%s6749_s11 + $0x14] sm:$0xf] }
 0x4d1   : > { %5447 = vmatprep.subr.bf16.mxu1 %v6367_v42  ;;  %5441 = vmatprep.subr.bf16.mxu0 %v6367_v42 }
 0x4d3   : > { %5425 = vmatmul.mubr.msk.f32.vlgmr.msra.gmra.mrb[18].mxu1 %vm941_vm2, %v2138_v15  ;;  %5442 = vmatpush3.bf16.msra.mxu0 %v5016_v53  ;;  %v2467_v15 = vld [vmem:[%s6749_s11 + $0x34] sm:$0xf]  ;;  %v5021_v53 = vcombine.low %v2357_v51, %v2358_v52 }
 0x4d4   : > { %5463 = vmatprep.mubr.msk.bf16.mxu1 %vm6368_vm0, %v6367_v42  ;;  %5467 = vmatprep.subr.bf16.mxu0 %v6367_v42 }
 0x50c   : > { %v1022_v16 = vpop.f32.mrb[4].mxu1 }
 0x50d   : > { %1026 = vst.msk [vmem:[#allocation3] sm:$0xff] %vm863_vm1, %v1022_v16  ;;  %v5356_v17 = vpop.f32.mrb[5].mxu1  ;;  %v2468_v16 = vld [vmem:[%s6749_s11 + $0x54] sm:$0xf] }
 0x50e   : > { %v5029_v17 = vcombine.low %v2466_v14, %v2467_v15  ;;  %v5030_v19 = vcombine.low %v2468_v16, %v2469_v18  ;;  %v6372_v16 = vmov 0.0|0.0  }
 0x561   : > { %v1190_v24 = vpop.f32.mrb[6].mxu1 }
 0x562   : > { %1195 = vrot.lane.b32.xlu0 %v1190_v24, %s6371_s13  ;;  %v5366_v25 = vpop.f32.mrb[7].mxu1  ;;  %v2472_v24 = vld [vmem:[%s6749_s11 + $0xd4] sm:$0xf] }
 0x563   : > { %v2473_v25 = vld [vmem:[%s6749_s11 + $0xf4] sm:$0xf] }
 0x565   : > { %v1362_v26 = vpop.f32.mrb[8].mxu1 }
 0x566   : > { %1367 = vrot.lane.b32.xlu0 %v1362_v26, %s6369_s18  ;;  %v5376_v27 = vpop.f32.mrb[9].mxu1  ;;  %v5032_v26 = vcombine.low %v2472_v24, %v2473_v25 }
 0x567   : > { %v2474_v27 = vld [vmem:[%s6749_s11 + $0x114] sm:$0xf] }
 0x568   : > { %v5033_v29 = vcombine.low %v2474_v27, %v2475_v28 }
 0x596   : > { %v1534_v40 = vpop.f32.mrb[10].mxu1 }
 0x597   : > { %1539 = vrot.lane.b32.xlu0 %v1534_v40, %s6370_s4  ;;  %v5386_v44 = vpop.f32.mrb[11].mxu1 }
 0x59a   : > { %v1701_v46 = vpop.f32.mrb[12].mxu1 }
 0x59b   : > { %1705 = vst.msk [vmem:[#allocation3 + $0x8] sm:$0xff] %vm863_vm1, %v1701_v46  ;;  %v5396_v49 = vpop.f32.mrb[13].mxu1 }
 0x59c   : > { %v2481_v49 = vld [vmem:[%s6749_s11 + $0x1f4] sm:$0xf] }
 0x59d   : > { %v5036_v50 = vcombine.low %v2480_v48, %v2481_v49 }
 0x59e   : > { %v1869_v54 = vpop.f32.mrb[14].mxu1 }
 0x59f   : > { %1874 = vrot.lane.b32.xlu1 %v1869_v54, %s6371_s13  ;;  %v5406_v55 = vpop.f32.mrb[15].mxu1  ;;  %v563_v54 = vld [vmem:[#allocation9] sm:$0xff] }
 0x5a0   : > { %v564_v55 = vld [vmem:[#allocation9 + $0x8] sm:$0xff] }
 0x5a2   : > { %v2040_v56 = vpop.f32.mrb[16].mxu1 }
 0x5a3   : > { %2045 = vrot.lane.b32.xlu1 %v2040_v56, %s6369_s18  ;;  %v5416_v57 = vpop.f32.mrb[17].mxu1  ;;  %v2482_v56 = vpack.c.bf16 %v564_v55, %v563_v54 }
 0x5a4   : > { %v2359_v57 = vld [vmem:[%s6749_s11 + $0x90] sm:$0xf] }
 0x5a6   : > { %v2211_v58 = vpop.f32.mrb[18].mxu1 }
 0x5a7   : > { %2216 = vrot.lane.b32.xlu1 %v2211_v58, %s6370_s4  ;;  %v5426_v59 = vpop.f32.mrb[19].mxu1  ;;  %v2360_v58 = vld [vmem:[%s6749_s11 + $0xb0] sm:$0xf] }
 0x5a8   : > { %v5022_v59 = vcombine.low %v2359_v57, %v2360_v58 }
 0x5d4   : > { %v1196_v60 = vpop.permute.xlu0 %1195 }
 0x5d5   : > { %1199 = vst.msk [vmem:[#allocation3] sm:$0xff] %vm1198_vm3, %v1196_v60  ;;  %v2361_v60 = vld [vmem:[%s6749_s11 + $0xd0] sm:$0xf] }
 0x5d8   : > { %v1368_v61 = vpop.permute.xlu0 %1367 }
 0x5d9   : > { %1371 = vst.msk [vmem:[#allocation3] sm:$0xff] %vm1370_vm4, %v1368_v61  ;;  %v2362_v61 = vld [vmem:[%s6749_s11 + $0xf0] sm:$0xf] }
 0x609   : > { %v1540_v62 = vpop.permute.xlu0 %1539 }
 0x60a   : > { %1543 = vst.msk [vmem:[#allocation3] sm:$0xff] %vm1542_vm5, %v1540_v62  ;;  %v5023_v62 = vcombine.low %v2361_v60, %v2362_v61 }
 0x611   : > { %v1875_v63 = vpop.permute.xlu1 %1874  ;;  %v2220_v2 = vld [vmem:[#allocation3] sm:$0xff] }
 0x612   : > { %1877 = vst.msk [vmem:[#allocation3 + $0x8] sm:$0xff] %vm1198_vm3, %v1875_v63  ;;  %v2363_v63 = vld [vmem:[%s6749_s11 + $0x110] sm:$0xf] }
 0x615   : > { %v2046_v0 = vpop.permute.xlu1 %2045 }
 0x616   : > { %2048 = vst.msk [vmem:[#allocation3 + $0x8] sm:$0xff] %vm1370_vm4, %v2046_v0  ;;  %v2364_v0 = vld [vmem:[%s6749_s11 + $0x130] sm:$0xf] }
 0x619   : > { %v2217_v1 = vpop.permute.xlu1 %2216 }
 0x61a   : > { %2219 = vst.msk [vmem:[#allocation3 + $0x8] sm:$0xff] %vm1542_vm5, %v2217_v1  ;;  %v5024_v1 = vcombine.low %v2363_v63, %v2364_v0 }
 0x621   : > { %v2221_v3 = vld [vmem:[#allocation3 + $0x8] sm:$0xff] }
 0x622   : > { %v2222_v4 = vpack.c.bf16 %v2221_v3, %v2220_v2  ;;  %v565_v2 = vld [vmem:[#allocation9 + $0x10] sm:$0xff]  ;;  %v566_v3 = vld [vmem:[#allocation9 + $0x18] sm:$0xff] }
 0x624   : > { %5444 = vmatmul.mubr.bf16.vlgmr.msra.gmra.mrb[20].mxu0 %v2222_v4  ;;  %v2483_v4 = vpack.c.bf16 %v566_v3, %v565_v2  ;;  %v2594_v3 = vld [vmem:[%s6749_s11 + $0x18] sm:$0xf] }
 0x625   : > { %5483 = vmatprep.mubr.msk.bf16.mxu0 %vm6368_vm0, %v6367_v42  ;;  %5468 = vmatpush3.bf16.msra.mxu0 %v5029_v17 }
 0x626   : > { %5469 = vmatprep.subr.bf16.mxu0 %v6367_v42 }
 0x629   : > { %5470 = vmatpush3.bf16.msra.mxu0 %v5030_v19 }
 0x62a   : > { %5471 = vmatprep.subr.bf16.mxu0 %v6367_v42 }
 0x6f7   : > { %v2309_v6 = vpop.f32.mrb[20].mxu0 }
 0x6f8   : > { %v2310_v7 = vadd.f32 %v5008_v5, %v2309_v6  ;;  %v5445_v9 = vpop.f32.mrb[21].mxu0  ;;  %v2366_v6 = vld [vmem:[%s6749_s11 + $0x170] sm:$0xf] }
 0x6f9   : > { %v2312_v10 = vpop.f32.mrb[22].mxu0  ;;  %v2367_v9 = vld [vmem:[%s6749_s11 + $0x190] sm:$0xf] }
 0x6fa   : > { %v2313_v11 = vadd.f32 %v5008_v5, %v2312_v10  ;;  %v5446_v12 = vpop.f32.mrb[23].mxu0  ;;  %v2316_v38 = vadd.f32 %v2310_v7, %v6787_v32  ;;  %v2355_v32 = vld [vmem:[%s6749_s11 + $0x10] sm:$0xf] }
 0x6fb   : > { %v5020_v23 = vcombine.low %v2355_v32, %v2356_v22  ;;  %v2365_v5 = vld [vmem:[%s6749_s11 + $0x150] sm:$0xf] }
 0x6fc   : > { %2318 = vadd.xlane.f32.xlu0 %v2316_v38  ;;  %v2317_v13 = vadd.f32 %v2313_v11, %v6789_v34  ;;  %v5031_v34 = vcombine.low %v2470_v20, %v2471_v21  ;;  %v5025_v7 = vcombine.low %v2365_v5, %v2366_v6  ;;  %v2368_v10 = vld [vmem:[%s6749_s11 + $0x1b0] sm:$0xf]  ;;  %v2596_v6 = vld [vmem:[%s6749_s11 + $0x58] sm:$0xf] }
 0x6fd   : > { %5448 = vmatpush3.bf16.msra.mxu1 %v5020_v23  ;;  %v567_v11 = vld [vmem:[#allocation9 + $0x20] sm:$0x3]  ;;  %v5026_v12 = vcombine.low %v2367_v9, %v2368_v10  ;;  %v5017_v23 = vld [vmem:[%s6762_s15 + $0x9] ss:$0 sm:$0xff] }
 0x6fe   : > { %2320 = vadd.xlane.f32.xlu1 %v2317_v13  ;;  %5449 = vmatprep.subr.bf16.mxu1 %v6367_v42  ;;  %v2484_v14 = vpack.c.bf16 %v567_v11, %v567_v11  ;;  %v2598_v10 = vld [vmem:[%s6749_s11 + $0x98] sm:$0xf] }
 0x6ff   : > { %5472 = vmatpush3.bf16.msra.mxu0 %v5031_v34  ;;  %v2599_v11 = vld [vmem:[%s6749_s11 + $0xb8] sm:$0xf] }
 0x700   : > { %5473 = vmatprep.subr.bf16.mxu0 %v6367_v42 }
 0x701   : > { %5450 = vmatpush3.bf16.msra.mxu1 %v5021_v53 }
 0x702   : > { %5451 = vmatprep.subr.bf16.mxu1 %v6367_v42 }
 0x703   : > { %5474 = vmatpush3.bf16.msra.mxu0 %v5032_v26  ;;  %v5018_v26 = vld [vmem:[%s6762_s15 + $0xa] ss:$0 sm:$0xff] }
 0x704   : > { %5475 = vmatprep.subr.bf16.mxu0 %v6367_v42 }
 0x705   : > { %5452 = vmatpush3.bf16.msra.mxu1 %v5022_v59 }
 0x706   : > { %5453 = vmatprep.subr.bf16.mxu1 %v6367_v42 }
 0x707   : > { %5476 = vmatpush3.bf16.msra.mxu0 %v5033_v29 }
 0x708   : > { %5477 = vmatprep.subr.bf16.mxu0 %v6367_v42 }
 0x709   : > { %5454 = vmatpush3.bf16.msra.mxu1 %v5023_v62 }
 0x70a   : > { %5455 = vmatprep.subr.bf16.mxu1 %v6367_v42 }
 0x70b   : > { %5478 = vmatpush3.bf16.msra.mxu0 %v5034_v33 }
 0x70c   : > { %5479 = vmatprep.subr.bf16.mxu0 %v6367_v42 }
 0x70d   : > { %5456 = vmatpush3.bf16.msra.mxu1 %v5024_v1 }
 0x70e   : > { %5457 = vmatprep.subr.bf16.mxu1 %v6367_v42 }
 0x70f   : > { %5480 = vmatpush3.bf16.msra.mxu0 %v5035_v39 }
 0x710   : > { %5481 = vmatprep.subr.bf16.mxu0 %v6367_v42 }
 0x711   : > { %5458 = vmatpush3.bf16.msra.mxu1 %v5025_v7  ;;  %v2597_v7 = vld [vmem:[%s6749_s11 + $0x78] sm:$0xf] }
 0x712   : > { %5459 = vmatprep.subr.bf16.mxu1 %v6367_v42  ;;  %v5039_v9 = vcombine.low %v2596_v6, %v2597_v7 }
 0x713   : > { %5482 = vmatpush3.bf16.msra.mxu0 %v5036_v50 }
 0x714   : > { %5687 = vmatprep.subr.bf16.mxu0 %v6372_v16 }
 0x715   : > { %5460 = vmatpush3.bf16.msra.mxu1 %v5026_v12  ;;  %v5040_v12 = vcombine.low %v2598_v10, %v2599_v11 }
 0x716   : > { %5484 = vmatmul.mubr.bf16.vlgmr.msra.gmra.mrb[24].mxu0 %v2482_v56  ;;  %5461 = vmatprep.subr.bf16.mxu1 %v6367_v42 }
 0x717   : > { %5487 = vmatprep.mubr.msk.bf16.mxu0 %vm6368_vm0, %v6367_v42 }
 0x71e   : > { %5488 = vmatmul.mubr.bf16.gmra.mrb[28].mxu0 %v2483_v4  ;;  %v2595_v4 = vld [vmem:[%s6749_s11 + $0x38] sm:$0xf] }
 0x71f   : > { %5491 = vmatprep.mubr.msk.bf16.mxu0 %vm6368_vm0, %v6367_v42  ;;  %v5038_v5 = vcombine.low %v2594_v3, %v2595_v4 }
 0x726   : > { %5492 = vmatmul.mubr.bf16.gmra.mrb[32].mxu0 %v2484_v14 }
 0x727   : > { %5529 = vmatprep.mubr.msk.f32.mxu0 %vm6368_vm0, %v6367_v42 }
 0x789   : > { %v2319_v35 = vpop.xlane.xlu0 %2318 }
 0x78a   : > { %v2323_v40 = vmul.f32 0.0078125, %v2319_v35  ;;  %v5028_v35 = vld [vmem:[%s6762_s15 + $0x5] ss:$0 sm:$0xff] }
 0x78b   : > { %v2321_v41 = vpop.xlane.xlu1 %2320 }
 0x78c   : > { %v7031_v43 = vsub.f32 %v2316_v38, %v2323_v40  ;;  %v2324_v44 = vmul.f32 0.0078125, %v2321_v41  ;;  %v2369_v38 = vld [vmem:[%s6749_s11 + $0x1d0] sm:$0xf] }
 0x78e   : > { %v7033_v45 = vsub.f32 %v2317_v13, %v2324_v44  ;;  %v2327_v46 = vmul.f32 %v7031_v43, %v7031_v43  ;;  %v2370_v13 = vld [vmem:[%s6749_s11 + $0x1f0] sm:$0xf] }
 0x78f   : > { %v5027_v15 = vcombine.low %v2369_v38, %v2370_v13 }
 0x790   : > { %2329 = vadd.xlane.f32.xlu0 %v2327_v46  ;;  %v2328_v47 = vmul.f32 %v7033_v45, %v7033_v45 }
 0x791   : > { %5462 = vmatpush3.bf16.msra.mxu1 %v5027_v15  ;;  %v5019_v15 = vld [vmem:[%s6762_s15 + $0x4] ss:$0 sm:$0xff] }
 0x792   : > { %5495 = vmatprep.subr.bf16.mxu1 %v6367_v42 }
 0x794   : > { %2331 = vadd.xlane.f32.xlu0 %v2328_v47 }
 0x7e9   : > { %v2572_v40 = vpop.f32.mrb[24].mxu0 }
 0x7ea   : > { %v2573_v41 = vadd.f32 %v5028_v35, %v2572_v40  ;;  %v2608_v40 = vld [vmem:[%s6749_s11 + $0x1d8] sm:$0xf] }
 0x81d   : > { %v2330_v17 = vpop.xlane.xlu0 %2329 }
 0x81e   : > { %v2333_v18 = vmul.f32 0.0078125, %v2330_v17  ;;  %v2600_v17 = vld [vmem:[%s6749_s11 + $0xd8] sm:$0xf] }
 0x820   : > { %v2335_v19 = vadd.f32 1e-05, %v2333_v18  ;;  %v2601_v18 = vld [vmem:[%s6749_s11 + $0xf8] sm:$0xf] }
 0x821   : > { %v2332_v20 = vpop.xlane.xlu0 %2331 }
 0x822   : > { %5992 = vrsqrt.f32 %v2335_v19  ;;  %v2334_v21 = vmul.f32 0.0078125, %v2332_v20 }
 0x824   : > { %v2336_v32 = vadd.f32 1e-05, %v2334_v21  ;;  %v5041_v21 = vcombine.low %v2600_v17, %v2601_v18 }
 0x826   : > { %5994 = vrsqrt.f32 %v2336_v32 }
 0x82c   : > { %v5993_v22 = vpop.eup %5992 }
 0x82d   : > { %v2339_v34 = vmul.f32 %v5993_v22, %v7031_v43  ;;  %v5485_v43 = vpop.f32.mrb[25].mxu0 }
 0x82e   : > { %v2575_v44 = vpop.f32.mrb[26].mxu0 }
 0x82f   : > { %v2345_v24 = vmul.f32 %v5017_v23, %v2339_v34  ;;  %v5486_v46 = vpop.f32.mrb[27].mxu0  ;;  %v2602_v34 = vld [vmem:[%s6749_s11 + $0x118] sm:$0xf] }
 0x830   : > { %v5995_v25 = vpop.eup %5994  ;;  %v2580_v50 = vpop.f32.mrb[28].mxu0 }
 0x831   : > { %v2340_v27 = vmul.f32 %v5995_v25, %v7033_v45  ;;  %v7073_v29 = vadd.f32 %v5018_v26, %v2345_v24  ;;  %v2576_v45 = vadd.f32 %v5028_v35, %v2575_v44  ;;  %v7097_v51 = vadd.f32 %v5028_v35, %v2580_v50  ;;  %v5489_v52 = vpop.f32.mrb[29].mxu0  ;;  %v2603_v24 = vld [vmem:[%s6749_s11 + $0x138] sm:$0xf]  ;;  %v571_v50 = vld [vmem:[#allocation10 + $0x18] sm:$0xff] }
 0x832   : > { %v2583_v53 = vpop.f32.mrb[30].mxu0  ;;  %v568_v44 = vld [vmem:[#allocation10] sm:$0xff] }
 0x833   : > { %v2346_v28 = vmul.f32 %v5017_v23, %v2340_v27  ;;  %v2353_v33 = vadd.f32 %v6036_v31, %v7073_v29  ;;  %v5688_v48 = vpack.c.bf16 %v2576_v45, %v2573_v41  ;;  %v7088_v49 = vpack.i.bf16 %v2576_v45, %v2573_v41  ;;  %2918 = vrot.lane.b32.xlu0 %v7097_v51, %s6370_s4  ;;  %v5490_v55 = vpop.f32.mrb[31].mxu0  ;;  %v2605_v31 = vld [vmem:[%s6749_s11 + $0x178] sm:$0xf]  ;;  %v569_v45 = vld [vmem:[#allocation10 + $0x8] sm:$0xff] }
 0x834   : > { %v2584_v54 = vadd.f32 %v5028_v35, %v2583_v53  ;;  %v2588_v56 = vpop.f32.mrb[32].mxu0  ;;  %v3475_v57 = vrot.slane %v7097_v51, 1  ;;  %v5042_v27 = vcombine.low %v2602_v34, %v2603_v24  ;;  %v2609_v41 = vld [vmem:[%s6749_s11 + $0x1f8] sm:$0xf]  ;;  %v2610_v46 = vpack.c.bf16 %v569_v45, %v568_v44 }
 0x835   : > { %v7075_v30 = vadd.f32 %v5018_v26, %v2346_v28  ;;  %5861 = vrot.lane.b32.xlu1 %v7088_v49, %s6370_s4  ;;  %5690 = vmatpush3.bf16.xpose.msk.msra.mxu0 %vm7084_vm6, %v5688_v48  ;;  %v2589_v59 = vadd.f32 %v5028_v35, %v2588_v56  ;;  %v5493_v60 = vpop.f32.mrb[33].mxu0  ;;  %v2604_v28 = vld [vmem:[%s6749_s11 + $0x158] sm:$0xf]  ;;  %v5045_v43 = vcombine.low %v2608_v40, %v2609_v41  ;;  %v570_v48 = vld [vmem:[#allocation10 + $0x10] sm:$0xff] }
 0x836   : > { %5527 = vmatprep.subr.mxu0 %v6367_v42  ;;  %v3476_v58 = vrot.slane %v2584_v54, 1  ;;  %v2591_v61 = vpop.f32.mrb[34].mxu0  ;;  %v2611_v52 = vpack.c.bf16 %v571_v50, %v570_v48  ;;  %v572_v53 = vld [vmem:[#allocation10 + $0x20] sm:$0x3] }
 0x837   : > { %v2354_v37 = vadd.f32 %v6037_v36, %v7075_v30  ;;  %3106 = vrot.lane.b32.xlu0 %v7097_v51, %s6369_s18  ;;  %v7107_v62 = vrot.slane %v2589_v59, 1  ;;  %v5494_v63 = vpop.f32.mrb[35].mxu0  ;;  %v2606_v36 = vld [vmem:[%s6749_s11 + $0x198] sm:$0xf]  ;;  %v2612_v54 = vpack.c.bf16 %v572_v53, %v572_v53 }
 0x838   : > { %v7110_v0 = vsel %vm3474_vm7, %v3475_v57, %v3476_v58 }
 0x839   : > { %v2371_v39 = vpack.c.bf16 %v2354_v37, %v2353_v33  ;;  %5866 = vrot.lane.b32.xlu1 %v7088_v49, %s6369_s18  ;;  %v7114_v1 = vsel %vm3474_vm7, %v3476_v58, %v7107_v62  ;;  %v5043_v33 = vcombine.low %v2604_v28, %v2605_v31  ;;  %v2607_v37 = vld [vmem:[%s6749_s11 + $0x1b8] sm:$0xf] }
 0x83a   : > { %v7118_v2 = vpack.i.bf16 %v7114_v1, %v7110_v0 }
 0x83b   : > { %5464 = vmatmul.mubr.bf16.vlgmr.msra.gmra.mrb[20].mxu1 %v2371_v39  ;;  %v5044_v39 = vcombine.low %v2606_v36, %v2607_v37 }
 0x83c   : > { %5511 = vmatprep.mubr.msk.bf16.mxu1 %vm6368_vm0, %v6367_v42  ;;  %5496 = vmatpush3.bf16.msra.mxu1 %v5038_v5 }
 0x83d   : > { %5528 = vmatpush3.xpose.msk.msra.mxu0 %vm863_vm1, %v7097_v51  ;;  %5497 = vmatprep.subr.bf16.mxu1 %v6367_v42 }
 0x83e   : > { %5694 = vmatprep.subr.bf16.mxu0 %v6372_v16 }
 0x840   : > { %5498 = vmatpush3.bf16.msra.mxu1 %v5039_v9  ;;  %v5037_v9 = vld [vmem:[%s6762_s15 + $0x6] ss:$0 sm:$0xff] }
 0x841   : > { %5499 = vmatprep.subr.bf16.mxu1 %v6367_v42 }
 0x844   : > { %5500 = vmatpush3.bf16.msra.mxu1 %v5040_v12 }
 0x845   : > { %5501 = vmatprep.subr.bf16.mxu1 %v6367_v42 }
 0x848   : > { %5502 = vmatpush3.bf16.msra.mxu1 %v5041_v21 }
 0x849   : > { %5503 = vmatprep.subr.bf16.mxu1 %v6367_v42 }
 0x84c   : > { %5504 = vmatpush3.bf16.msra.mxu1 %v5042_v27 }
 0x84d   : > { %5505 = vmatprep.subr.bf16.mxu1 %v6367_v42 }
 0x850   : > { %5506 = vmatpush3.bf16.msra.mxu1 %v5043_v33 }
 0x851   : > { %5507 = vmatprep.subr.bf16.mxu1 %v6367_v42 }
 0x854   : > { %5508 = vmatpush3.bf16.msra.mxu1 %v5044_v39 }
 0x855   : > { %5509 = vmatprep.subr.bf16.mxu1 %v6367_v42 }
 0x858   : > { %5510 = vmatpush3.bf16.msra.mxu1 %v5045_v43 }
 0x859   : > { %5691 = vmatprep.subr.bf16.mxu1 %v6372_v16 }
 0x85b   : > { %5512 = vmatmul.mubr.bf16.vlgmr.msra.gmra.mrb[24].mxu1 %v2610_v46 }
 0x85c   : > { %5515 = vmatprep.mubr.msk.bf16.mxu1 %vm6368_vm0, %v6367_v42 }
 0x863   : > { %5516 = vmatmul.mubr.bf16.gmra.mrb[28].mxu1 %v2611_v52 }
 0x864   : > { %5519 = vmatprep.mubr.msk.bf16.mxu1 %vm6368_vm0, %v6367_v42 }
 0x86b   : > { %5520 = vmatmul.mubr.bf16.gmra.mrb[32].mxu1 %v2612_v54 }
 0x86c   : > { %5538 = vmatprep.mubr.msk.f32.mxu1 %vm6368_vm0, %v6367_v42 }
 0x8a5   : > { %v2919_v35 = vpop.permute.xlu0 %2918 }
 0x8a7   : > { %v5862_v38 = vpop.permute.xlu1 %5861 }
 0x8a8   : > { %v5864_v13 = vunpack.i.h.bf16 %v5862_v38  ;;  %v5863_v14 = vunpack.i.l.bf16 %v5862_v38 }
 0x8a9   : > { %v3107_v60 = vpop.permute.xlu0 %3106 }
 0x8aa   : > { %v5695_v20 = vpack.c.bf16 %v5864_v13, %v5863_v14 }
 0x8ab   : > { %v5867_v55 = vpop.permute.xlu1 %5866 }
 0x8ac   : > { %v5869_v56 = vunpack.i.h.bf16 %v5867_v55  ;;  %v5868_v57 = vunpack.i.l.bf16 %v5867_v55 }
 0x8ae   : > { %v5702_v58 = vpack.c.bf16 %v5869_v56, %v5868_v57 }
 0x90e   : > { %v2459_v19 = vpop.f32.mrb[20].mxu1 }
 0x90f   : > { %v7132_v32 = vadd.f32 %v5019_v15, %v2459_v19  ;;  %v5465_v22 = vpop.f32.mrb[21].mxu1 }
 0x910   : > { %v2462_v23 = vpop.f32.mrb[22].mxu1 }
 0x911   : > { %v7136_v25 = vadd.f32 %v5019_v15, %v2462_v23  ;;  %v5466_v26 = vpop.f32.mrb[23].mxu1  ;;  %2912 = vrot.lane.b32.xlu1 %v7132_v32, %s6370_s4  ;;  %5530 = vmatmul.mubr.msk.f32.vlgmr.msra.gmra.mrb[36].mxu0 %vm863_vm1, %v7132_v32 }
 0x912   : > { %5697 = vmatpush3.bf16.xpose.msk.msra.mxu0 %vm7084_vm6, %v5695_v20  ;;  %5547 = vmatprep.mubr.msk.f32.mxu0 %vm6368_vm0, %v6367_v42 }
 0x913   : > { %5545 = vmatprep.subr.mxu0 %v6367_v42 }
 0x915   : > { %3100 = vrot.lane.b32.xlu1 %v7132_v32, %s6369_s18 }
 0x91a   : > { %5546 = vmatpush3.xpose.msk.msra.mxu0 %vm863_vm1, %v2919_v35 }
 0x91b   : > { %5701 = vmatprep.subr.bf16.mxu0 %v6372_v16 }
 0x92e   : > { %v2700_v4 = vpop.f32.mrb[24].mxu1 }
 0x92f   : > { %v5513_v5 = vpop.f32.mrb[25].mxu1  ;;  %v2701_v10 = vadd.f32 %v5037_v9, %v2700_v4 }
 0x930   : > { %v2703_v6 = vpop.f32.mrb[26].mxu1 }
 0x931   : > { %v5514_v7 = vpop.f32.mrb[27].mxu1  ;;  %v2704_v11 = vadd.f32 %v5037_v9, %v2703_v6 }
 0x933   : > { %v5692_v12 = vpack.c.bf16 %v2704_v11, %v2701_v10  ;;  %v7199_v41 = vpack.i.bf16 %v2704_v11, %v2701_v10 }
 0x935   : > { %5693 = vmatpush3.bf16.msra.mxu1 %v5692_v12 }
 0x936   : > { %5536 = vmatprep.subr.mxu1 %v6367_v42  ;;  %v2708_v38 = vpop.f32.mrb[28].mxu1 }
 0x937   : > { %v7183_v13 = vadd.f32 %v5037_v9, %v2708_v38  ;;  %v5517_v14 = vpop.f32.mrb[29].mxu1 }
 0x938   : > { %v2711_v15 = vpop.f32.mrb[30].mxu1 }
 0x939   : > { %v5518_v17 = vpop.f32.mrb[31].mxu1  ;;  %5537 = vmatpush3.msk.msra.mxu1 %vm2837_vm8, %v7183_v13  ;;  %3202 = vrot.lane.b32.xlu1 %v7183_v13, %s6369_s18  ;;  %v2712_v34 = vadd.f32 %v5037_v9, %v2711_v15  ;;  %v3573_v26 = vrot.slane %v7183_v13, 1 }
 0x93a   : > { %5698 = vmatprep.subr.bf16.mxu1 %v6372_v16 }
 0x93b   : > { %v3574_v27 = vrot.slane %v2712_v34, 1 }
 0x93d   : > { %v3575_v33 = vsel %vm3474_vm7, %v3573_v26, %v3574_v27 }
 0x93e   : > { %v2716_v18 = vpop.f32.mrb[32].mxu1 }
 0x93f   : > { %v5521_v19 = vpop.f32.mrb[33].mxu1  ;;  %v2717_v24 = vadd.f32 %v5037_v9, %v2716_v18 }
 0x940   : > { %v2719_v20 = vpop.f32.mrb[34].mxu1 }
 0x941   : > { %v5522_v21 = vpop.f32.mrb[35].mxu1  ;;  %v7191_v28 = vrot.slane %v2717_v24, 1 }
 0x943   : > { %v3577_v39 = vsel %vm3474_vm7, %v3574_v27, %v7191_v28 }
 0x944   : > { %v7197_v40 = vpack.i.bf16 %v3577_v39, %v3575_v33  ;;  %v5720_v6 = vpack.c.bf16 %v3577_v39, %v3575_v33 }
 0x983   : > { %v2913_v59 = vpop.permute.xlu1 %2912 }
 0x984   : > { %5548 = vmatmul.mubr.msk.f32.vlgmr.msra.gmra.mrb[38].mxu0 %vm863_vm1, %v2913_v59 }
 0x985   : > { %5704 = vmatpush3.bf16.xpose.msk.msra.mxu0 %vm7084_vm6, %v5702_v58  ;;  %5565 = vmatprep.mubr.msk.f32.mxu0 %vm6368_vm0, %v6367_v42 }
 0x986   : > { %5563 = vmatprep.subr.mxu0 %v6367_v42 }
 0x987   : > { %v3101_v61 = vpop.permute.xlu1 %3100 }
 0x98d   : > { %5564 = vmatpush3.xpose.msk.msra.mxu0 %vm863_vm1, %v3107_v60 }
 0x98e   : > { %5705 = vmatprep.subr.bf16.mxu0 %v6372_v16 }
 0x990   : > { %5566 = vmatmul.mubr.msk.f32.vlgmr.msra.gmra.mrb[40].mxu0 %vm863_vm1, %v3101_v61 }
 0x991   : > { %5574 = vmatprep.mubr.msk.f32.mxu0 %vm6368_vm0, %v6367_v42 }
 0x9ab   : > { %v3203_v55 = vpop.permute.xlu1 %3202 }
 0x9e4   : > { %v7179_v63 = vpop.f32.mrb[36].mxu0 }
 0x9e5   : > { %v5531_v3 = vpop.f32.mrb[37].mxu0  ;;  %v2821_v56 = vmul.f32 0.17677669, %v7179_v63 }
 0x9e7   : > { %v2823_v57 = vsel %vm2822_vm9, %v2821_v56, -inf }
 0xa57   : > { %v2994_v22 = vpop.f32.mrb[38].mxu0 }
 0xa58   : > { %v5549_v23 = vpop.f32.mrb[39].mxu0  ;;  %v7207_v43 = vmul.f32 0.17677669, %v2994_v22 }
 0xa5a   : > { %v2999_v44 = vsel %vm2822_vm9, %v7207_v43, -inf }
 0xa63   : > { %v3182_v31 = vpop.f32.mrb[40].mxu0 }
 0xa64   : > { %v3186_v36 = vmul.f32 0.17677669, %v3182_v31  ;;  %v5567_v37 = vpop.f32.mrb[41].mxu0 }
 0xa66   : > { %v3187_v35 = vsel %vm2822_vm9, %v3186_v36, -inf }
 0xa67   : > { %3188 = vmax.xlane.f32.xlu0 %v3187_v35 }
 0xa7d   : > { %5871 = vrot.lane.b32.xlu0 %v7199_v41, %s6369_s18 }
 0xa81   : > { %5876 = vrot.lane.b32.xlu0 %v7088_v49, %s6371_s13 }
 0xa85   : > { %3286 = vrot.lane.b32.xlu0 %v7132_v32, %s6371_s13 }
 0xaa4   : > { %3000 = vmax.xlane.f32.xlu0 %v2999_v44 }
 0xaf4   : > { %v3189_v45 = vpop.xlane.xlu0 %3188 }
 0xaf5   : > { %v3190_v46 = vsub.f32 %v3186_v36, %v3189_v45 }
 0xaf7   : > { %v3191_v48 = vmul.f32 1.442695, %v3190_v46 }
 0xaf8   : > { %v5872_v50 = vpop.permute.xlu0 %5871 }
 0xaf9   : > { %5996 = vpow2.f32 %v3191_v48  ;;  %v5874_v52 = vunpack.i.h.bf16 %v5872_v50  ;;  %v5873_v53 = vunpack.i.l.bf16 %v5872_v50 }
 0xafb   : > { %v5706_v54 = vpack.c.bf16 %v5874_v52, %v5873_v53 }
 0xafc   : > { %v5877_v59 = vpop.permute.xlu0 %5876 }
 0xafd   : > { %5707 = vmatpush3.bf16.msra.mxu0 %v5706_v54  ;;  %v5879_v60 = vunpack.i.h.bf16 %v5877_v59  ;;  %v5878_v61 = vunpack.i.l.bf16 %v5877_v59 }
 0xafe   : > { %5572 = vmatprep.subr.mxu0 %v6367_v42 }
 0xaff   : > { %v5709_v5 = vpack.c.bf16 %v5879_v60, %v5878_v61 }
 0xb00   : > { %v3287_v63 = vpop.permute.xlu0 %3286 }
 0xb01   : > { %5573 = vmatpush3.msk.msra.mxu0 %vm2837_vm8, %v3203_v55 }
 0xb02   : > { %5708 = vmatprep.subr.bf16.mxu0 %v6372_v16 }
 0xb03   : > { %v5997_v49 = vpop.eup %5996 }
 0xb04   : > { %v3193_v32 = vsel %vm2822_vm9, %v5997_v49, 0.0 }
 0xb05   : > { %3194 = vadd.xlane.f32.xlu1 %v3193_v32 }
 0xb16   : > { %3292 = vrot.lane.b32.xlu1 %v7097_v51, %s6371_s13 }
 0xb31   : > { %v3001_v14 = vpop.xlane.xlu0 %3000 }
 0xb32   : > { %v3002_v17 = vsub.f32 %v7207_v43, %v3001_v14 }
 0xb34   : > { %v3003_v21 = vmul.f32 1.442695, %v3002_v17 }
 0xb3a   : > { %2824 = vmax.xlane.f32.xlu1 %v2823_v57 }
 0xb92   : > { %v3195_v58 = vpop.xlane.xlu1 %3194 }
 0xb93   : > { %5998 = vrcp.f32 %v3195_v58 }
 0xb96   : > { %v3293_v51 = vpop.permute.xlu1 %3292 }
 0xb9d   : > { %v5999_v3 = vpop.eup %5998 }
 0xb9e   : > { %v3197_v4 = vmul.f32 %v5999_v3, %v5997_v49 }
 0xba0   : > { %5575 = vmatmul.mubr.msk.f32.vlgmr.msra.gmra.mrb[42].mxu0 %vm2822_vm9, %v3197_v4 }
 0xba1   : > { %5711 = vmatpush3.bf16.xpose.msk.msra.mxu0 %vm7084_vm6, %v5709_v5  ;;  %5583 = vmatprep.mubr.msk.f32.mxu0 %vm6368_vm0, %v6367_v42 }
 0xba2   : > { %5581 = vmatprep.subr.mxu0 %v6367_v42 }
 0xba9   : > { %5582 = vmatpush3.xpose.msk.msra.mxu0 %vm863_vm1, %v3293_v51 }
 0xbaa   : > { %5719 = vmatprep.subr.bf16.mxu0 %v6372_v16 }
 0xbac   : > { %5584 = vmatmul.mubr.msk.f32.vlgmr.msra.gmra.mrb[44].mxu0 %vm863_vm1, %v3287_v63 }
 0xbad   : > { %5721 = vmatpush3.bf16.msra.mxu0 %v5720_v6  ;;  %5610 = vmatprep.mubr.msk.f32.mxu0 %vm6368_vm0, %v6367_v42 }
 0xbae   : > { %5608 = vmatprep.subr.mxu0 %v6367_v42 }
 0xbb1   : > { %5609 = vmatpush3.msk.msra.mxu0 %vm2837_vm8, %v7191_v28 }
 0xbb2   : > { %5722 = vmatprep.subr.bf16.mxu0 %v6372_v16 }
 0xbc7   : > { %v2825_v7 = vpop.xlane.xlu1 %2824 }
 0xbc8   : > { %v2826_v9 = vsub.f32 %v2821_v56, %v2825_v7 }
 0xbca   : > { %v2827_v10 = vmul.f32 1.442695, %v2826_v9 }
 0xbcc   : > { %6000 = vpow2.f32 %v2827_v10 }
 0xbd6   : > { %v6001_v11 = vpop.eup %6000 }
 0xbd7   : > { %v2829_v12 = vsel %vm2822_vm9, %v6001_v11, 0.0 }
 0xbd8   : > { %2830 = vadd.xlane.f32.xlu1 %v2829_v12 }
 0xbe9   : > { %3016 = vrot.lane.b32.xlu1 %v7183_v13, %s6370_s4 }
 0xc65   : > { %v2831_v38 = vpop.xlane.xlu1 %2830 }
 0xc66   : > { %6002 = vrcp.f32 %v2831_v38 }
 0xc67   : > { %6004 = vpow2.f32 %v3003_v21 }
 0xc69   : > { %v3017_v48 = vpop.permute.xlu1 %3016 }
 0xc70   : > { %v6003_v15 = vpop.eup %6002 }
 0xc71   : > { %v2833_v18 = vmul.f32 %v6003_v15, %v6001_v11  ;;  %v6005_v26 = vpop.eup %6004 }
 0xc72   : > { %v3005_v27 = vsel %vm2822_vm9, %v6005_v26, 0.0 }
 0xc73   : > { %5539 = vmatmul.mubr.msk.f32.vlgmr.msra.gmra.mrb[36].mxu1 %vm2822_vm9, %v2833_v18  ;;  %v7239_v19 = vpop.f32.mrb[42].mxu0 }
 0xc74   : > { %v5576_v20 = vpop.f32.mrb[43].mxu0  ;;  %5556 = vmatprep.mubr.msk.f32.mxu1 %vm6368_vm0, %v6367_v42 }
 0xc7f   : > { %v3368_v22 = vpop.f32.mrb[44].mxu0 }
 0xc80   : > { %v3372_v23 = vmul.f32 0.17677669, %v3368_v22  ;;  %v5585_v34 = vpop.f32.mrb[45].mxu0 }
 0xc82   : > { %v3373_v24 = vsel %vm2822_vm9, %v3372_v23, -inf }
 0xc83   : > { %3374 = vmax.xlane.f32.xlu0 %v3373_v24 }
 0xc87   : > { %3006 = vadd.xlane.f32.xlu0 %v3005_v27 }
 0xc9d   : > { %5881 = vrot.lane.b32.xlu0 %v7199_v41, %s6370_s4 }
 0xca1   : > { %3388 = vrot.lane.b32.xlu0 %v7183_v13, %s6371_s13 }
 0xd10   : > { %v3375_v31 = vpop.xlane.xlu0 %3374 }
 0xd11   : > { %v3376_v33 = vsub.f32 %v3372_v23, %v3375_v31 }
 0xd13   : > { %v3377_v36 = vmul.f32 1.442695, %v3376_v33 }
 0xd14   : > { %v3007_v37 = vpop.xlane.xlu0 %3006 }
 0xd15   : > { %6006 = vpow2.f32 %v3377_v36 }
 0xd16   : > { %6008 = vrcp.f32 %v3007_v37 }
 0xd18   : > { %v5882_v39 = vpop.permute.xlu0 %5881 }
 0xd19   : > { %v5884_v35 = vunpack.i.h.bf16 %v5882_v39  ;;  %v5883_v43 = vunpack.i.l.bf16 %v5882_v39 }
 0xd1b   : > { %v5699_v44 = vpack.c.bf16 %v5884_v35, %v5883_v43 }
 0xd1c   : > { %v3389_v58 = vpop.permute.xlu0 %3388 }
 0xd1d   : > { %5700 = vmatpush3.bf16.msra.mxu1 %v5699_v44 }
 0xd1e   : > { %5554 = vmatprep.subr.mxu1 %v6367_v42 }
 0xd1f   : > { %v6007_v45 = vpop.eup %6006 }
 0xd20   : > { %v6009_v46 = vpop.eup %6008  ;;  %v3379_v50 = vsel %vm2822_vm9, %v6007_v45, 0.0 }
 0xd21   : > { %v3009_v52 = vmul.f32 %v6009_v46, %v6005_v26  ;;  %3380 = vadd.xlane.f32.xlu1 %v3379_v50  ;;  %5555 = vmatpush3.msk.msra.mxu1 %vm2837_vm8, %v3017_v48 }
 0xd22   : > { %5712 = vmatprep.subr.bf16.mxu1 %v6372_v16 }
 0xd23   : > { %5557 = vmatmul.mubr.msk.f32.vlgmr.msra.gmra.mrb[38].mxu1 %vm2822_vm9, %v3009_v52 }
 0xd24   : > { %5592 = vmatprep.mubr.msk.f32.mxu1 %vm6368_vm0, %v6367_v42 }
 0xd32   : > { %5886 = vrot.lane.b32.xlu1 %v7199_v41, %s6371_s13  ;;  %v5716_v41 = vpack.c.bf16 %v7114_v1, %v7110_v0 }
 0xd46   : > { %v2907_v13 = vpop.f32.mrb[36].mxu1 }
 0xd47   : > { %2911 = vst.msk [vmem:[#allocation3] sm:$0xff] %vm863_vm1, %v2907_v13  ;;  %v5540_v53 = vpop.f32.mrb[37].mxu1 }
 0xdae   : > { %v3381_v54 = vpop.xlane.xlu1 %3380 }
 0xdaf   : > { %6010 = vrcp.f32 %v3381_v54 }
 0xdb2   : > { %v5887_v55 = vpop.permute.xlu1 %5886 }
 0xdb3   : > { %v5889_v49 = vunpack.i.h.bf16 %v5887_v55  ;;  %v5888_v32 = vunpack.i.l.bf16 %v5887_v55 }
 0xdb5   : > { %v5713_v56 = vpack.c.bf16 %v5889_v49, %v5888_v32 }
 0xdb7   : > { %5714 = vmatpush3.bf16.msra.mxu1 %v5713_v56 }
 0xdb8   : > { %5590 = vmatprep.subr.mxu1 %v6367_v42 }
 0xdb9   : > { %v6011_v57 = vpop.eup %6010 }
 0xdba   : > { %v3383_v59 = vmul.f32 %v6011_v57, %v6007_v45 }
 0xdbb   : > { %5591 = vmatpush3.msk.msra.mxu1 %vm2837_vm8, %v3389_v58 }
 0xdbc   : > { %5593 = vmatmul.mubr.msk.f32.vlgmr.msra.gmra.mrb[40].mxu1 %vm2822_vm9, %v3383_v59  ;;  %5715 = vmatprep.subr.bf16.mxu1 %v6372_v16 }
 0xdbd   : > { %5601 = vmatprep.mubr.msk.f32.mxu1 %vm6368_vm0, %v6367_v42 }
 0xdc2   : > { %5718 = vmatpush3.bf16.xpose.msk.msra.mxu1 %vm7084_vm6, %v5716_v41 }
 0xdc3   : > { %5599 = vmatprep.subr.mxu1 %v6367_v42 }
 0xdca   : > { %5600 = vmatpush3.xpose.msk.msra.mxu1 %vm863_vm1, %v7107_v62 }
 0xdcb   : > { %5726 = vmatprep.subr.bf16.mxu1 %v6372_v16 }
 0xdcd   : > { %5602 = vmatmul.mubr.msk.f32.vlgmr.msra.gmra.mrb[42].mxu1 %vm863_vm1, %v7136_v25 }
 0xdce   : > { %5628 = vmatprep.mubr.msk.f32.mxu1 %vm6368_vm0, %v6367_v42 }
 0xdf6   : > { %v7277_v60 = vpop.f32.mrb[38].mxu1 }
 0xdf7   : > { %v5558_v61 = vpop.f32.mrb[39].mxu1 }
 0xe8f   : > { %v7279_v0 = vpop.f32.mrb[40].mxu1 }
 0xe90   : > { %v5594_v1 = vpop.f32.mrb[41].mxu1 }
 0xea0   : > { %v3555_v3 = vpop.f32.mrb[42].mxu1 }
 0xea1   : > { %v3559_v4 = vmul.f32 0.17677669, %v3555_v3  ;;  %v5603_v5 = vpop.f32.mrb[43].mxu1 }
 0xea3   : > { %v3560_v51 = vsel %vm2822_vm9, %v3559_v4, -inf }
 0xea4   : > { %3561 = vmax.xlane.f32.xlu1 %v3560_v51 }
 0xeb5   : > { %3662 = vrot.lane.b32.xlu1 %v7107_v62, %s6370_s4 }
 0xeb9   : > { %3656 = vrot.lane.b32.xlu1 %v7136_v25, %s6370_s4 }
 0xebd   : > { %3758 = vrot.lane.b32.xlu1 %v7191_v28, %s6370_s4 }
 0xf31   : > { %v3562_v63 = vpop.xlane.xlu1 %3561 }
 0xf32   : > { %v3563_v6 = vsub.f32 %v3559_v4, %v3562_v63 }
 0xf34   : > { %v3564_v7 = vmul.f32 1.442695, %v3563_v6 }
 0xf35   : > { %v3663_v20 = vpop.permute.xlu1 %3662 }
 0xf36   : > { %6012 = vpow2.f32 %v3564_v7 }
 0xf39   : > { %v3657_v21 = vpop.permute.xlu1 %3656 }
 0xf3d   : > { %v3759_v44 = vpop.permute.xlu1 %3758 }
 0xf40   : > { %v6013_v9 = vpop.eup %6012 }
 0xf41   : > { %v3566_v10 = vsel %vm2822_vm9, %v6013_v9, 0.0 }
 0xf42   : > { %3567 = vadd.xlane.f32.xlu0 %v3566_v10 }
 0xf58   : > { %5891 = vrot.lane.b32.xlu0 %v7118_v2, %s6370_s4 }
 0xfcf   : > { %v3568_v11 = vpop.xlane.xlu0 %3567 }
 0xfd0   : > { %6014 = vrcp.f32 %v3568_v11 }
 0xfd3   : > { %v5892_v12 = vpop.permute.xlu0 %5891 }
 0xfd4   : > { %v5894_v38 = vunpack.i.h.bf16 %v5892_v12  ;;  %v5893_v14 = vunpack.i.l.bf16 %v5892_v12 }
 0xfd6   : > { %v5723_v18 = vpack.c.bf16 %v5894_v38, %v5893_v14 }
 0xfda   : > { %v6015_v15 = vpop.eup %6014 }
 0xfdb   : > { %v3570_v17 = vmul.f32 %v6015_v15, %v6013_v9 }
 0xfdd   : > { %5611 = vmatmul.mubr.msk.f32.vlgmr.msra.gmra.mrb[46].mxu0 %vm2822_vm9, %v3570_v17 }
 0xfde   : > { %5725 = vmatpush3.bf16.xpose.msk.msra.mxu0 %vm7084_vm6, %v5723_v18  ;;  %5619 = vmatprep.mubr.msk.f32.mxu0 %vm6368_vm0, %v6367_v42 }
 0xfdf   : > { %5617 = vmatprep.subr.mxu0 %v6367_v42 }
 0xfe6   : > { %5618 = vmatpush3.xpose.msk.msra.mxu0 %vm863_vm1, %v3663_v20 }
 0xfe7   : > { %5733 = vmatprep.subr.bf16.mxu0 %v6372_v16 }
 0xfe9   : > { %5620 = vmatmul.mubr.msk.f32.vlgmr.msra.gmra.mrb[48].mxu0 %vm863_vm1, %v3657_v21 }
 0xfea   : > { %5646 = vmatprep.mubr.msk.f32.mxu0 %vm6368_vm0, %v6367_v42 }
0x10b0   : > { %v3651_v22 = vpop.f32.mrb[46].mxu0 }
0x10b1   : > { %3655 = vst.msk [vmem:[#allocation3 + $0x8] sm:$0xff] %vm863_vm1, %v3651_v22  ;;  %v5612_v23 = vpop.f32.mrb[47].mxu0 }
0x10bc   : > { %v3738_v34 = vpop.f32.mrb[48].mxu0 }
0x10bd   : > { %v3742_v24 = vmul.f32 0.17677669, %v3738_v34  ;;  %v5621_v26 = vpop.f32.mrb[49].mxu0 }
0x10bf   : > { %v3743_v27 = vsel %vm2822_vm9, %v3742_v24, -inf }
0x10c0   : > { %3744 = vmax.xlane.f32.xlu0 %v3743_v27 }
0x10d6   : > { %5896 = vrot.lane.b32.xlu0 %v7197_v40, %s6370_s4 }
0x10da   : > { %5901 = vrot.lane.b32.xlu0 %v7118_v2, %s6369_s18 }
0x10de   : > { %3842 = vrot.lane.b32.xlu0 %v7136_v25, %s6369_s18 }
0x114d   : > { %v3745_v31 = vpop.xlane.xlu0 %3744 }
0x114e   : > { %v3746_v33 = vsub.f32 %v3742_v24, %v3745_v31 }
0x1150   : > { %v3747_v36 = vmul.f32 1.442695, %v3746_v33 }
0x1151   : > { %v5897_v37 = vpop.permute.xlu0 %5896 }
0x1152   : > { %6016 = vpow2.f32 %v3747_v36  ;;  %v5899_v39 = vunpack.i.h.bf16 %v5897_v37  ;;  %v5898_v35 = vunpack.i.l.bf16 %v5897_v37 }
0x1154   : > { %v5727_v43 = vpack.c.bf16 %v5899_v39, %v5898_v35 }
0x1155   : > { %v5902_v50 = vpop.permute.xlu0 %5901 }
0x1156   : > { %5728 = vmatpush3.bf16.msra.mxu1 %v5727_v43  ;;  %v5904_v52 = vunpack.i.h.bf16 %v5902_v50  ;;  %v5903_v13 = vunpack.i.l.bf16 %v5902_v50  ;;  %v2725_v50 = vld [vmem:[%s6749_s11 + $0x7c] sm:$0xf] }
0x1157   : > { %5626 = vmatprep.subr.mxu1 %v6367_v42 }
0x1158   : > { %v5730_v55 = vpack.c.bf16 %v5904_v52, %v5903_v13  ;;  %v2726_v13 = vld [vmem:[%s6749_s11 + $0x9c] sm:$0xf] }
0x1159   : > { %v3843_v32 = vpop.permute.xlu0 %3842 }
0x115a   : > { %5627 = vmatpush3.msk.msra.mxu1 %vm2837_vm8, %v3759_v44  ;;  %v2722_v44 = vld [vmem:[%s6749_s11 + $0x1c] sm:$0xf] }
0x115b   : > { %5729 = vmatprep.subr.bf16.mxu1 %v6372_v16 }
0x115c   : > { %v6017_v45 = vpop.eup %6016 }
0x115d   : > { %v3749_v46 = vsel %vm2822_vm9, %v6017_v45, 0.0 }
0x115e   : > { %3750 = vadd.xlane.f32.xlu1 %v3749_v46  ;;  %v2724_v46 = vld [vmem:[%s6749_s11 + $0x5c] sm:$0xf] }
0x115f   : > { %v5096_v52 = vcombine.low %v2724_v46, %v2725_v50  ;;  %v5947_v46 = vld [vmem:[%s6766_s27 + $0x8] sm:$0xff]   ;;  %v5949_v50 = vld [vmem:[%s6766_s27 + $0x10] sm:$0xff]  }
0x116f   : > { %3848 = vrot.lane.b32.xlu1 %v7107_v62, %s6369_s18 }
0x11eb   : > { %v3751_v48 = vpop.xlane.xlu1 %3750 }
0x11ec   : > { %6018 = vrcp.f32 %v3751_v48 }
0x11ef   : > { %v3849_v49 = vpop.permute.xlu1 %3848 }
0x11f6   : > { %v6019_v53 = vpop.eup %6018 }
0x11f7   : > { %v3753_v54 = vmul.f32 %v6019_v53, %v6017_v45  ;;  %v2723_v45 = vld [vmem:[%s6749_s11 + $0x3c] sm:$0xf] }
0x11f8   : > { %v5095_v48 = vcombine.low %v2722_v44, %v2723_v45  ;;  %v2727_v53 = vld [vmem:[%s6749_s11 + $0xbc] sm:$0xf]  ;;  %v5945_v44 = vld [vmem:[%s6766_s27] sm:$0xff]   ;;  %v5946_v45 = vld [vmem:[%s6766_s27 + $0x48] sm:$0xff]  }
0x11f9   : > { %5629 = vmatmul.mubr.msk.f32.vlgmr.msra.gmra.mrb[44].mxu1 %vm2822_vm9, %v3753_v54  ;;  %v5097_v54 = vcombine.low %v2726_v13, %v2727_v53  ;;  %v5951_v13 = vld [vmem:[%s6766_s27 + $0x18] sm:$0xff]   ;;  %v5952_v53 = vld [vmem:[%s6766_s27 + $0x60] sm:$0xff]  }
0x11fa   : > { %5732 = vmatpush3.bf16.xpose.msk.msra.mxu1 %vm7084_vm6, %v5730_v55  ;;  %5637 = vmatprep.mubr.msk.f32.mxu1 %vm6368_vm0, %v6367_v42  ;;  %v2728_v55 = vld [vmem:[%s6749_s11 + $0xdc] sm:$0xf] }
0x11fb   : > { %5635 = vmatprep.subr.mxu1 %v6367_v42 }
0x1202   : > { %5636 = vmatpush3.xpose.msk.msra.mxu1 %vm863_vm1, %v3849_v49  ;;  %v2729_v49 = vld [vmem:[%s6749_s11 + $0xfc] sm:$0xf] }
0x1203   : > { %5740 = vmatprep.subr.bf16.mxu1 %v6372_v16 }
0x1205   : > { %5638 = vmatmul.mubr.msk.f32.vlgmr.msra.gmra.mrb[46].mxu1 %vm863_vm1, %v3843_v32  ;;  %v5098_v32 = vcombine.low %v2728_v55, %v2729_v49  ;;  %v5954_v55 = vld [vmem:[%s6766_s27 + $0x68] sm:$0xff]  }
0x1206   : > { %5664 = vmatprep.mubr.msk.f32.mxu1 %vm6368_vm0, %v6367_v42 }
0x12cc   : > { %v7327_v56 = vpop.f32.mrb[44].mxu1 }
0x12cd   : > { %v5630_v57 = vpop.f32.mrb[45].mxu1 }
0x12ce   : > { %v2731_v57 = vld [vmem:[%s6749_s11 + $0x13c] sm:$0xf] }
0x12d8   : > { %v3924_v58 = vpop.f32.mrb[46].mxu1 }
0x12d9   : > { %v3928_v59 = vmul.f32 0.17677669, %v3924_v58  ;;  %v5639_v41 = vpop.f32.mrb[47].mxu1 }
0x12da   : > { %v2733_v41 = vld [vmem:[%s6749_s11 + $0x17c] sm:$0xf] }
0x12db   : > { %v3929_v61 = vsel %vm2822_vm9, %v3928_v59, -inf }
0x12dc   : > { %3930 = vmax.xlane.f32.xlu1 %v3929_v61 }
0x12ed   : > { %3944 = vrot.lane.b32.xlu1 %v7191_v28, %s6369_s18 }
0x12f1   : > { %5911 = vrot.lane.b32.xlu1 %v7118_v2, %s6371_s13 }
0x12f5   : > { %4028 = vrot.lane.b32.xlu1 %v7136_v25, %s6371_s13 }
0x1369   : > { %v3931_v1 = vpop.xlane.xlu1 %3930 }
0x136a   : > { %v3932_v3 = vsub.f32 %v3928_v59, %v3931_v1  ;;  %v2732_v59 = vld [vmem:[%s6749_s11 + $0x15c] sm:$0xf] }
0x136b   : > { %v5100_v61 = vcombine.low %v2732_v59, %v2733_v41  ;;  %v2734_v1 = vld [vmem:[%s6749_s11 + $0x19c] sm:$0xf] }
0x136c   : > { %v3933_v4 = vmul.f32 1.442695, %v3932_v3  ;;  %v2735_v3 = vld [vmem:[%s6749_s11 + $0x1bc] sm:$0xf] }
0x136d   : > { %v3945_v6 = vpop.permute.xlu1 %3944 }
0x136e   : > { %6020 = vpow2.f32 %v3933_v4  ;;  %v2736_v4 = vld [vmem:[%s6749_s11 + $0x1dc] sm:$0xf] }
0x1371   : > { %v5912_v11 = vpop.permute.xlu1 %5911 }
0x1372   : > { %v5914_v38 = vunpack.i.h.bf16 %v5912_v11  ;;  %v5913_v14 = vunpack.i.l.bf16 %v5912_v11  ;;  %v5094_v11 = vld [vmem:[%s6762_s15 + $0x7] ss:$0 sm:$0xff] }
0x1375   : > { %v4029_v17 = vpop.permute.xlu1 %4028 }
0x1378   : > { %v6021_v5 = vpop.eup %6020 }
0x1379   : > { %v3935_v51 = vsel %vm2822_vm9, %v6021_v5, 0.0 }
0x137a   : > { %3936 = vadd.xlane.f32.xlu0 %v3935_v51  ;;  %v2737_v51 = vld [vmem:[%s6749_s11 + $0x1fc] sm:$0xf] }
0x1390   : > { %5906 = vrot.lane.b32.xlu0 %v7197_v40, %s6369_s18 }
0x1394   : > { %4034 = vrot.lane.b32.xlu0 %v7107_v62, %s6371_s13  ;;  %v5737_v62 = vpack.c.bf16 %v5914_v38, %v5913_v14 }
0x1407   : > { %v3937_v63 = vpop.xlane.xlu0 %3936 }
0x1408   : > { %6022 = vrcp.f32 %v3937_v63  ;;  %v5102_v63 = vcombine.low %v2736_v4, %v2737_v51  ;;  %v5104_v51 = vld [vmem:[%s6762_s15 + $0xc] ss:$0 sm:$0xff] }
0x140b   : > { %v5907_v2 = vpop.permute.xlu0 %5906 }
0x140c   : > { %v5909_v7 = vunpack.i.h.bf16 %v5907_v2  ;;  %v5908_v25 = vunpack.i.l.bf16 %v5907_v2 }
0x140e   : > { %v5734_v9 = vpack.c.bf16 %v5909_v7, %v5908_v25 }
0x140f   : > { %v4035_v15 = vpop.permute.xlu0 %4034 }
0x1410   : > { %5735 = vmatpush3.bf16.msra.mxu0 %v5734_v9 }
0x1411   : > { %5644 = vmatprep.subr.mxu0 %v6367_v42 }
0x1412   : > { %v6023_v10 = vpop.eup %6022 }
0x1413   : > { %v3939_v12 = vmul.f32 %v6023_v10, %v6021_v5  ;;  %v5101_v5 = vcombine.low %v2734_v1, %v2735_v3  ;;  %v5103_v1 = vld [vmem:[%s6762_s15 + $0xb] ss:$0 sm:$0xff] }
0x1414   : > { %5645 = vmatpush3.msk.msra.mxu0 %vm2837_vm8, %v3945_v6 }
0x1415   : > { %5647 = vmatmul.mubr.msk.f32.vlgmr.msra.gmra.mrb[50].mxu0 %vm2822_vm9, %v3939_v12  ;;  %5736 = vmatprep.subr.bf16.mxu0 %v6372_v16 }
0x1416   : > { %5655 = vmatprep.mubr.msk.f32.mxu0 %vm6368_vm0, %v6367_v42 }
0x141b   : > { %5739 = vmatpush3.bf16.xpose.msk.msra.mxu0 %vm7084_vm6, %v5737_v62 }
0x141c   : > { %5653 = vmatprep.subr.mxu0 %v6367_v42 }
0x1423   : > { %5654 = vmatpush3.xpose.msk.msra.mxu0 %vm863_vm1, %v4035_v15 }
0x1426   : > { %5656 = vmatmul.mubr.msk.f32.vlgmr.msra.gmra.mrb[52].mxu0 %vm863_vm1, %v4029_v17 }
0x1427   : > { %4487 = vmatprep.mubr.bf16.mxu0 %v6366_v8 }
0x14e8   : > { %v4019_v18 = vpop.f32.mrb[50].mxu0 }
0x14e9   : > { %v5648_v20 = vpop.f32.mrb[51].mxu0 }
0x14ea   : > { %v5920_v20 = vld [vmem:[%s6764_s23] ss:$8 sps:$4 sm:$0xff]  }
0x14f9   : > { %v4110_v16 = vpop.f32.mrb[52].mxu0 }
0x14fa   : > { %v4114_v21 = vmul.f32 0.17677669, %v4110_v16  ;;  %v5657_v22 = vpop.f32.mrb[53].mxu0  ;;  %v5922_v16 = vld [vmem:[%s6764_s23 + $0x4] ss:$8 sps:$4 sm:$0xff]  }
0x14fb   : > { %4455 = vmatprep.subr.bf16.mxu0 %v5922_v16  ;;  %v5923_v22 = vld [vmem:[%s6764_s23 + $0x10] ss:$8 sps:$4 sm:$0xff]  }
0x14fc   : > { %v4115_v23 = vsel %vm2822_vm9, %v4114_v21, -inf  ;;  %4456 = vmatpush1.bf16.msra.mxu0 %v5920_v20 }
0x14fd   : > { %4116 = vmax.xlane.f32.xlu0 %v4115_v23 }
0x1513   : > { %5916 = vrot.lane.b32.xlu0 %v7197_v40, %s6371_s13 }
0x1517   : > { %3096 = vrot.lane.b32.xlu0 %v7277_v60, %s6371_s13 }
0x151b   : > { %3282 = vrot.lane.b32.xlu0 %v7239_v19, %s6369_s18 }
0x151f   : > { %3468 = vrot.lane.b32.xlu0 %v7279_v0, %s6370_s4 }
0x158a   : > { %v4117_v8 = vpop.xlane.xlu0 %4116 }
0x158b   : > { %v4118_v47 = vsub.f32 %v4114_v21, %v4117_v8  ;;  %v5925_v21 = vld [vmem:[%s6764_s23 + $0x14] ss:$8 sps:$4 sm:$0xff]  }
0x158c   : > { %4457 = vmatprep.subr.bf16.mxu0 %v5925_v21 }
0x158d   : > { %v4119_v34 = vmul.f32 1.442695, %v4118_v47  ;;  %4458 = vmatpush1.bf16.msra.mxu0 %v5923_v22 }
0x158e   : > { %v5917_v24 = vpop.permute.xlu0 %5916 }
0x158f   : > { %6024 = vpow2.f32 %v4119_v34  ;;  %v5919_v26 = vunpack.i.h.bf16 %v5917_v24  ;;  %v5918_v27 = vunpack.i.l.bf16 %v5917_v24 }
0x1591   : > { %v5741_v31 = vpack.c.bf16 %v5919_v26, %v5918_v27  ;;  %v5928_v27 = vld [vmem:[%s6764_s23 + $0x24] ss:$8 sps:$4 sm:$0xff]  }
0x1592   : > { %v3097_v33 = vpop.permute.xlu0 %3096  ;;  %4459 = vmatprep.subr.bf16.mxu0 %v5928_v27 }
0x1593   : > { %3099 = vst.msk [vmem:[#allocation3] sm:$0xff] %vm1198_vm3, %v3097_v33  ;;  %5742 = vmatpush3.bf16.msra.mxu1 %v5741_v31  ;;  %v5926_v31 = vld [vmem:[%s6764_s23 + $0x20] ss:$8 sps:$4 sm:$0xff]   ;;  %v5931_v33 = vld [vmem:[%s6764_s23 + $0x34] ss:$8 sps:$4 sm:$0xff]  }
0x1594   : > { %5662 = vmatprep.subr.mxu1 %v6367_v42  ;;  %4460 = vmatpush1.bf16.msra.mxu0 %v5926_v31 }
0x1595   : > { %4461 = vmatprep.subr.bf16.mxu0 %v5931_v33 }
0x1596   : > { %v3283_v40 = vpop.permute.xlu0 %3282 }
0x1597   : > { %3285 = vst.msk [vmem:[#allocation3] sm:$0xff] %vm1370_vm4, %v3283_v40  ;;  %v5929_v40 = vld [vmem:[%s6764_s23 + $0x30] ss:$8 sps:$4 sm:$0xff]  }
0x1598   : > { %4462 = vmatpush1.bf16.msra.mxu0 %v5929_v40  ;;  %v5121_v40 = vld [vmem:[%s6762_s15 + $0x8] ss:$0 sm:$0xff] }
0x1599   : > { %v6025_v19 = vpop.eup %6024 }
0x159a   : > { %v3469_v60 = vpop.permute.xlu0 %3468  ;;  %v4121_v0 = vsel %vm2822_vm9, %v6025_v19, 0.0 }
0x159b   : > { %3471 = vst.msk [vmem:[#allocation3] sm:$0xff] %vm1542_vm5, %v3469_v60  ;;  %4122 = vadd.xlane.f32.xlu1 %v4121_v0  ;;  %v5932_v60 = vld [vmem:[%s6764_s23 + $0x40] ss:$8 sps:$4 sm:$0xff]   ;;  %v5937_v0 = vld [vmem:[%s6764_s23 + $0x54] ss:$8 sps:$4 sm:$0xff]  }
0x15a2   : > { %v4214_v25 = vld [vmem:[#allocation3] sm:$0xff] }
0x15ac   : > { %4130 = vrot.lane.b32.xlu1 %v7191_v28, %s6371_s13 }
0x15b0   : > { %3838 = vrot.lane.b32.xlu1 %v7327_v56, %s6371_s13  ;;  %v2730_v56 = vld [vmem:[%s6749_s11 + $0x11c] sm:$0xf] }
0x15b1   : > { %v5099_v58 = vcombine.low %v2730_v56, %v2731_v57 }
0x15b4   : > { %4024 = vrot.lane.b32.xlu1 %v4019_v18, %s6369_s18 }
0x1628   : > { %v4123_v36 = vpop.xlane.xlu1 %4122 }
0x1629   : > { %6026 = vrcp.f32 %v4123_v36  ;;  %v5935_v36 = vld [vmem:[%s6764_s23 + $0x50] ss:$8 sps:$4 sm:$0xff]  }
0x162c   : > { %v4131_v37 = vpop.permute.xlu1 %4130 }
0x162d   : > { %5663 = vmatpush3.msk.msra.mxu1 %vm2837_vm8, %v4131_v37  ;;  %v5940_v37 = vld [vmem:[%s6764_s23 + $0x64] ss:$8 sps:$4 sm:$0xff]  }
0x162e   : > { %5667 = vmatprep.subr.bf16.mxu1 %v6367_v42 }
0x1630   : > { %v3839_v39 = vpop.permute.xlu1 %3838 }
0x1631   : > { %3841 = vst.msk [vmem:[#allocation3 + $0x8] sm:$0xff] %vm1198_vm3, %v3839_v39  ;;  %v5938_v39 = vld [vmem:[%s6764_s23 + $0x60] ss:$8 sps:$4 sm:$0xff]  }
0x1633   : > { %v6027_v28 = vpop.eup %6026 }
0x1634   : > { %v4125_v35 = vmul.f32 %v6027_v28, %v6025_v19  ;;  %v4025_v43 = vpop.permute.xlu1 %4024  ;;  %v5934_v19 = vld [vmem:[%s6764_s23 + $0x44] ss:$8 sps:$4 sm:$0xff]   ;;  %v5943_v28 = vld [vmem:[%s6764_s23 + $0x74] ss:$8 sps:$4 sm:$0xff]  }
0x1635   : > { %4027 = vst.msk [vmem:[#allocation3 + $0x8] sm:$0xff] %vm1370_vm4, %v4025_v43  ;;  %4463 = vmatprep.subr.bf16.mxu0 %v5934_v19  ;;  %v5944_v43 = vld [vmem:[%s6766_s27 + $0x40] sm:$0xff]  }
0x1636   : > { %5665 = vmatmul.mubr.msk.f32.vlgmr.msra.gmra.mrb[48].mxu1 %vm2822_vm9, %v4125_v35  ;;  %4464 = vmatpush1.bf16.msra.mxu0 %v5932_v60  ;;  %v5941_v35 = vld [vmem:[%s6764_s23 + $0x70] ss:$8 sps:$4 sm:$0xff]  }
0x1637   : > { %5683 = vmatprep.mubr.msk.bf16.mxu1 %vm6368_vm0, %v6367_v42  ;;  %5668 = vmatpush3.bf16.msra.mxu1 %v5095_v48  ;;  %v5948_v48 = vld [vmem:[%s6766_s27 + $0x50] sm:$0xff]  }
0x1638   : > { %5669 = vmatprep.subr.bf16.mxu1 %v6367_v42  ;;  %4465 = vmatprep.subr.bf16.mxu0 %v5937_v0 }
0x163a   : > { %4466 = vmatpush1.bf16.msra.mxu0 %v5935_v36 }
0x163b   : > { %5670 = vmatpush3.bf16.msra.mxu1 %v5096_v52  ;;  %4467 = vmatprep.subr.bf16.mxu0 %v5940_v37  ;;  %v5950_v52 = vld [vmem:[%s6766_s27 + $0x58] sm:$0xff]  }
0x163c   : > { %5671 = vmatprep.subr.bf16.mxu1 %v6367_v42 }
0x163e   : > { %4468 = vmatpush1.bf16.msra.mxu0 %v5938_v39 }
0x163f   : > { %5672 = vmatpush3.bf16.msra.mxu1 %v5097_v54  ;;  %4469 = vmatprep.subr.bf16.mxu0 %v5943_v28  ;;  %v5953_v54 = vld [vmem:[%s6766_s27 + $0x20] sm:$0xff]  }
0x1640   : > { %5673 = vmatprep.subr.bf16.mxu1 %v6367_v42 }
0x1642   : > { %4470 = vmatpush1.bf16.msra.mxu0 %v5941_v35 }
0x1643   : > { %5674 = vmatpush3.bf16.msra.mxu1 %v5098_v32 }
0x1644   : > { %5675 = vmatprep.subr.bf16.mxu1 %v6367_v42 }
0x1647   : > { %5676 = vmatpush3.bf16.msra.mxu1 %v5099_v58 }
0x1648   : > { %5677 = vmatprep.subr.bf16.mxu1 %v6367_v42 }
0x164b   : > { %5678 = vmatpush3.bf16.msra.mxu1 %v5100_v61 }
0x164c   : > { %5679 = vmatprep.subr.bf16.mxu1 %v6367_v42 }
0x164f   : > { %5680 = vmatpush3.bf16.msra.mxu1 %v5101_v5 }
0x1650   : > { %5681 = vmatprep.subr.bf16.mxu1 %v6367_v42 }
0x1653   : > { %5682 = vmatpush3.bf16.msra.mxu1 %v5102_v63 }
0x1654   : > { %5305 = vmatprep.subr.bf16.mxu1 %v5944_v43 }
0x1709   : > { %v4205_v2 = vpop.f32.mrb[48].mxu1 }
0x170a   : > { %4210 = vrot.lane.b32.xlu1 %v4205_v2, %s6370_s4  ;;  %v5666_v6 = vpop.f32.mrb[49].mxu1 }
0x177c   : > { %v4211_v7 = vpop.permute.xlu1 %4210 }
0x177d   : > { %4213 = vst.msk [vmem:[#allocation3 + $0x8] sm:$0xff] %vm1542_vm5, %v4211_v7 }
0x1784   : > { %v4215_v9 = vld [vmem:[#allocation3 + $0x8] sm:$0xff] }
0x1785   : > { %v4216_v10 = vpack.c.bf16 %v4215_v9, %v4214_v25  ;;  %v5955_v25 = vld [vmem:[%s6766_s27 + $0x28] sm:$0xff]   ;;  %v5956_v9 = vld [vmem:[%s6766_s27 + $0x70] sm:$0xff]  }
0x1787   : > { %5684 = vmatmul.mubr.bf16.vlgmr.msra.gmra.mrb[52].mxu1 %v4216_v10  ;;  %v5957_v10 = vld [vmem:[%s6766_s27 + $0x30] sm:$0xff]  }
0x1788   : > { %5306 = vmatpush3.bf16.msra.mxu1 %v5945_v44 }
0x1789   : > { %5307 = vmatprep.subr.bf16.mxu1 %v5946_v45 }
0x178c   : > { %5308 = vmatpush3.bf16.msra.mxu1 %v5947_v46 }
0x178d   : > { %5309 = vmatprep.subr.bf16.mxu1 %v5948_v48 }
0x1790   : > { %5310 = vmatpush3.bf16.msra.mxu1 %v5949_v50 }
0x1791   : > { %5311 = vmatprep.subr.bf16.mxu1 %v5950_v52 }
0x1794   : > { %5312 = vmatpush3.bf16.msra.mxu1 %v5951_v13 }
0x1795   : > { %5313 = vmatprep.subr.bf16.mxu1 %v5952_v53 }
0x1798   : > { %5314 = vmatpush3.bf16.msra.mxu1 %v5953_v54 }
0x1799   : > { %5315 = vmatprep.subr.bf16.mxu1 %v5954_v55 }
0x179c   : > { %5316 = vmatpush3.bf16.msra.mxu1 %v5955_v25 }
0x179d   : > { %5317 = vmatprep.subr.bf16.mxu1 %v5956_v9 }
0x17a0   : > { %5318 = vmatpush3.bf16.msra.mxu1 %v5957_v10 }
0x185a   : > { %v4303_v12 = vpop.f32.mrb[52].mxu1 }
0x185b   : > { %v4304_v38 = vadd.f32 %v5094_v11, %v4303_v12  ;;  %v5685_v42 = vpop.f32.mrb[53].mxu1  ;;  %v5959_v12 = vld [vmem:[%s6766_s27 + $0x38] sm:$0xff]  }
0x185c   : > { %v4306_v14 = vpop.f32.mrb[54].mxu1 }
0x185d   : > { %v4307_v62 = vadd.f32 %v5094_v11, %v4306_v14  ;;  %v5686_v15 = vpop.f32.mrb[55].mxu1  ;;  %v4310_v17 = vadd.f32 %v4304_v38, %v7073_v29  ;;  %v5958_v11 = vld [vmem:[%s6766_s27 + $0x78] sm:$0xff]   ;;  %v4365_v38 = vlaneseq }
0x185e   : > { %5319 = vmatprep.subr.bf16.mxu1 %v5958_v11 }
0x185f   : > { %4312 = vadd.xlane.f32.xlu0 %v4310_v17  ;;  %v4311_v18 = vadd.f32 %v4307_v62, %v7075_v30  ;;  %5320 = vmatpush3.bf16.msra.mxu1 %v5959_v12  ;;  %v4366_v42 = vshrl.u32 %v4365_v38, 7  ;;  %v4363_v62 = vld [vmem:[%s6760_s16] sm:$0x3] }
0x1861   : > { %4314 = vadd.xlane.f32.xlu1 %v4311_v18  ;;  %v4367_v14 = vsub.s32 0, %v4366_v42  ;;  %v4371_v15 = vsub.s32 1, %v4366_v42 }
0x18ec   : > { %v4313_v23 = vpop.xlane.xlu0 %4312 }
0x18ed   : > { %v4316_v8 = vmul.f32 0.0078125, %v4313_v23 }
0x18ee   : > { %v4315_v47 = vpop.xlane.xlu1 %4314 }
0x18ef   : > { %v4318_v29 = vsub.f32 %v4310_v17, %v4316_v8  ;;  %v4317_v30 = vmul.f32 0.0078125, %v4315_v47  ;;  %v4368_v17 = vrot.slane %v4363_v62, %v4367_v14 }
0x18f1   : > { %v7411_v34 = vsub.f32 %v4311_v18, %v4317_v30  ;;  %v4320_v24 = vmul.f32 %v4318_v29, %v4318_v29  ;;  %v4372_v18 = vrot.slane %v4363_v62, %v4371_v15 }
0x18f3   : > { %4322 = vadd.xlane.f32.xlu0 %v4320_v24  ;;  %v4321_v26 = vmul.f32 %v7411_v34, %v7411_v34 }
0x18f7   : > { %4324 = vadd.xlane.f32.xlu0 %v4321_v26 }
0x1980   : > { %v4323_v49 = vpop.xlane.xlu0 %4322 }
0x1981   : > { %v4326_v32 = vmul.f32 0.0078125, %v4323_v49 }
0x1983   : > { %v4328_v56 = vadd.f32 1e-05, %v4326_v32 }
0x1984   : > { %v4325_v57 = vpop.xlane.xlu0 %4324 }
0x1985   : > { %6028 = vrsqrt.f32 %v4328_v56  ;;  %v4327_v58 = vmul.f32 0.0078125, %v4325_v57 }
0x1987   : > { %v4329_v59 = vadd.f32 1e-05, %v4327_v58 }
0x1989   : > { %6030 = vrsqrt.f32 %v4329_v59  ;;  %v5138_v59 = vld [vmem:[%s6762_s15 + $0xd] ss:$0 sm:$0xff] }
0x198f   : > { %v6029_v41 = vpop.eup %6028 }
0x1990   : > { %v4332_v61 = vmul.f32 %v6029_v41, %v4318_v29 }
0x1992   : > { %v4338_v5 = vmul.f32 %v5103_v1, %v4332_v61 }
0x1993   : > { %v6031_v3 = vpop.eup %6030 }
0x1994   : > { %v4333_v4 = vmul.f32 %v6031_v3, %v7411_v34  ;;  %v4344_v2 = vadd.f32 %v5104_v51, %v4338_v5 }
0x1996   : > { %v4339_v63 = vmul.f32 %v5103_v1, %v4333_v4  ;;  %v5139_v1 = vld [vmem:[%s6762_s15 + $0xe] ss:$0 sm:$0xff] }
0x1998   : > { %v4345_v6 = vadd.f32 %v5104_v51, %v4339_v63 }
0x199a   : > { %v4362_v7 = vpack.c.bf16 %v4345_v6, %v4344_v2 }
0x199c   : > { %4488 = vmatmul.mubr.bf16.vlgmr.msra.gmra.mrb[56].mxu0 %v4362_v7 }
0x1a6f   : > { %v4489_v20 = vpop.f32.mrb[56].mxu0 }
0x1a70   : > { %v4490_v16 = vadd.f32 %v4489_v20, %v4368_v17  ;;  %v4491_v21 = vpop.f32.mrb[57].mxu0  ;;  %v5141_v20 = vld [vmem:[%s7566_s12] ss:$0 sm:$0xff] (!%p5140_p13) }
0x1a71   : > { %v4492_v22 = vadd.f32 %v4491_v21, %v4372_v18  ;;  %v4493_v23 = vpop.f32.mrb[58].mxu0  ;;  %v5142_v21 = vld [vmem:[%s7566_s12 + $0x1] ss:$0 sm:$0xff] (!%p5140_p13) }
0x1a72   : > { %v4494_v8 = vadd.f32 %v4493_v23, %v4368_v17  ;;  %v4495_v47 = vpop.f32.mrb[59].mxu0  ;;  %v4498_v30 = vmax.f32 %v4490_v16, 0.0 }
0x1a73   : > { %v4496_v29 = vadd.f32 %v4495_v47, %v4372_v18  ;;  %v4499_v24 = vmax.f32 %v4492_v22, 0.0 }
0x1a74   : > { %v4500_v34 = vmax.f32 %v4494_v8, 0.0 }
0x1a75   : > { %v4501_v26 = vmax.f32 %v4496_v29, 0.0 }
0x1a76   : > { %v4534_v27 = vpack.c.bf16 %v4500_v34, %v4498_v30 }
0x1a77   : > { %v4535_v31 = vpack.c.bf16 %v4501_v26, %v4499_v24 }
0x1a79   : > { %4669 = vmatprep.mubr.bf16.mxu1 %v4535_v31 }
0x1a7a   : > { %4670 = vmatmul.mubr.bf16.vlgmr.msra.gmra.mrb[56].mxu1 %v4534_v27 }
0x1b4d   : > { %v5321_v33 = vpop.f32.mrb[56].mxu1 }
0x1b4e   : > { %v5322_v19 = vpop.f32.mrb[57].mxu1 }
0x1b4f   : > { %v5323_v60 = vadd.f32 %v5322_v19, %v5321_v33  ;;  %v5324_v0 = vpop.f32.mrb[58].mxu1 }
0x1b50   : > { %v5325_v36 = vpop.f32.mrb[59].mxu1 }
0x1b51   : > { %v4672_v37 = vadd.f32 %v5323_v60, %v5121_v40  ;;  %v5326_v39 = vadd.f32 %v5325_v36, %v5324_v0 }
0x1b53   : > { %v4675_v28 = vadd.f32 %v5326_v39, %v5121_v40  ;;  %v4678_v35 = vadd.f32 %v4672_v37, %v4344_v2 }
0x1b55   : > { %4680 = vadd.xlane.f32.xlu1 %v4678_v35  ;;  %v4679_v43 = vadd.f32 %v4675_v28, %v4345_v6 }
0x1b57   : > { %4682 = vadd.xlane.f32.xlu0 %v4679_v43 }
0x1be2   : > { %v4681_v44 = vpop.xlane.xlu1 %4680 }
0x1be3   : > { %v4684_v45 = vmul.f32 0.0078125, %v4681_v44 }
0x1be4   : > { %v4683_v46 = vpop.xlane.xlu0 %4682 }
0x1be5   : > { %v4686_v48 = vsub.f32 %v4678_v35, %v4684_v45  ;;  %v4685_v50 = vmul.f32 0.0078125, %v4683_v46 }
0x1be7   : > { %v4687_v52 = vsub.f32 %v4679_v43, %v4685_v50  ;;  %v4688_v13 = vmul.f32 %v4686_v48, %v4686_v48 }
0x1be9   : > { %4690 = vadd.xlane.f32.xlu1 %v4688_v13  ;;  %v4689_v53 = vmul.f32 %v4687_v52, %v4687_v52 }
0x1beb   : > { %4692 = vadd.xlane.f32.xlu0 %v4689_v53 }
0x1c76   : > { %v4691_v54 = vpop.xlane.xlu1 %4690 }
0x1c77   : > { %v4694_v55 = vmul.f32 0.0078125, %v4691_v54 }
0x1c78   : > { %v4693_v49 = vpop.xlane.xlu0 %4692 }
0x1c79   : > { %v4696_v32 = vadd.f32 1e-05, %v4694_v55  ;;  %v4695_v56 = vmul.f32 0.0078125, %v4693_v49 }
0x1c7b   : > { %6032 = vrsqrt.f32 %v4696_v32  ;;  %v4697_v57 = vadd.f32 1e-05, %v4695_v56 }
0x1c7d   : > { %6034 = vrsqrt.f32 %v4697_v57 }
0x1c85   : > { %v6033_v58 = vpop.eup %6032 }
0x1c86   : > { %v4700_v41 = vmul.f32 %v6033_v58, %v4686_v48 }
0x1c87   : > { %v6035_v61 = vpop.eup %6034 }
0x1c88   : > { %v4706_v3 = vmul.f32 %v5138_v59, %v4700_v41  ;;  %v4701_v4 = vmul.f32 %v6035_v61, %v4687_v52  ;;  %4719 = sbr.rel (%p5140_p13) target bundleno = 7624 (0x1dc8), region = 100 }
0x1c8a   : > { %v4712_v5 = vadd.f32 %v5139_v1, %v4706_v3  ;;  %v4707_v51 = vmul.f32 %v5138_v59, %v4701_v4 }
0x1c8c   : > { %4714 = vst [vmem:[#allocation2] sm:$0xff] %v4712_v5  ;;  %v4713_v63 = vadd.f32 %v5139_v1, %v4707_v51  ;;  %4722 = vadd.xlane.f32.xlu0 (!%p5140_p13), %v4712_v5 }
0x1c8e   : > { %4715 = vst [vmem:[#allocation2 + $0x8] sm:$0xff] %v4713_v63 }
0x1c90   : > { %4724 = vadd.xlane.f32.xlu0 %v4713_v63 }
0x1d19   : > { %v4723_v2 = vpop.xlane.xlu0 %4722 }
0x1d1a   : > { %v4726_v6 = vmul.f32 0.0078125, %v4723_v2 }
0x1d1c   : > { %v4728_v7 = vsub.f32 %v4712_v5, %v4726_v6 }
0x1d1d   : > { %v4725_v25 = vpop.xlane.xlu0 %4724 }
0x1d1e   : > { %v4727_v9 = vmul.f32 0.0078125, %v4725_v25  ;;  %v4730_v10 = vmul.f32 %v4728_v7, %v4728_v7 }
0x1d20   : > { %v4729_v11 = vsub.f32 %v4713_v63, %v4727_v9  ;;  %4732 = vadd.xlane.f32.xlu1 %v4730_v10 }
0x1d22   : > { %v4731_v12 = vmul.f32 %v4729_v11, %v4729_v11 }
0x1d24   : > { %4734 = vadd.xlane.f32.xlu1 %v4731_v12 }
0x1dad   : > { %v4733_v38 = vpop.xlane.xlu1 %4732 }
0x1dae   : > { %v4736_v42 = vmul.f32 0.0078125, %v4733_v38 }
0x1db0   : > { %v4738_v14 = vadd.f32 1e-05, %v4736_v42 }
0x1db1   : > { %v4735_v62 = vpop.xlane.xlu1 %4734 }
0x1db2   : > { %6038 = vrsqrt.f32 %v4738_v14  ;;  %v4737_v15 = vmul.f32 0.0078125, %v4735_v62 }
0x1db4   : > { %v4739_v17 = vadd.f32 1e-05, %v4737_v15 }
0x1db6   : > { %6040 = vrsqrt.f32 %v4739_v17 }
0x1dbc   : > { %v6039_v18 = vpop.eup %6038 }
0x1dbd   : > { %v4742_v16 = vmul.f32 %v6039_v18, %v4728_v7 }
0x1dbf   : > { %v4748_v22 = vmul.f32 %v5141_v20, %v4742_v16 }
0x1dc0   : > { %v6041_v23 = vpop.eup %6040 }
0x1dc1   : > { %v4754_v8 = vadd.f32 %v5142_v21, %v4748_v22  ;;  %v4743_v47 = vmul.f32 %v6041_v23, %v4729_v11 }
0x1dc3   : > { %4756 = vst [vmem:[#allocation16] sm:$0xff] %v4754_v8  ;;  %v4749_v29 = vmul.f32 %v5141_v20, %v4743_v47 }
0x1dc5   : > { %v4755_v30 = vadd.f32 %v5142_v21, %v4749_v29 }
0x1dc7   : > { %4757 = vst [vmem:[#allocation16 + $0x8] sm:$0xff] %v4755_v30 }
0x1dc8 PF: > { %p5806_p3 = scmp.eq.s32.totalorder %s6450_s17, 1  ;;  %s6373_s19 = smov [#allocation16]  }
0x1dc9   : > { %s4764_s24 = sshll.u32 %s6373_s19, 4  ;;  %s4765_s24 = int_to_ptr.vmem [resolvable:$true] %s4764_s24 }
0x1dca   : > { %s6274_s28 = scalar_lea.vmem %s4765_s24, 256  ;;  %p6281_p7 = scmp.lt.s32.totalorder %s4765_s24, %s4765_s24 }
0x1dcb   : > { %p6275_p9 = scmp.ne.s32.totalorder %s4765_s24, %s6274_s28  ;;  %p6282_p8 = scmp.lt.s32.totalorder %s6274_s28, %s6274_s28 }
0x1dcd   : > { %p6276_p2 = pnand %p6275_p9, %p5806_p3  ;;  %p6283_p10 = por %p6282_p8, %p6281_p7 }
0x1dcf   : > { %p6277_p5 = pneg %p6276_p2 }
0x1dd1   : > { %p6284_p1 = pnand %p6283_p10, %p6277_p5 }
0x1dd3   : > { %6287 = shalt.err (!%p6284_p1)
}
0x1dd4   : > { %s7567_s1 = sld [smem:[#allocation30_spill]] }
0x1dda   : > { %s6288_s7 = scalar_lea.hbm %s7567_s1, 256 }
0x1ddb   : > { %p6289_p4 = scmp.ne.s32.totalorder %s7567_s1, %s6288_s7  ;;  %p6294_p12 = scmp.lt.u32.totalorder %s6288_s7, %s7567_s1 }
0x1ddd   : > { %p6290_p11 = pnand %p6289_p4, %p5806_p3 }
0x1ddf   : > { %p6291_p6 = pneg %p6290_p11 }
0x1de1   : > { %p6296_p0 = pnand %p6294_p12, %p6291_p6 }
0x1de3   : > { %6299 = shalt.err (!%p6296_p0)
}
0x1de4   : > { %s6374_s10 = smov 128   ;;  %s6375_s16 = smov 8  }
0x1de5   : > { %5768 = dma.vmem_to_hbm [thread:$0]  (%p5806_p3), %s4765_s24, 256, %s7567_s1, [#allocation6], %s6374_s10, %s6374_s10, %s6375_s16  }
0x1de6   : > { %6333 = dma.done.wait (%p5806_p3), [#allocation6], 256  }
0x1de7   : > { %6335 = vsyncadd (%p5806_p3), [#allocation6], 4294967040 }
0x1de8 PF: > { %s7568_s16 = sld [smem:[#allocation23_spill]]  ;;  %s7569_s27 = sld [smem:[#allocation22_spill]] }
0x1de9   : > { %s7570_s15 = sld [smem:[#allocation24_spill]]  ;;  %s7571_s13 = smov %s6342_s14 }
0x1dee   : > { %p21_p13 = scmp.ge.s32.totalorder %s7568_s16, 4   ;;  %s7572_s14 = smov %s7569_s27 }
0x1df0   :  { %23 = sbr.rel (!%p21_p13) target bundleno = 12 (0xc), region = 156 }
0x1df7   :  { %4780 = vsyncpa [#allocation5], 1 }
0x1df8   :  { %4782 = vsyncpa [#allocation5 + $0x1], 1 }
0x1df9   :  { %4783 = vsyncpa [#allocation8], 1 }
0x1dfa   :  { %4784 = vsyncpa [#allocation11], 1 }
0x1dfb   :  { %4785 = vsyncpa [#allocation6], 1 }
0x1dfc   :  { %4787 = vsyncpa [#allocation6 + $0x1], 1 }

</bundles_post_ra>
